<compile_context>
chip_gen: v6e
topology: v6e:2x2x1
jax: 0.10.0
libtpu: 0.0.40
codegen_flags: <defaults>
</compile_context>

<pallas_src>
import functools

import jax
import jax.numpy as jnp
import numpy as np
from jax.experimental import pallas as pl
from jax.experimental.pallas import tpu as pltpu

_LN_EPS = 1e-5


def _ln_nogain(z, eps=_LN_EPS):
    """LayerNorm without affine; one-pass moments (two independent reductions)."""
    mu = jnp.mean(z, axis=-1, keepdims=True)
    ms = jnp.mean(z * z, axis=-1, keepdims=True)
    var = ms - mu * mu
    return (z - mu) * jax.lax.rsqrt(var + eps)


def silstm_fused_kernel(gx0_ref, scale_ref, off_ref, *refs,
                        num_layers, seq_len, batch_pad, hidden_size,
                        proj_chunk_rows, rec_unroll):
    """All layers + all timesteps of the unidirectional SILSTM recurrence."""
    H = hidden_size
    Bp = batch_pad
    n_params = 5 + 9 * (num_layers - 1)
    param_refs = refs[:n_params]
    hN_ref = refs[n_params]
    cN_ref = refs[n_params + 1]
    gx_sc = ys_sc = None
    if num_layers > 1:
        gx_sc = refs[n_params + 2]
        ys_sc = refs[n_params + 3]

    # Gate-activation folding: sigmoid(x) = 0.5*(tanh(x/2) + 1).  One wide tanh
    # over all 4H lanes, then a fused multiply-add.  scale = 0.5 on i/f/o lanes,
    # 1.0 on g lanes; off = 0.5 on i/f/o lanes, 0.0 on g lanes.
    scale = scale_ref[...]          # (1, 4H)
    off = off_ref[...]              # (1, 4H)

    idx = 0
    for l in range(num_layers):
        if l == 0:
            # Layer-0 input projection was precomputed (batched, in XLA).
            gx_ref = gx0_ref
        else:
            wih_ref, bih_ref, gih_ref, beta_ref = param_refs[idx:idx + 4]
            idx += 4
            wih = wih_ref[...]      # (H, 4H) bf16 MXU operand
            bih = bih_ref[...]      # (1, 4H) rows: broadcast on the VPU,
            gih = gih_ref[...]      #         never materialized at (Bp, 4H)
            beta = beta_ref[...]

            # Input projection for this layer over ALL timesteps: chunked
            # big-M matmuls (rows = time*batch), independent of the h chain.
            total_rows = seq_len * Bp
            for r0 in range(0, total_rows, proj_chunk_rows):
                rows = ys_sc[r0:r0 + proj_chunk_rows, :]                 # bf16
                pre = jnp.dot(rows, wih,
                              preferred_element_type=jnp.float32) + bih
                gx_sc[r0:r0 + proj_chunk_rows, :] = _ln_nogain(pre) * gih + beta
            gx_ref = gx_sc

        whh_ref, bhh_ref, ghh_ref, gho_ref, bho_ref = param_refs[idx:idx + 5]
        idx += 5
        whh = whh_ref[...]          # (H, 4H) bf16 — only the matrix is hoisted
        bhh = bhh_ref[...]          # (1, 4H) f32 rows, VPU-broadcast per use
        ghh = ghh_ref[...]
        gho = gho_ref[...]          # (1, H)
        bho = bho_ref[...]

        write_ys = l < num_layers - 1   # last layer's ys is never consumed

        def step(t, carry, whh=whh, bhh=bhh, ghh=ghh, gho=gho, bho=bho,
                 gx_ref=gx_ref, write_ys=write_ys):
            h, c = carry
            r0 = pl.multiple_of(t * Bp, Bp)
            gh = _ln_nogain(
                jnp.dot(h.astype(jnp.bfloat16), whh,
                        preferred_element_type=jnp.float32) + bhh) * ghh
            # Both LayerNorm betas are already folded into gx.
            gates = gx_ref[pl.ds(r0, Bp), :].astype(jnp.float32) + gh
            act = jnp.tanh(gates * scale) * scale + off   # i,f,o sigmoid; g tanh
            i = act[:, 0 * H:1 * H]
            f = act[:, 1 * H:2 * H]
            o = act[:, 2 * H:3 * H]
            g = act[:, 3 * H:4 * H]
            cy = f * c + i * g
            hy = o * jnp.tanh(_ln_nogain(cy) * gho + bho)
            if write_ys:
                ys_sc[pl.ds(r0, Bp), :] = hy.astype(jnp.bfloat16)
            return (hy, cy)

        h0 = jnp.zeros((Bp, H), jnp.float32)
        c0 = jnp.zeros((Bp, H), jnp.float32)
        hN, cN = jax.lax.fori_loop(0, seq_len, step, (h0, c0),
                                   unroll=rec_unroll)

        # Final-state writes happen exactly once per layer, after the time loop.
        hN_ref[l * Bp:(l + 1) * Bp, :] = hN
        cN_ref[l * Bp:(l + 1) * Bp, :] = cN


def _prep_layer(p):
    return dict(
        wih_t=p['weight_ih'].T.astype(jnp.float32),           # (in_dim, 4H)
        whh_t=p['weight_hh'].T.astype(jnp.bfloat16),          # (H, 4H) MXU operand
        b_ih=p['bias_ih'].reshape(1, -1).astype(jnp.float32),
        b_hh=p['bias_hh'].reshape(1, -1).astype(jnp.float32),
        g_ih=p['ln_ih_w'].reshape(1, -1).astype(jnp.float32),
        g_hh=p['ln_hh_w'].reshape(1, -1).astype(jnp.float32),
        beta=(p['ln_ih_b'] + p['ln_hh_b']).reshape(1, -1).astype(jnp.float32),
        g_ho=p['ln_ho_w'].reshape(1, -1).astype(jnp.float32),
        b_ho=p['ln_ho_b'].reshape(1, -1).astype(jnp.float32),
    )


def _full_spec(shape):
    nd = len(shape)
    return pl.BlockSpec(shape, lambda *_: (0,) * nd)


@jax.jit
def silstm_forward(x, layer_params):
    """Unidirectional SILSTM.forward (hidden=None, noise_std=0.0)."""
    seq_len, batch, in0 = x.shape
    num_layers = len(layer_params)
    H = layer_params[0]['weight_hh'].shape[1]
    Bp = ((batch + 7) // 8) * 8          # pad batch to the f32 sublane multiple
    prepped = [_prep_layer(p) for p in layer_params]

    # ---- Layer-0 input projection hoisted off the serial path: one big
    # (S*Bp, in) @ (in, 4H) matmul + LN in plain XLA; result shipped as bf16. --
    p0 = prepped[0]
    xp = jnp.pad(x.astype(jnp.float32), ((0, 0), (0, Bp - batch), (0, 0)))
    pre0 = xp.reshape(seq_len * Bp, in0) @ p0['wih_t'] + p0['b_ih']
    gx0 = (_ln_nogain(pre0) * p0['g_ih'] + p0['beta']).astype(jnp.bfloat16)

    # Gate activation pre/post scale rows (see kernel).
    scale = jnp.concatenate([jnp.full((1, 3 * H), 0.5, jnp.float32),
                             jnp.ones((1, H), jnp.float32)], axis=-1)
    off = jnp.concatenate([jnp.full((1, 3 * H), 0.5, jnp.float32),
                           jnp.zeros((1, H), jnp.float32)], axis=-1)

    # ---- Build fused-kernel inputs (all layers in ONE pallas_call). ----
    inputs = [gx0, scale, off]
    in_specs = [_full_spec(gx0.shape), _full_spec(scale.shape),
                _full_spec(off.shape)]
    for l in range(num_layers):
        p = prepped[l]
        if l > 0:
            wih_bf16 = p['wih_t'].astype(jnp.bfloat16)
            for a in (wih_bf16, p['b_ih'], p['g_ih'], p['beta']):
                inputs.append(a)
                in_specs.append(_full_spec(a.shape))
        for a in (p['whh_t'], p['b_hh'], p['g_hh'], p['g_ho'], p['b_ho']):
            inputs.append(a)
            in_specs.append(_full_spec(a.shape))

    scratch_shapes = []
    if num_layers > 1:
        scratch_shapes = [pltpu.VMEM((seq_len * Bp, 4 * H), jnp.float32),
                          pltpu.VMEM((seq_len * Bp, H), jnp.bfloat16)]

    # Projection chunk: largest sublane-aligned divisor of the row count that
    # keeps M around a few hundred rows (MXU-friendly, bounded live values).
    total_rows = seq_len * Bp
    proj_chunk_rows = min(total_rows, 512)
    while total_rows % proj_chunk_rows or proj_chunk_rows % 8:
        proj_chunk_rows -= 1

    rec_unroll = seq_len if seq_len <= 8 else 8   # cap unroll of the serial chain

    kernel = functools.partial(
        silstm_fused_kernel, num_layers=num_layers, seq_len=seq_len,
        batch_pad=Bp, hidden_size=H, proj_chunk_rows=proj_chunk_rows,
        rec_unroll=rec_unroll)

    hN2, cN2 = pl.pallas_call(
        kernel,
        out_shape=(jax.ShapeDtypeStruct((num_layers * Bp, H), jnp.float32),
                   jax.ShapeDtypeStruct((num_layers * Bp, H), jnp.float32)),
        grid_spec=pltpu.PrefetchScalarGridSpec(
            num_scalar_prefetch=0,
            grid=(1,),                   # single step; time loop is in-kernel
            in_specs=in_specs,
            out_specs=(_full_spec((num_layers * Bp, H)),
                       _full_spec((num_layers * Bp, H))),
            scratch_shapes=scratch_shapes,
        ),
        compiler_params=pltpu.CompilerParams(
            dimension_semantics=("arbitrary",)),
    )(*inputs)

    hN = hN2.reshape(num_layers, Bp, H)[:, :batch]
    cN = cN2.reshape(num_layers, Bp, H)[:, :batch]
    # Reference's `ht` rows alias the same list, so y is the final timestep's
    # top-layer hidden repeated along the sequence axis.
    y = jnp.broadcast_to(hN[-1][None], (seq_len, batch, H))
    return y, (hN, cN)


def silstm_reference(x, layer_params):
    """Pure-JAX replica of SILSTM.forward (noise_std=0, hidden=None)."""
    S, B, _ = x.shape
    H = layer_params[0]['weight_hh'].shape[1]

    def ln(z, w, b):
        mu = jnp.mean(z, axis=-1, keepdims=True)
        var = jnp.mean(jnp.square(z - mu), axis=-1, keepdims=True)
        return (z - mu) / jnp.sqrt(var + _LN_EPS) * w + b

    xs = x
    hN, cN = [], []
    for p in layer_params:
        h = jnp.zeros((B, H), jnp.float32)
        c = jnp.zeros((B, H), jnp.float32)
        ys = []
        for t in range(S):
            gates = (ln(xs[t] @ p['weight_ih'].T + p['bias_ih'],
                        p['ln_ih_w'], p['ln_ih_b'])
                     + ln(h @ p['weight_hh'].T + p['bias_hh'],
                          p['ln_hh_w'], p['ln_hh_b']))
            i = jax.nn.sigmoid(gates[:, :H])
            f = jax.nn.sigmoid(gates[:, H:2 * H])
            o = jax.nn.sigmoid(gates[:, 2 * H:3 * H])
            g = jnp.tanh(gates[:, 3 * H:])
            c = f * c + i * g
            h = o * jnp.tanh(ln(c, p['ln_ho_w'], p['ln_ho_b']))
            ys.append(h)
        xs = jnp.stack(ys)
        hN.append(h)
        cN.append(c)
    y = jnp.broadcast_to(hN[-1][None], (S, B, H))
    return y, (jnp.stack(hN), jnp.stack(cN))


if __name__ == "__main__":
    seq_len, batch = 8, 4
    input_size, hidden_size, num_layers = 16, 32, 2
    # noise_std = 0.0 -> weight/bias noise terms are exactly zero.

    key = jax.random.PRNGKey(0)
    keys = jax.random.split(key, 1 + 4 * num_layers)
    x = jax.random.normal(keys[0], (seq_len, batch, input_size), jnp.float32)

    stdv = 1.0 / (hidden_size ** 0.5)   # nn.LSTMCell uniform init range
    layer_params = []
    kidx = 1
    for l in range(num_layers):
        in_dim = input_size if l == 0 else hidden_size
        p = {
            'weight_ih': jax.random.uniform(keys[kidx], (4 * hidden_size, in_dim),
                                            jnp.float32, -stdv, stdv),
            'weight_hh': jax.random.uniform(keys[kidx + 1], (4 * hidden_size, hidden_size),
                                            jnp.float32, -stdv, stdv),
            'bias_ih': jax.random.uniform(keys[kidx + 2], (4 * hidden_size,),
                                          jnp.float32, -stdv, stdv),
            'bias_hh': jax.random.uniform(keys[kidx + 3], (4 * hidden_size,),
                                          jnp.float32, -stdv, stdv),
            'ln_ih_w': jnp.ones((4 * hidden_size,), jnp.float32),
            'ln_ih_b': jnp.zeros((4 * hidden_size,), jnp.float32),
            'ln_hh_w': jnp.ones((4 * hidden_size,), jnp.float32),
            'ln_hh_b': jnp.zeros((4 * hidden_size,), jnp.float32),
            'ln_ho_w': jnp.ones((hidden_size,), jnp.float32),
            'ln_ho_b': jnp.zeros((hidden_size,), jnp.float32),
        }
        kidx += 4
        layer_params.append(p)

    y, (hy, cy) = silstm_forward(x, layer_params)
    jax.block_until_ready((y, hy, cy))
    assert y.shape == (seq_len, batch, hidden_size)
    assert hy.shape == (num_layers, batch, hidden_size)
    assert cy.shape == (num_layers, batch, hidden_size)

    # Sanity check against a pure-JAX f32 reference.  Tolerance accounts for
    # the bf16 MXU operands / bf16 gx0 transfer adopted per the perf review
    # (LN bounds the dynamic range; accumulation is f32).
    y_r, (hy_r, cy_r) = silstm_reference(x, layer_params)
    np.testing.assert_allclose(np.asarray(y), np.asarray(y_r), rtol=3e-2, atol=3e-2)
    np.testing.assert_allclose(np.asarray(hy), np.asarray(hy_r), rtol=3e-2, atol=3e-2)
    np.testing.assert_allclose(np.asarray(cy), np.asarray(cy_r), rtol=3e-2, atol=3e-2)

    print("KERNEL_OK")
</pallas_src>

<mosaic_0001>
module attributes {stable_mosaic.version = 11 : i64} {
  func.func @silstm_fused_kernel(%arg0: i32, %arg1: memref<64x128xbf16, #tpu.memory_space<vmem>>, %arg2: memref<1x128xf32, #tpu.memory_space<vmem>>, %arg3: memref<1x128xf32, #tpu.memory_space<vmem>>, %arg4: memref<32x128xbf16, #tpu.memory_space<vmem>>, %arg5: memref<1x128xf32, #tpu.memory_space<vmem>>, %arg6: memref<1x128xf32, #tpu.memory_space<vmem>>, %arg7: memref<1x32xf32, #tpu.memory_space<vmem>>, %arg8: memref<1x32xf32, #tpu.memory_space<vmem>>, %arg9: memref<32x128xbf16, #tpu.memory_space<vmem>>, %arg10: memref<1x128xf32, #tpu.memory_space<vmem>>, %arg11: memref<1x128xf32, #tpu.memory_space<vmem>>, %arg12: memref<1x128xf32, #tpu.memory_space<vmem>>, %arg13: memref<32x128xbf16, #tpu.memory_space<vmem>>, %arg14: memref<1x128xf32, #tpu.memory_space<vmem>>, %arg15: memref<1x128xf32, #tpu.memory_space<vmem>>, %arg16: memref<1x32xf32, #tpu.memory_space<vmem>>, %arg17: memref<1x32xf32, #tpu.memory_space<vmem>>, %arg18: memref<16x32xf32, #tpu.memory_space<vmem>>, %arg19: memref<16x32xf32, #tpu.memory_space<vmem>>, %arg20: memref<64x128xf32, #tpu.memory_space<vmem>>, %arg21: memref<64x32xbf16, #tpu.memory_space<vmem>>) attributes {dimension_semantics = [#tpu.dimension_semantics<arbitrary>], iteration_bounds = array<i64: 1>, scalar_prefetch = 0 : i64, scratch_operands = 2 : i64, tpu.core_type = #tpu.core_type<tc>, window_params = [{pipeline_mode = #tpu.pipeline_mode<synchronous>, transform_indices = @transform_0, window_bounds = array<i64: 64, 128>}, {pipeline_mode = #tpu.pipeline_mode<synchronous>, transform_indices = @transform_1, window_bounds = array<i64: 1, 128>}, {pipeline_mode = #tpu.pipeline_mode<synchronous>, transform_indices = @transform_2, window_bounds = array<i64: 1, 128>}, {pipeline_mode = #tpu.pipeline_mode<synchronous>, transform_indices = @transform_3, window_bounds = array<i64: 32, 128>}, {pipeline_mode = #tpu.pipeline_mode<synchronous>, transform_indices = @transform_4, window_bounds = array<i64: 1, 128>}, {pipeline_mode = #tpu.pipeline_mode<synchronous>, transform_indices = @transform_5, window_bounds = array<i64: 1, 128>}, {pipeline_mode = #tpu.pipeline_mode<synchronous>, transform_indices = @transform_6, window_bounds = array<i64: 1, 32>}, {pipeline_mode = #tpu.pipeline_mode<synchronous>, transform_indices = @transform_7, window_bounds = array<i64: 1, 32>}, {pipeline_mode = #tpu.pipeline_mode<synchronous>, transform_indices = @transform_8, window_bounds = array<i64: 32, 128>}, {pipeline_mode = #tpu.pipeline_mode<synchronous>, transform_indices = @transform_9, window_bounds = array<i64: 1, 128>}, {pipeline_mode = #tpu.pipeline_mode<synchronous>, transform_indices = @transform_10, window_bounds = array<i64: 1, 128>}, {pipeline_mode = #tpu.pipeline_mode<synchronous>, transform_indices = @transform_11, window_bounds = array<i64: 1, 128>}, {pipeline_mode = #tpu.pipeline_mode<synchronous>, transform_indices = @transform_12, window_bounds = array<i64: 32, 128>}, {pipeline_mode = #tpu.pipeline_mode<synchronous>, transform_indices = @transform_13, window_bounds = array<i64: 1, 128>}, {pipeline_mode = #tpu.pipeline_mode<synchronous>, transform_indices = @transform_14, window_bounds = array<i64: 1, 128>}, {pipeline_mode = #tpu.pipeline_mode<synchronous>, transform_indices = @transform_15, window_bounds = array<i64: 1, 32>}, {pipeline_mode = #tpu.pipeline_mode<synchronous>, transform_indices = @transform_16, window_bounds = array<i64: 1, 32>}, {pipeline_mode = #tpu.pipeline_mode<synchronous>, transform_indices = @transform_17, window_bounds = array<i64: 16, 32>}, {pipeline_mode = #tpu.pipeline_mode<synchronous>, transform_indices = @transform_18, window_bounds = array<i64: 16, 32>}]} {
    %c0 = arith.constant 0 : index
    %c0_0 = arith.constant 0 : index
    %0 = vector.load %arg2[%c0, %c0_0] : memref<1x128xf32, #tpu.memory_space<vmem>>, vector<1x128xf32>
    %c0_1 = arith.constant 0 : index
    %c0_2 = arith.constant 0 : index
    %1 = vector.load %arg3[%c0_1, %c0_2] : memref<1x128xf32, #tpu.memory_space<vmem>>, vector<1x128xf32>
    %c0_3 = arith.constant 0 : index
    %c0_4 = arith.constant 0 : index
    %2 = vector.load %arg4[%c0_3, %c0_4] : memref<32x128xbf16, #tpu.memory_space<vmem>>, vector<32x128xbf16>
    %c0_5 = arith.constant 0 : index
    %c0_6 = arith.constant 0 : index
    %3 = vector.load %arg5[%c0_5, %c0_6] : memref<1x128xf32, #tpu.memory_space<vmem>>, vector<1x128xf32>
    %c0_7 = arith.constant 0 : index
    %c0_8 = arith.constant 0 : index
    %4 = vector.load %arg6[%c0_7, %c0_8] : memref<1x128xf32, #tpu.memory_space<vmem>>, vector<1x128xf32>
    %c0_9 = arith.constant 0 : index
    %c0_10 = arith.constant 0 : index
    %5 = vector.load %arg7[%c0_9, %c0_10] : memref<1x32xf32, #tpu.memory_space<vmem>>, vector<1x32xf32>
    %c0_11 = arith.constant 0 : index
    %c0_12 = arith.constant 0 : index
    %6 = vector.load %arg8[%c0_11, %c0_12] : memref<1x32xf32, #tpu.memory_space<vmem>>, vector<1x32xf32>
    %cst = arith.constant 0.000000e+00 : f32
    %7 = vector.broadcast %cst : f32 to vector<8x32xf32>
    %cst_13 = arith.constant 0.000000e+00 : f32
    %8 = vector.broadcast %cst_13 : f32 to vector<8x32xf32>
    %c0_i32 = arith.constant 0 : i32
    %c8_i32 = arith.constant 8 : i32
    %9 = arith.muli %c0_i32, %c8_i32 : i32
    %10 = tpu.assume_multiple %9, 8 : i32
    %11 = arith.truncf %7 : vector<8x32xf32> to vector<8x32xbf16>
    %cst_14 = arith.constant dense<0.000000e+00> : vector<8x128xf32>
    %12 = tpu.matmul %11, %2, %cst_14 {dimension_numbers = #tpu.dot_dimension_numbers<[1], [0], [0], [1], [0, 0, 1, 1], [], []>} : vector<8x32xbf16>, vector<32x128xbf16>, vector<8x128xf32> -> vector<8x128xf32>
    %13 = vector.broadcast %3 : vector<1x128xf32> to vector<8x128xf32>
    %14 = arith.addf %12, %13 : vector<8x128xf32>
    %cst_15 = arith.constant dense<0.000000e+00> : vector<8xf32>
    %15 = vector.multi_reduction <add>, %14, %cst_15 [1] : vector<8x128xf32> to vector<8xf32>
    %16 = vector.shape_cast %15 : vector<8xf32> to vector<8x1xf32>
    %cst_16 = arith.constant 1.280000e+02 : f32
    %17 = vector.broadcast %cst_16 : f32 to vector<8x1xf32>
    %18 = arith.divf %16, %17 : vector<8x1xf32>
    %19 = arith.mulf %14, %14 : vector<8x128xf32>
    %cst_17 = arith.constant dense<0.000000e+00> : vector<8xf32>
    %20 = vector.multi_reduction <add>, %19, %cst_17 [1] : vector<8x128xf32> to vector<8xf32>
    %21 = vector.shape_cast %20 : vector<8xf32> to vector<8x1xf32>
    %cst_18 = arith.constant 1.280000e+02 : f32
    %22 = vector.broadcast %cst_18 : f32 to vector<8x1xf32>
    %23 = arith.divf %21, %22 : vector<8x1xf32>
    %24 = arith.mulf %18, %18 : vector<8x1xf32>
    %25 = arith.subf %23, %24 : vector<8x1xf32>
    %26 = vector.broadcast %18 : vector<8x1xf32> to vector<8x128xf32>
    %27 = arith.subf %14, %26 : vector<8x128xf32>
    %cst_19 = arith.constant 9.99999974E-6 : f32
    %28 = vector.broadcast %cst_19 : f32 to vector<8x1xf32>
    %29 = arith.addf %25, %28 : vector<8x1xf32>
    %30 = math.rsqrt %29 : vector<8x1xf32>
    %31 = vector.broadcast %30 : vector<8x1xf32> to vector<8x128xf32>
    %32 = arith.mulf %27, %31 : vector<8x128xf32>
    %33 = vector.broadcast %4 : vector<1x128xf32> to vector<8x128xf32>
    %34 = arith.mulf %32, %33 : vector<8x128xf32>
    %35 = arith.index_cast %10 : i32 to index
    %c0_20 = arith.constant 0 : index
    %36 = vector.load %arg1[%35, %c0_20] : memref<64x128xbf16, #tpu.memory_space<vmem>>, vector<8x128xbf16>
    %37 = arith.extf %36 : vector<8x128xbf16> to vector<8x128xf32>
    %38 = arith.addf %37, %34 : vector<8x128xf32>
    %39 = vector.broadcast %0 : vector<1x128xf32> to vector<8x128xf32>
    %40 = arith.mulf %38, %39 : vector<8x128xf32>
    %41 = math.tanh %40 : vector<8x128xf32>
    %42 = vector.broadcast %0 : vector<1x128xf32> to vector<8x128xf32>
    %43 = arith.mulf %41, %42 : vector<8x128xf32>
    %44 = vector.broadcast %1 : vector<1x128xf32> to vector<8x128xf32>
    %45 = arith.addf %43, %44 : vector<8x128xf32>
    %46 = vector.extract_strided_slice %45 {offsets = [0, 0], sizes = [8, 32], strides = [1, 1]} : vector<8x128xf32> to vector<8x32xf32>
    %47 = vector.extract_strided_slice %45 {offsets = [0, 32], sizes = [8, 32], strides = [1, 1]} : vector<8x128xf32> to vector<8x32xf32>
    %48 = vector.extract_strided_slice %45 {offsets = [0, 64], sizes = [8, 32], strides = [1, 1]} : vector<8x128xf32> to vector<8x32xf32>
    %49 = vector.extract_strided_slice %45 {offsets = [0, 96], sizes = [8, 32], strides = [1, 1]} : vector<8x128xf32> to vector<8x32xf32>
    %50 = arith.mulf %47, %8 : vector<8x32xf32>
    %51 = arith.mulf %46, %49 : vector<8x32xf32>
    %52 = arith.addf %50, %51 : vector<8x32xf32>
    %cst_21 = arith.constant dense<0.000000e+00> : vector<8xf32>
    %53 = vector.multi_reduction <add>, %52, %cst_21 [1] : vector<8x32xf32> to vector<8xf32>
    %54 = vector.shape_cast %53 : vector<8xf32> to vector<8x1xf32>
    %cst_22 = arith.constant 3.200000e+01 : f32
    %55 = vector.broadcast %cst_22 : f32 to vector<8x1xf32>
    %56 = arith.divf %54, %55 : vector<8x1xf32>
    %57 = arith.mulf %52, %52 : vector<8x32xf32>
    %cst_23 = arith.constant dense<0.000000e+00> : vector<8xf32>
    %58 = vector.multi_reduction <add>, %57, %cst_23 [1] : vector<8x32xf32> to vector<8xf32>
    %59 = vector.shape_cast %58 : vector<8xf32> to vector<8x1xf32>
    %cst_24 = arith.constant 3.200000e+01 : f32
    %60 = vector.broadcast %cst_24 : f32 to vector<8x1xf32>
    %61 = arith.divf %59, %60 : vector<8x1xf32>
    %62 = arith.mulf %56, %56 : vector<8x1xf32>
    %63 = arith.subf %61, %62 : vector<8x1xf32>
    %64 = vector.broadcast %56 : vector<8x1xf32> to vector<8x32xf32>
    %65 = arith.subf %52, %64 : vector<8x32xf32>
    %cst_25 = arith.constant 9.99999974E-6 : f32
    %66 = vector.broadcast %cst_25 : f32 to vector<8x1xf32>
    %67 = arith.addf %63, %66 : vector<8x1xf32>
    %68 = math.rsqrt %67 : vector<8x1xf32>
    %69 = vector.broadcast %68 : vector<8x1xf32> to vector<8x32xf32>
    %70 = arith.mulf %65, %69 : vector<8x32xf32>
    %71 = vector.broadcast %5 : vector<1x32xf32> to vector<8x32xf32>
    %72 = arith.mulf %70, %71 : vector<8x32xf32>
    %73 = vector.broadcast %6 : vector<1x32xf32> to vector<8x32xf32>
    %74 = arith.addf %72, %73 : vector<8x32xf32>
    %75 = math.tanh %74 : vector<8x32xf32>
    %76 = arith.mulf %48, %75 : vector<8x32xf32>
    %77 = arith.truncf %76 : vector<8x32xf32> to vector<8x32xbf16>
    %78 = arith.index_cast %10 : i32 to index
    %c0_26 = arith.constant 0 : index
    %79 = vector.load %arg21[%78, %c0_26] : memref<64x32xbf16, #tpu.memory_space<vmem>>, vector<8x32xbf16>
    tpu.vector_store %arg21[%78, %c0_26], %77 {strides = array<i32>} : memref<64x32xbf16, #tpu.memory_space<vmem>>, vector<8x32xbf16>,
    %c1_i32 = arith.constant 1 : i32
    %c8_i32_27 = arith.constant 8 : i32
    %80 = arith.muli %c1_i32, %c8_i32_27 : i32
    %81 = tpu.assume_multiple %80, 8 : i32
    %82 = arith.truncf %76 : vector<8x32xf32> to vector<8x32xbf16>
    %cst_28 = arith.constant dense<0.000000e+00> : vector<8x128xf32>
    %83 = tpu.matmul %82, %2, %cst_28 {dimension_numbers = #tpu.dot_dimension_numbers<[1], [0], [0], [1], [0, 0, 1, 1], [], []>} : vector<8x32xbf16>, vector<32x128xbf16>, vector<8x128xf32> -> vector<8x128xf32>
    %84 = vector.broadcast %3 : vector<1x128xf32> to vector<8x128xf32>
    %85 = arith.addf %83, %84 : vector<8x128xf32>
    %cst_29 = arith.constant dense<0.000000e+00> : vector<8xf32>
    %86 = vector.multi_reduction <add>, %85, %cst_29 [1] : vector<8x128xf32> to vector<8xf32>
    %87 = vector.shape_cast %86 : vector<8xf32> to vector<8x1xf32>
    %cst_30 = arith.constant 1.280000e+02 : f32
    %88 = vector.broadcast %cst_30 : f32 to vector<8x1xf32>
    %89 = arith.divf %87, %88 : vector<8x1xf32>
    %90 = arith.mulf %85, %85 : vector<8x128xf32>
    %cst_31 = arith.constant dense<0.000000e+00> : vector<8xf32>
    %91 = vector.multi_reduction <add>, %90, %cst_31 [1] : vector<8x128xf32> to vector<8xf32>
    %92 = vector.shape_cast %91 : vector<8xf32> to vector<8x1xf32>
    %cst_32 = arith.constant 1.280000e+02 : f32
    %93 = vector.broadcast %cst_32 : f32 to vector<8x1xf32>
    %94 = arith.divf %92, %93 : vector<8x1xf32>
    %95 = arith.mulf %89, %89 : vector<8x1xf32>
    %96 = arith.subf %94, %95 : vector<8x1xf32>
    %97 = vector.broadcast %89 : vector<8x1xf32> to vector<8x128xf32>
    %98 = arith.subf %85, %97 : vector<8x128xf32>
    %cst_33 = arith.constant 9.99999974E-6 : f32
    %99 = vector.broadcast %cst_33 : f32 to vector<8x1xf32>
    %100 = arith.addf %96, %99 : vector<8x1xf32>
    %101 = math.rsqrt %100 : vector<8x1xf32>
    %102 = vector.broadcast %101 : vector<8x1xf32> to vector<8x128xf32>
    %103 = arith.mulf %98, %102 : vector<8x128xf32>
    %104 = vector.broadcast %4 : vector<1x128xf32> to vector<8x128xf32>
    %105 = arith.mulf %103, %104 : vector<8x128xf32>
    %106 = arith.index_cast %81 : i32 to index
    %c0_34 = arith.constant 0 : index
    %107 = vector.load %arg1[%106, %c0_34] : memref<64x128xbf16, #tpu.memory_space<vmem>>, vector<8x128xbf16>
    %108 = arith.extf %107 : vector<8x128xbf16> to vector<8x128xf32>
    %109 = arith.addf %108, %105 : vector<8x128xf32>
    %110 = vector.broadcast %0 : vector<1x128xf32> to vector<8x128xf32>
    %111 = arith.mulf %109, %110 : vector<8x128xf32>
    %112 = math.tanh %111 : vector<8x128xf32>
    %113 = vector.broadcast %0 : vector<1x128xf32> to vector<8x128xf32>
    %114 = arith.mulf %112, %113 : vector<8x128xf32>
    %115 = vector.broadcast %1 : vector<1x128xf32> to vector<8x128xf32>
    %116 = arith.addf %114, %115 : vector<8x128xf32>
    %117 = vector.extract_strided_slice %116 {offsets = [0, 0], sizes = [8, 32], strides = [1, 1]} : vector<8x128xf32> to vector<8x32xf32>
    %118 = vector.extract_strided_slice %116 {offsets = [0, 32], sizes = [8, 32], strides = [1, 1]} : vector<8x128xf32> to vector<8x32xf32>
    %119 = vector.extract_strided_slice %116 {offsets = [0, 64], sizes = [8, 32], strides = [1, 1]} : vector<8x128xf32> to vector<8x32xf32>
    %120 = vector.extract_strided_slice %116 {offsets = [0, 96], sizes = [8, 32], strides = [1, 1]} : vector<8x128xf32> to vector<8x32xf32>
    %121 = arith.mulf %118, %52 : vector<8x32xf32>
    %122 = arith.mulf %117, %120 : vector<8x32xf32>
    %123 = arith.addf %121, %122 : vector<8x32xf32>
    %cst_35 = arith.constant dense<0.000000e+00> : vector<8xf32>
    %124 = vector.multi_reduction <add>, %123, %cst_35 [1] : vector<8x32xf32> to vector<8xf32>
    %125 = vector.shape_cast %124 : vector<8xf32> to vector<8x1xf32>
    %cst_36 = arith.constant 3.200000e+01 : f32
    %126 = vector.broadcast %cst_36 : f32 to vector<8x1xf32>
    %127 = arith.divf %125, %126 : vector<8x1xf32>
    %128 = arith.mulf %123, %123 : vector<8x32xf32>
    %cst_37 = arith.constant dense<0.000000e+00> : vector<8xf32>
    %129 = vector.multi_reduction <add>, %128, %cst_37 [1] : vector<8x32xf32> to vector<8xf32>
    %130 = vector.shape_cast %129 : vector<8xf32> to vector<8x1xf32>
    %cst_38 = arith.constant 3.200000e+01 : f32
    %131 = vector.broadcast %cst_38 : f32 to vector<8x1xf32>
    %132 = arith.divf %130, %131 : vector<8x1xf32>
    %133 = arith.mulf %127, %127 : vector<8x1xf32>
    %134 = arith.subf %132, %133 : vector<8x1xf32>
    %135 = vector.broadcast %127 : vector<8x1xf32> to vector<8x32xf32>
    %136 = arith.subf %123, %135 : vector<8x32xf32>
    %cst_39 = arith.constant 9.99999974E-6 : f32
    %137 = vector.broadcast %cst_39 : f32 to vector<8x1xf32>
    %138 = arith.addf %134, %137 : vector<8x1xf32>
    %139 = math.rsqrt %138 : vector<8x1xf32>
    %140 = vector.broadcast %139 : vector<8x1xf32> to vector<8x32xf32>
    %141 = arith.mulf %136, %140 : vector<8x32xf32>
    %142 = vector.broadcast %5 : vector<1x32xf32> to vector<8x32xf32>
    %143 = arith.mulf %141, %142 : vector<8x32xf32>
    %144 = vector.broadcast %6 : vector<1x32xf32> to vector<8x32xf32>
    %145 = arith.addf %143, %144 : vector<8x32xf32>
    %146 = math.tanh %145 : vector<8x32xf32>
    %147 = arith.mulf %119, %146 : vector<8x32xf32>
    %148 = arith.truncf %147 : vector<8x32xf32> to vector<8x32xbf16>
    %149 = arith.index_cast %81 : i32 to index
    %c0_40 = arith.constant 0 : index
    %150 = vector.load %arg21[%149, %c0_40] : memref<64x32xbf16, #tpu.memory_space<vmem>>, vector<8x32xbf16>
    tpu.vector_store %arg21[%149, %c0_40], %148 {strides = array<i32>} : memref<64x32xbf16, #tpu.memory_space<vmem>>, vector<8x32xbf16>,
    %c2_i32 = arith.constant 2 : i32
    %c8_i32_41 = arith.constant 8 : i32
    %151 = arith.muli %c2_i32, %c8_i32_41 : i32
    %152 = tpu.assume_multiple %151, 8 : i32
    %153 = arith.truncf %147 : vector<8x32xf32> to vector<8x32xbf16>
    %cst_42 = arith.constant dense<0.000000e+00> : vector<8x128xf32>
    %154 = tpu.matmul %153, %2, %cst_42 {dimension_numbers = #tpu.dot_dimension_numbers<[1], [0], [0], [1], [0, 0, 1, 1], [], []>} : vector<8x32xbf16>, vector<32x128xbf16>, vector<8x128xf32> -> vector<8x128xf32>
    %155 = vector.broadcast %3 : vector<1x128xf32> to vector<8x128xf32>
    %156 = arith.addf %154, %155 : vector<8x128xf32>
    %cst_43 = arith.constant dense<0.000000e+00> : vector<8xf32>
    %157 = vector.multi_reduction <add>, %156, %cst_43 [1] : vector<8x128xf32> to vector<8xf32>
    %158 = vector.shape_cast %157 : vector<8xf32> to vector<8x1xf32>
    %cst_44 = arith.constant 1.280000e+02 : f32
    %159 = vector.broadcast %cst_44 : f32 to vector<8x1xf32>
    %160 = arith.divf %158, %159 : vector<8x1xf32>
    %161 = arith.mulf %156, %156 : vector<8x128xf32>
    %cst_45 = arith.constant dense<0.000000e+00> : vector<8xf32>
    %162 = vector.multi_reduction <add>, %161, %cst_45 [1] : vector<8x128xf32> to vector<8xf32>
    %163 = vector.shape_cast %162 : vector<8xf32> to vector<8x1xf32>
    %cst_46 = arith.constant 1.280000e+02 : f32
    %164 = vector.broadcast %cst_46 : f32 to vector<8x1xf32>
    %165 = arith.divf %163, %164 : vector<8x1xf32>
    %166 = arith.mulf %160, %160 : vector<8x1xf32>
    %167 = arith.subf %165, %166 : vector<8x1xf32>
    %168 = vector.broadcast %160 : vector<8x1xf32> to vector<8x128xf32>
    %169 = arith.subf %156, %168 : vector<8x128xf32>
    %cst_47 = arith.constant 9.99999974E-6 : f32
    %170 = vector.broadcast %cst_47 : f32 to vector<8x1xf32>
    %171 = arith.addf %167, %170 : vector<8x1xf32>
    %172 = math.rsqrt %171 : vector<8x1xf32>
    %173 = vector.broadcast %172 : vector<8x1xf32> to vector<8x128xf32>
    %174 = arith.mulf %169, %173 : vector<8x128xf32>
    %175 = vector.broadcast %4 : vector<1x128xf32> to vector<8x128xf32>
    %176 = arith.mulf %174, %175 : vector<8x128xf32>
    %177 = arith.index_cast %152 : i32 to index
    %c0_48 = arith.constant 0 : index
    %178 = vector.load %arg1[%177, %c0_48] : memref<64x128xbf16, #tpu.memory_space<vmem>>, vector<8x128xbf16>
    %179 = arith.extf %178 : vector<8x128xbf16> to vector<8x128xf32>
    %180 = arith.addf %179, %176 : vector<8x128xf32>
    %181 = vector.broadcast %0 : vector<1x128xf32> to vector<8x128xf32>
    %182 = arith.mulf %180, %181 : vector<8x128xf32>
    %183 = math.tanh %182 : vector<8x128xf32>
    %184 = vector.broadcast %0 : vector<1x128xf32> to vector<8x128xf32>
    %185 = arith.mulf %183, %184 : vector<8x128xf32>
    %186 = vector.broadcast %1 : vector<1x128xf32> to vector<8x128xf32>
    %187 = arith.addf %185, %186 : vector<8x128xf32>
    %188 = vector.extract_strided_slice %187 {offsets = [0, 0], sizes = [8, 32], strides = [1, 1]} : vector<8x128xf32> to vector<8x32xf32>
    %189 = vector.extract_strided_slice %187 {offsets = [0, 32], sizes = [8, 32], strides = [1, 1]} : vector<8x128xf32> to vector<8x32xf32>
    %190 = vector.extract_strided_slice %187 {offsets = [0, 64], sizes = [8, 32], strides = [1, 1]} : vector<8x128xf32> to vector<8x32xf32>
    %191 = vector.extract_strided_slice %187 {offsets = [0, 96], sizes = [8, 32], strides = [1, 1]} : vector<8x128xf32> to vector<8x32xf32>
    %192 = arith.mulf %189, %123 : vector<8x32xf32>
    %193 = arith.mulf %188, %191 : vector<8x32xf32>
    %194 = arith.addf %192, %193 : vector<8x32xf32>
    %cst_49 = arith.constant dense<0.000000e+00> : vector<8xf32>
    %195 = vector.multi_reduction <add>, %194, %cst_49 [1] : vector<8x32xf32> to vector<8xf32>
    %196 = vector.shape_cast %195 : vector<8xf32> to vector<8x1xf32>
    %cst_50 = arith.constant 3.200000e+01 : f32
    %197 = vector.broadcast %cst_50 : f32 to vector<8x1xf32>
    %198 = arith.divf %196, %197 : vector<8x1xf32>
    %199 = arith.mulf %194, %194 : vector<8x32xf32>
    %cst_51 = arith.constant dense<0.000000e+00> : vector<8xf32>
    %200 = vector.multi_reduction <add>, %199, %cst_51 [1] : vector<8x32xf32> to vector<8xf32>
    %201 = vector.shape_cast %200 : vector<8xf32> to vector<8x1xf32>
    %cst_52 = arith.constant 3.200000e+01 : f32
    %202 = vector.broadcast %cst_52 : f32 to vector<8x1xf32>
    %203 = arith.divf %201, %202 : vector<8x1xf32>
    %204 = arith.mulf %198, %198 : vector<8x1xf32>
    %205 = arith.subf %203, %204 : vector<8x1xf32>
    %206 = vector.broadcast %198 : vector<8x1xf32> to vector<8x32xf32>
    %207 = arith.subf %194, %206 : vector<8x32xf32>
    %cst_53 = arith.constant 9.99999974E-6 : f32
    %208 = vector.broadcast %cst_53 : f32 to vector<8x1xf32>
    %209 = arith.addf %205, %208 : vector<8x1xf32>
    %210 = math.rsqrt %209 : vector<8x1xf32>
    %211 = vector.broadcast %210 : vector<8x1xf32> to vector<8x32xf32>
    %212 = arith.mulf %207, %211 : vector<8x32xf32>
    %213 = vector.broadcast %5 : vector<1x32xf32> to vector<8x32xf32>
    %214 = arith.mulf %212, %213 : vector<8x32xf32>
    %215 = vector.broadcast %6 : vector<1x32xf32> to vector<8x32xf32>
    %216 = arith.addf %214, %215 : vector<8x32xf32>
    %217 = math.tanh %216 : vector<8x32xf32>
    %218 = arith.mulf %190, %217 : vector<8x32xf32>
    %219 = arith.truncf %218 : vector<8x32xf32> to vector<8x32xbf16>
    %220 = arith.index_cast %152 : i32 to index
    %c0_54 = arith.constant 0 : index
    %221 = vector.load %arg21[%220, %c0_54] : memref<64x32xbf16, #tpu.memory_space<vmem>>, vector<8x32xbf16>
    tpu.vector_store %arg21[%220, %c0_54], %219 {strides = array<i32>} : memref<64x32xbf16, #tpu.memory_space<vmem>>, vector<8x32xbf16>,
    %c3_i32 = arith.constant 3 : i32
    %c8_i32_55 = arith.constant 8 : i32
    %222 = arith.muli %c3_i32, %c8_i32_55 : i32
    %223 = tpu.assume_multiple %222, 8 : i32
    %224 = arith.truncf %218 : vector<8x32xf32> to vector<8x32xbf16>
    %cst_56 = arith.constant dense<0.000000e+00> : vector<8x128xf32>
    %225 = tpu.matmul %224, %2, %cst_56 {dimension_numbers = #tpu.dot_dimension_numbers<[1], [0], [0], [1], [0, 0, 1, 1], [], []>} : vector<8x32xbf16>, vector<32x128xbf16>, vector<8x128xf32> -> vector<8x128xf32>
    %226 = vector.broadcast %3 : vector<1x128xf32> to vector<8x128xf32>
    %227 = arith.addf %225, %226 : vector<8x128xf32>
    %cst_57 = arith.constant dense<0.000000e+00> : vector<8xf32>
    %228 = vector.multi_reduction <add>, %227, %cst_57 [1] : vector<8x128xf32> to vector<8xf32>
    %229 = vector.shape_cast %228 : vector<8xf32> to vector<8x1xf32>
    %cst_58 = arith.constant 1.280000e+02 : f32
    %230 = vector.broadcast %cst_58 : f32 to vector<8x1xf32>
    %231 = arith.divf %229, %230 : vector<8x1xf32>
    %232 = arith.mulf %227, %227 : vector<8x128xf32>
    %cst_59 = arith.constant dense<0.000000e+00> : vector<8xf32>
    %233 = vector.multi_reduction <add>, %232, %cst_59 [1] : vector<8x128xf32> to vector<8xf32>
    %234 = vector.shape_cast %233 : vector<8xf32> to vector<8x1xf32>
    %cst_60 = arith.constant 1.280000e+02 : f32
    %235 = vector.broadcast %cst_60 : f32 to vector<8x1xf32>
    %236 = arith.divf %234, %235 : vector<8x1xf32>
    %237 = arith.mulf %231, %231 : vector<8x1xf32>
    %238 = arith.subf %236, %237 : vector<8x1xf32>
    %239 = vector.broadcast %231 : vector<8x1xf32> to vector<8x128xf32>
    %240 = arith.subf %227, %239 : vector<8x128xf32>
    %cst_61 = arith.constant 9.99999974E-6 : f32
    %241 = vector.broadcast %cst_61 : f32 to vector<8x1xf32>
    %242 = arith.addf %238, %241 : vector<8x1xf32>
    %243 = math.rsqrt %242 : vector<8x1xf32>
    %244 = vector.broadcast %243 : vector<8x1xf32> to vector<8x128xf32>
    %245 = arith.mulf %240, %244 : vector<8x128xf32>
    %246 = vector.broadcast %4 : vector<1x128xf32> to vector<8x128xf32>
    %247 = arith.mulf %245, %246 : vector<8x128xf32>
    %248 = arith.index_cast %223 : i32 to index
    %c0_62 = arith.constant 0 : index
    %249 = vector.load %arg1[%248, %c0_62] : memref<64x128xbf16, #tpu.memory_space<vmem>>, vector<8x128xbf16>
    %250 = arith.extf %249 : vector<8x128xbf16> to vector<8x128xf32>
    %251 = arith.addf %250, %247 : vector<8x128xf32>
    %252 = vector.broadcast %0 : vector<1x128xf32> to vector<8x128xf32>
    %253 = arith.mulf %251, %252 : vector<8x128xf32>
    %254 = math.tanh %253 : vector<8x128xf32>
    %255 = vector.broadcast %0 : vector<1x128xf32> to vector<8x128xf32>
    %256 = arith.mulf %254, %255 : vector<8x128xf32>
    %257 = vector.broadcast %1 : vector<1x128xf32> to vector<8x128xf32>
    %258 = arith.addf %256, %257 : vector<8x128xf32>
    %259 = vector.extract_strided_slice %258 {offsets = [0, 0], sizes = [8, 32], strides = [1, 1]} : vector<8x128xf32> to vector<8x32xf32>
    %260 = vector.extract_strided_slice %258 {offsets = [0, 32], sizes = [8, 32], strides = [1, 1]} : vector<8x128xf32> to vector<8x32xf32>
    %261 = vector.extract_strided_slice %258 {offsets = [0, 64], sizes = [8, 32], strides = [1, 1]} : vector<8x128xf32> to vector<8x32xf32>
    %262 = vector.extract_strided_slice %258 {offsets = [0, 96], sizes = [8, 32], strides = [1, 1]} : vector<8x128xf32> to vector<8x32xf32>
    %263 = arith.mulf %260, %194 : vector<8x32xf32>
    %264 = arith.mulf %259, %262 : vector<8x32xf32>
    %265 = arith.addf %263, %264 : vector<8x32xf32>
    %cst_63 = arith.constant dense<0.000000e+00> : vector<8xf32>
    %266 = vector.multi_reduction <add>, %265, %cst_63 [1] : vector<8x32xf32> to vector<8xf32>
    %267 = vector.shape_cast %266 : vector<8xf32> to vector<8x1xf32>
    %cst_64 = arith.constant 3.200000e+01 : f32
    %268 = vector.broadcast %cst_64 : f32 to vector<8x1xf32>
    %269 = arith.divf %267, %268 : vector<8x1xf32>
    %270 = arith.mulf %265, %265 : vector<8x32xf32>
    %cst_65 = arith.constant dense<0.000000e+00> : vector<8xf32>
    %271 = vector.multi_reduction <add>, %270, %cst_65 [1] : vector<8x32xf32> to vector<8xf32>
    %272 = vector.shape_cast %271 : vector<8xf32> to vector<8x1xf32>
    %cst_66 = arith.constant 3.200000e+01 : f32
    %273 = vector.broadcast %cst_66 : f32 to vector<8x1xf32>
    %274 = arith.divf %272, %273 : vector<8x1xf32>
    %275 = arith.mulf %269, %269 : vector<8x1xf32>
    %276 = arith.subf %274, %275 : vector<8x1xf32>
    %277 = vector.broadcast %269 : vector<8x1xf32> to vector<8x32xf32>
    %278 = arith.subf %265, %277 : vector<8x32xf32>
    %cst_67 = arith.constant 9.99999974E-6 : f32
    %279 = vector.broadcast %cst_67 : f32 to vector<8x1xf32>
    %280 = arith.addf %276, %279 : vector<8x1xf32>
    %281 = math.rsqrt %280 : vector<8x1xf32>
    %282 = vector.broadcast %281 : vector<8x1xf32> to vector<8x32xf32>
    %283 = arith.mulf %278, %282 : vector<8x32xf32>
    %284 = vector.broadcast %5 : vector<1x32xf32> to vector<8x32xf32>
    %285 = arith.mulf %283, %284 : vector<8x32xf32>
    %286 = vector.broadcast %6 : vector<1x32xf32> to vector<8x32xf32>
    %287 = arith.addf %285, %286 : vector<8x32xf32>
    %288 = math.tanh %287 : vector<8x32xf32>
    %289 = arith.mulf %261, %288 : vector<8x32xf32>
    %290 = arith.truncf %289 : vector<8x32xf32> to vector<8x32xbf16>
    %291 = arith.index_cast %223 : i32 to index
    %c0_68 = arith.constant 0 : index
    %292 = vector.load %arg21[%291, %c0_68] : memref<64x32xbf16, #tpu.memory_space<vmem>>, vector<8x32xbf16>
    tpu.vector_store %arg21[%291, %c0_68], %290 {strides = array<i32>} : memref<64x32xbf16, #tpu.memory_space<vmem>>, vector<8x32xbf16>,
    %c4_i32 = arith.constant 4 : i32
    %c8_i32_69 = arith.constant 8 : i32
    %293 = arith.muli %c4_i32, %c8_i32_69 : i32
    %294 = tpu.assume_multiple %293, 8 : i32
    %295 = arith.truncf %289 : vector<8x32xf32> to vector<8x32xbf16>
    %cst_70 = arith.constant dense<0.000000e+00> : vector<8x128xf32>
    %296 = tpu.matmul %295, %2, %cst_70 {dimension_numbers = #tpu.dot_dimension_numbers<[1], [0], [0], [1], [0, 0, 1, 1], [], []>} : vector<8x32xbf16>, vector<32x128xbf16>, vector<8x128xf32> -> vector<8x128xf32>
    %297 = vector.broadcast %3 : vector<1x128xf32> to vector<8x128xf32>
    %298 = arith.addf %296, %297 : vector<8x128xf32>
    %cst_71 = arith.constant dense<0.000000e+00> : vector<8xf32>
    %299 = vector.multi_reduction <add>, %298, %cst_71 [1] : vector<8x128xf32> to vector<8xf32>
    %300 = vector.shape_cast %299 : vector<8xf32> to vector<8x1xf32>
    %cst_72 = arith.constant 1.280000e+02 : f32
    %301 = vector.broadcast %cst_72 : f32 to vector<8x1xf32>
    %302 = arith.divf %300, %301 : vector<8x1xf32>
    %303 = arith.mulf %298, %298 : vector<8x128xf32>
    %cst_73 = arith.constant dense<0.000000e+00> : vector<8xf32>
    %304 = vector.multi_reduction <add>, %303, %cst_73 [1] : vector<8x128xf32> to vector<8xf32>
    %305 = vector.shape_cast %304 : vector<8xf32> to vector<8x1xf32>
    %cst_74 = arith.constant 1.280000e+02 : f32
    %306 = vector.broadcast %cst_74 : f32 to vector<8x1xf32>
    %307 = arith.divf %305, %306 : vector<8x1xf32>
    %308 = arith.mulf %302, %302 : vector<8x1xf32>
    %309 = arith.subf %307, %308 : vector<8x1xf32>
    %310 = vector.broadcast %302 : vector<8x1xf32> to vector<8x128xf32>
    %311 = arith.subf %298, %310 : vector<8x128xf32>
    %cst_75 = arith.constant 9.99999974E-6 : f32
    %312 = vector.broadcast %cst_75 : f32 to vector<8x1xf32>
    %313 = arith.addf %309, %312 : vector<8x1xf32>
    %314 = math.rsqrt %313 : vector<8x1xf32>
    %315 = vector.broadcast %314 : vector<8x1xf32> to vector<8x128xf32>
    %316 = arith.mulf %311, %315 : vector<8x128xf32>
    %317 = vector.broadcast %4 : vector<1x128xf32> to vector<8x128xf32>
    %318 = arith.mulf %316, %317 : vector<8x128xf32>
    %319 = arith.index_cast %294 : i32 to index
    %c0_76 = arith.constant 0 : index
    %320 = vector.load %arg1[%319, %c0_76] : memref<64x128xbf16, #tpu.memory_space<vmem>>, vector<8x128xbf16>
    %321 = arith.extf %320 : vector<8x128xbf16> to vector<8x128xf32>
    %322 = arith.addf %321, %318 : vector<8x128xf32>
    %323 = vector.broadcast %0 : vector<1x128xf32> to vector<8x128xf32>
    %324 = arith.mulf %322, %323 : vector<8x128xf32>
    %325 = math.tanh %324 : vector<8x128xf32>
    %326 = vector.broadcast %0 : vector<1x128xf32> to vector<8x128xf32>
    %327 = arith.mulf %325, %326 : vector<8x128xf32>
    %328 = vector.broadcast %1 : vector<1x128xf32> to vector<8x128xf32>
    %329 = arith.addf %327, %328 : vector<8x128xf32>
    %330 = vector.extract_strided_slice %329 {offsets = [0, 0], sizes = [8, 32], strides = [1, 1]} : vector<8x128xf32> to vector<8x32xf32>
    %331 = vector.extract_strided_slice %329 {offsets = [0, 32], sizes = [8, 32], strides = [1, 1]} : vector<8x128xf32> to vector<8x32xf32>
    %332 = vector.extract_strided_slice %329 {offsets = [0, 64], sizes = [8, 32], strides = [1, 1]} : vector<8x128xf32> to vector<8x32xf32>
    %333 = vector.extract_strided_slice %329 {offsets = [0, 96], sizes = [8, 32], strides = [1, 1]} : vector<8x128xf32> to vector<8x32xf32>
    %334 = arith.mulf %331, %265 : vector<8x32xf32>
    %335 = arith.mulf %330, %333 : vector<8x32xf32>
    %336 = arith.addf %334, %335 : vector<8x32xf32>
    %cst_77 = arith.constant dense<0.000000e+00> : vector<8xf32>
    %337 = vector.multi_reduction <add>, %336, %cst_77 [1] : vector<8x32xf32> to vector<8xf32>
    %338 = vector.shape_cast %337 : vector<8xf32> to vector<8x1xf32>
    %cst_78 = arith.constant 3.200000e+01 : f32
    %339 = vector.broadcast %cst_78 : f32 to vector<8x1xf32>
    %340 = arith.divf %338, %339 : vector<8x1xf32>
    %341 = arith.mulf %336, %336 : vector<8x32xf32>
    %cst_79 = arith.constant dense<0.000000e+00> : vector<8xf32>
    %342 = vector.multi_reduction <add>, %341, %cst_79 [1] : vector<8x32xf32> to vector<8xf32>
    %343 = vector.shape_cast %342 : vector<8xf32> to vector<8x1xf32>
    %cst_80 = arith.constant 3.200000e+01 : f32
    %344 = vector.broadcast %cst_80 : f32 to vector<8x1xf32>
    %345 = arith.divf %343, %344 : vector<8x1xf32>
    %346 = arith.mulf %340, %340 : vector<8x1xf32>
    %347 = arith.subf %345, %346 : vector<8x1xf32>
    %348 = vector.broadcast %340 : vector<8x1xf32> to vector<8x32xf32>
    %349 = arith.subf %336, %348 : vector<8x32xf32>
    %cst_81 = arith.constant 9.99999974E-6 : f32
    %350 = vector.broadcast %cst_81 : f32 to vector<8x1xf32>
    %351 = arith.addf %347, %350 : vector<8x1xf32>
    %352 = math.rsqrt %351 : vector<8x1xf32>
    %353 = vector.broadcast %352 : vector<8x1xf32> to vector<8x32xf32>
    %354 = arith.mulf %349, %353 : vector<8x32xf32>
    %355 = vector.broadcast %5 : vector<1x32xf32> to vector<8x32xf32>
    %356 = arith.mulf %354, %355 : vector<8x32xf32>
    %357 = vector.broadcast %6 : vector<1x32xf32> to vector<8x32xf32>
    %358 = arith.addf %356, %357 : vector<8x32xf32>
    %359 = math.tanh %358 : vector<8x32xf32>
    %360 = arith.mulf %332, %359 : vector<8x32xf32>
    %361 = arith.truncf %360 : vector<8x32xf32> to vector<8x32xbf16>
    %362 = arith.index_cast %294 : i32 to index
    %c0_82 = arith.constant 0 : index
    %363 = vector.load %arg21[%362, %c0_82] : memref<64x32xbf16, #tpu.memory_space<vmem>>, vector<8x32xbf16>
    tpu.vector_store %arg21[%362, %c0_82], %361 {strides = array<i32>} : memref<64x32xbf16, #tpu.memory_space<vmem>>, vector<8x32xbf16>,
    %c5_i32 = arith.constant 5 : i32
    %c8_i32_83 = arith.constant 8 : i32
    %364 = arith.muli %c5_i32, %c8_i32_83 : i32
    %365 = tpu.assume_multiple %364, 8 : i32
    %366 = arith.truncf %360 : vector<8x32xf32> to vector<8x32xbf16>
    %cst_84 = arith.constant dense<0.000000e+00> : vector<8x128xf32>
    %367 = tpu.matmul %366, %2, %cst_84 {dimension_numbers = #tpu.dot_dimension_numbers<[1], [0], [0], [1], [0, 0, 1, 1], [], []>} : vector<8x32xbf16>, vector<32x128xbf16>, vector<8x128xf32> -> vector<8x128xf32>
    %368 = vector.broadcast %3 : vector<1x128xf32> to vector<8x128xf32>
    %369 = arith.addf %367, %368 : vector<8x128xf32>
    %cst_85 = arith.constant dense<0.000000e+00> : vector<8xf32>
    %370 = vector.multi_reduction <add>, %369, %cst_85 [1] : vector<8x128xf32> to vector<8xf32>
    %371 = vector.shape_cast %370 : vector<8xf32> to vector<8x1xf32>
    %cst_86 = arith.constant 1.280000e+02 : f32
    %372 = vector.broadcast %cst_86 : f32 to vector<8x1xf32>
    %373 = arith.divf %371, %372 : vector<8x1xf32>
    %374 = arith.mulf %369, %369 : vector<8x128xf32>
    %cst_87 = arith.constant dense<0.000000e+00> : vector<8xf32>
    %375 = vector.multi_reduction <add>, %374, %cst_87 [1] : vector<8x128xf32> to vector<8xf32>
    %376 = vector.shape_cast %375 : vector<8xf32> to vector<8x1xf32>
    %cst_88 = arith.constant 1.280000e+02 : f32
    %377 = vector.broadcast %cst_88 : f32 to vector<8x1xf32>
    %378 = arith.divf %376, %377 : vector<8x1xf32>
    %379 = arith.mulf %373, %373 : vector<8x1xf32>
    %380 = arith.subf %378, %379 : vector<8x1xf32>
    %381 = vector.broadcast %373 : vector<8x1xf32> to vector<8x128xf32>
    %382 = arith.subf %369, %381 : vector<8x128xf32>
    %cst_89 = arith.constant 9.99999974E-6 : f32
    %383 = vector.broadcast %cst_89 : f32 to vector<8x1xf32>
    %384 = arith.addf %380, %383 : vector<8x1xf32>
    %385 = math.rsqrt %384 : vector<8x1xf32>
    %386 = vector.broadcast %385 : vector<8x1xf32> to vector<8x128xf32>
    %387 = arith.mulf %382, %386 : vector<8x128xf32>
    %388 = vector.broadcast %4 : vector<1x128xf32> to vector<8x128xf32>
    %389 = arith.mulf %387, %388 : vector<8x128xf32>
    %390 = arith.index_cast %365 : i32 to index
    %c0_90 = arith.constant 0 : index
    %391 = vector.load %arg1[%390, %c0_90] : memref<64x128xbf16, #tpu.memory_space<vmem>>, vector<8x128xbf16>
    %392 = arith.extf %391 : vector<8x128xbf16> to vector<8x128xf32>
    %393 = arith.addf %392, %389 : vector<8x128xf32>
    %394 = vector.broadcast %0 : vector<1x128xf32> to vector<8x128xf32>
    %395 = arith.mulf %393, %394 : vector<8x128xf32>
    %396 = math.tanh %395 : vector<8x128xf32>
    %397 = vector.broadcast %0 : vector<1x128xf32> to vector<8x128xf32>
    %398 = arith.mulf %396, %397 : vector<8x128xf32>
    %399 = vector.broadcast %1 : vector<1x128xf32> to vector<8x128xf32>
    %400 = arith.addf %398, %399 : vector<8x128xf32>
    %401 = vector.extract_strided_slice %400 {offsets = [0, 0], sizes = [8, 32], strides = [1, 1]} : vector<8x128xf32> to vector<8x32xf32>
    %402 = vector.extract_strided_slice %400 {offsets = [0, 32], sizes = [8, 32], strides = [1, 1]} : vector<8x128xf32> to vector<8x32xf32>
    %403 = vector.extract_strided_slice %400 {offsets = [0, 64], sizes = [8, 32], strides = [1, 1]} : vector<8x128xf32> to vector<8x32xf32>
    %404 = vector.extract_strided_slice %400 {offsets = [0, 96], sizes = [8, 32], strides = [1, 1]} : vector<8x128xf32> to vector<8x32xf32>
    %405 = arith.mulf %402, %336 : vector<8x32xf32>
    %406 = arith.mulf %401, %404 : vector<8x32xf32>
    %407 = arith.addf %405, %406 : vector<8x32xf32>
    %cst_91 = arith.constant dense<0.000000e+00> : vector<8xf32>
    %408 = vector.multi_reduction <add>, %407, %cst_91 [1] : vector<8x32xf32> to vector<8xf32>
    %409 = vector.shape_cast %408 : vector<8xf32> to vector<8x1xf32>
    %cst_92 = arith.constant 3.200000e+01 : f32
    %410 = vector.broadcast %cst_92 : f32 to vector<8x1xf32>
    %411 = arith.divf %409, %410 : vector<8x1xf32>
    %412 = arith.mulf %407, %407 : vector<8x32xf32>
    %cst_93 = arith.constant dense<0.000000e+00> : vector<8xf32>
    %413 = vector.multi_reduction <add>, %412, %cst_93 [1] : vector<8x32xf32> to vector<8xf32>
    %414 = vector.shape_cast %413 : vector<8xf32> to vector<8x1xf32>
    %cst_94 = arith.constant 3.200000e+01 : f32
    %415 = vector.broadcast %cst_94 : f32 to vector<8x1xf32>
    %416 = arith.divf %414, %415 : vector<8x1xf32>
    %417 = arith.mulf %411, %411 : vector<8x1xf32>
    %418 = arith.subf %416, %417 : vector<8x1xf32>
    %419 = vector.broadcast %411 : vector<8x1xf32> to vector<8x32xf32>
    %420 = arith.subf %407, %419 : vector<8x32xf32>
    %cst_95 = arith.constant 9.99999974E-6 : f32
    %421 = vector.broadcast %cst_95 : f32 to vector<8x1xf32>
    %422 = arith.addf %418, %421 : vector<8x1xf32>
    %423 = math.rsqrt %422 : vector<8x1xf32>
    %424 = vector.broadcast %423 : vector<8x1xf32> to vector<8x32xf32>
    %425 = arith.mulf %420, %424 : vector<8x32xf32>
    %426 = vector.broadcast %5 : vector<1x32xf32> to vector<8x32xf32>
    %427 = arith.mulf %425, %426 : vector<8x32xf32>
    %428 = vector.broadcast %6 : vector<1x32xf32> to vector<8x32xf32>
    %429 = arith.addf %427, %428 : vector<8x32xf32>
    %430 = math.tanh %429 : vector<8x32xf32>
    %431 = arith.mulf %403, %430 : vector<8x32xf32>
    %432 = arith.truncf %431 : vector<8x32xf32> to vector<8x32xbf16>
    %433 = arith.index_cast %365 : i32 to index
    %c0_96 = arith.constant 0 : index
    %434 = vector.load %arg21[%433, %c0_96] : memref<64x32xbf16, #tpu.memory_space<vmem>>, vector<8x32xbf16>
    tpu.vector_store %arg21[%433, %c0_96], %432 {strides = array<i32>} : memref<64x32xbf16, #tpu.memory_space<vmem>>, vector<8x32xbf16>,
    %c6_i32 = arith.constant 6 : i32
    %c8_i32_97 = arith.constant 8 : i32
    %435 = arith.muli %c6_i32, %c8_i32_97 : i32
    %436 = tpu.assume_multiple %435, 8 : i32
    %437 = arith.truncf %431 : vector<8x32xf32> to vector<8x32xbf16>
    %cst_98 = arith.constant dense<0.000000e+00> : vector<8x128xf32>
    %438 = tpu.matmul %437, %2, %cst_98 {dimension_numbers = #tpu.dot_dimension_numbers<[1], [0], [0], [1], [0, 0, 1, 1], [], []>} : vector<8x32xbf16>, vector<32x128xbf16>, vector<8x128xf32> -> vector<8x128xf32>
    %439 = vector.broadcast %3 : vector<1x128xf32> to vector<8x128xf32>
    %440 = arith.addf %438, %439 : vector<8x128xf32>
    %cst_99 = arith.constant dense<0.000000e+00> : vector<8xf32>
    %441 = vector.multi_reduction <add>, %440, %cst_99 [1] : vector<8x128xf32> to vector<8xf32>
    %442 = vector.shape_cast %441 : vector<8xf32> to vector<8x1xf32>
    %cst_100 = arith.constant 1.280000e+02 : f32
    %443 = vector.broadcast %cst_100 : f32 to vector<8x1xf32>
    %444 = arith.divf %442, %443 : vector<8x1xf32>
    %445 = arith.mulf %440, %440 : vector<8x128xf32>
    %cst_101 = arith.constant dense<0.000000e+00> : vector<8xf32>
    %446 = vector.multi_reduction <add>, %445, %cst_101 [1] : vector<8x128xf32> to vector<8xf32>
    %447 = vector.shape_cast %446 : vector<8xf32> to vector<8x1xf32>
    %cst_102 = arith.constant 1.280000e+02 : f32
    %448 = vector.broadcast %cst_102 : f32 to vector<8x1xf32>
    %449 = arith.divf %447, %448 : vector<8x1xf32>
    %450 = arith.mulf %444, %444 : vector<8x1xf32>
    %451 = arith.subf %449, %450 : vector<8x1xf32>
    %452 = vector.broadcast %444 : vector<8x1xf32> to vector<8x128xf32>
    %453 = arith.subf %440, %452 : vector<8x128xf32>
    %cst_103 = arith.constant 9.99999974E-6 : f32
    %454 = vector.broadcast %cst_103 : f32 to vector<8x1xf32>
    %455 = arith.addf %451, %454 : vector<8x1xf32>
    %456 = math.rsqrt %455 : vector<8x1xf32>
    %457 = vector.broadcast %456 : vector<8x1xf32> to vector<8x128xf32>
    %458 = arith.mulf %453, %457 : vector<8x128xf32>
    %459 = vector.broadcast %4 : vector<1x128xf32> to vector<8x128xf32>
    %460 = arith.mulf %458, %459 : vector<8x128xf32>
    %461 = arith.index_cast %436 : i32 to index
    %c0_104 = arith.constant 0 : index
    %462 = vector.load %arg1[%461, %c0_104] : memref<64x128xbf16, #tpu.memory_space<vmem>>, vector<8x128xbf16>
    %463 = arith.extf %462 : vector<8x128xbf16> to vector<8x128xf32>
    %464 = arith.addf %463, %460 : vector<8x128xf32>
    %465 = vector.broadcast %0 : vector<1x128xf32> to vector<8x128xf32>
    %466 = arith.mulf %464, %465 : vector<8x128xf32>
    %467 = math.tanh %466 : vector<8x128xf32>
    %468 = vector.broadcast %0 : vector<1x128xf32> to vector<8x128xf32>
    %469 = arith.mulf %467, %468 : vector<8x128xf32>
    %470 = vector.broadcast %1 : vector<1x128xf32> to vector<8x128xf32>
    %471 = arith.addf %469, %470 : vector<8x128xf32>
    %472 = vector.extract_strided_slice %471 {offsets = [0, 0], sizes = [8, 32], strides = [1, 1]} : vector<8x128xf32> to vector<8x32xf32>
    %473 = vector.extract_strided_slice %471 {offsets = [0, 32], sizes = [8, 32], strides = [1, 1]} : vector<8x128xf32> to vector<8x32xf32>
    %474 = vector.extract_strided_slice %471 {offsets = [0, 64], sizes = [8, 32], strides = [1, 1]} : vector<8x128xf32> to vector<8x32xf32>
    %475 = vector.extract_strided_slice %471 {offsets = [0, 96], sizes = [8, 32], strides = [1, 1]} : vector<8x128xf32> to vector<8x32xf32>
    %476 = arith.mulf %473, %407 : vector<8x32xf32>
    %477 = arith.mulf %472, %475 : vector<8x32xf32>
    %478 = arith.addf %476, %477 : vector<8x32xf32>
    %cst_105 = arith.constant dense<0.000000e+00> : vector<8xf32>
    %479 = vector.multi_reduction <add>, %478, %cst_105 [1] : vector<8x32xf32> to vector<8xf32>
    %480 = vector.shape_cast %479 : vector<8xf32> to vector<8x1xf32>
    %cst_106 = arith.constant 3.200000e+01 : f32
    %481 = vector.broadcast %cst_106 : f32 to vector<8x1xf32>
    %482 = arith.divf %480, %481 : vector<8x1xf32>
    %483 = arith.mulf %478, %478 : vector<8x32xf32>
    %cst_107 = arith.constant dense<0.000000e+00> : vector<8xf32>
    %484 = vector.multi_reduction <add>, %483, %cst_107 [1] : vector<8x32xf32> to vector<8xf32>
    %485 = vector.shape_cast %484 : vector<8xf32> to vector<8x1xf32>
    %cst_108 = arith.constant 3.200000e+01 : f32
    %486 = vector.broadcast %cst_108 : f32 to vector<8x1xf32>
    %487 = arith.divf %485, %486 : vector<8x1xf32>
    %488 = arith.mulf %482, %482 : vector<8x1xf32>
    %489 = arith.subf %487, %488 : vector<8x1xf32>
    %490 = vector.broadcast %482 : vector<8x1xf32> to vector<8x32xf32>
    %491 = arith.subf %478, %490 : vector<8x32xf32>
    %cst_109 = arith.constant 9.99999974E-6 : f32
    %492 = vector.broadcast %cst_109 : f32 to vector<8x1xf32>
    %493 = arith.addf %489, %492 : vector<8x1xf32>
    %494 = math.rsqrt %493 : vector<8x1xf32>
    %495 = vector.broadcast %494 : vector<8x1xf32> to vector<8x32xf32>
    %496 = arith.mulf %491, %495 : vector<8x32xf32>
    %497 = vector.broadcast %5 : vector<1x32xf32> to vector<8x32xf32>
    %498 = arith.mulf %496, %497 : vector<8x32xf32>
    %499 = vector.broadcast %6 : vector<1x32xf32> to vector<8x32xf32>
    %500 = arith.addf %498, %499 : vector<8x32xf32>
    %501 = math.tanh %500 : vector<8x32xf32>
    %502 = arith.mulf %474, %501 : vector<8x32xf32>
    %503 = arith.truncf %502 : vector<8x32xf32> to vector<8x32xbf16>
    %504 = arith.index_cast %436 : i32 to index
    %c0_110 = arith.constant 0 : index
    %505 = vector.load %arg21[%504, %c0_110] : memref<64x32xbf16, #tpu.memory_space<vmem>>, vector<8x32xbf16>
    tpu.vector_store %arg21[%504, %c0_110], %503 {strides = array<i32>} : memref<64x32xbf16, #tpu.memory_space<vmem>>, vector<8x32xbf16>,
    %c7_i32 = arith.constant 7 : i32
    %c8_i32_111 = arith.constant 8 : i32
    %506 = arith.muli %c7_i32, %c8_i32_111 : i32
    %507 = tpu.assume_multiple %506, 8 : i32
    %508 = arith.truncf %502 : vector<8x32xf32> to vector<8x32xbf16>
    %cst_112 = arith.constant dense<0.000000e+00> : vector<8x128xf32>
    %509 = tpu.matmul %508, %2, %cst_112 {dimension_numbers = #tpu.dot_dimension_numbers<[1], [0], [0], [1], [0, 0, 1, 1], [], []>} : vector<8x32xbf16>, vector<32x128xbf16>, vector<8x128xf32> -> vector<8x128xf32>
    %510 = vector.broadcast %3 : vector<1x128xf32> to vector<8x128xf32>
    %511 = arith.addf %509, %510 : vector<8x128xf32>
    %cst_113 = arith.constant dense<0.000000e+00> : vector<8xf32>
    %512 = vector.multi_reduction <add>, %511, %cst_113 [1] : vector<8x128xf32> to vector<8xf32>
    %513 = vector.shape_cast %512 : vector<8xf32> to vector<8x1xf32>
    %cst_114 = arith.constant 1.280000e+02 : f32
    %514 = vector.broadcast %cst_114 : f32 to vector<8x1xf32>
    %515 = arith.divf %513, %514 : vector<8x1xf32>
    %516 = arith.mulf %511, %511 : vector<8x128xf32>
    %cst_115 = arith.constant dense<0.000000e+00> : vector<8xf32>
    %517 = vector.multi_reduction <add>, %516, %cst_115 [1] : vector<8x128xf32> to vector<8xf32>
    %518 = vector.shape_cast %517 : vector<8xf32> to vector<8x1xf32>
    %cst_116 = arith.constant 1.280000e+02 : f32
    %519 = vector.broadcast %cst_116 : f32 to vector<8x1xf32>
    %520 = arith.divf %518, %519 : vector<8x1xf32>
    %521 = arith.mulf %515, %515 : vector<8x1xf32>
    %522 = arith.subf %520, %521 : vector<8x1xf32>
    %523 = vector.broadcast %515 : vector<8x1xf32> to vector<8x128xf32>
    %524 = arith.subf %511, %523 : vector<8x128xf32>
    %cst_117 = arith.constant 9.99999974E-6 : f32
    %525 = vector.broadcast %cst_117 : f32 to vector<8x1xf32>
    %526 = arith.addf %522, %525 : vector<8x1xf32>
    %527 = math.rsqrt %526 : vector<8x1xf32>
    %528 = vector.broadcast %527 : vector<8x1xf32> to vector<8x128xf32>
    %529 = arith.mulf %524, %528 : vector<8x128xf32>
    %530 = vector.broadcast %4 : vector<1x128xf32> to vector<8x128xf32>
    %531 = arith.mulf %529, %530 : vector<8x128xf32>
    %532 = arith.index_cast %507 : i32 to index
    %c0_118 = arith.constant 0 : index
    %533 = vector.load %arg1[%532, %c0_118] : memref<64x128xbf16, #tpu.memory_space<vmem>>, vector<8x128xbf16>
    %534 = arith.extf %533 : vector<8x128xbf16> to vector<8x128xf32>
    %535 = arith.addf %534, %531 : vector<8x128xf32>
    %536 = vector.broadcast %0 : vector<1x128xf32> to vector<8x128xf32>
    %537 = arith.mulf %535, %536 : vector<8x128xf32>
    %538 = math.tanh %537 : vector<8x128xf32>
    %539 = vector.broadcast %0 : vector<1x128xf32> to vector<8x128xf32>
    %540 = arith.mulf %538, %539 : vector<8x128xf32>
    %541 = vector.broadcast %1 : vector<1x128xf32> to vector<8x128xf32>
    %542 = arith.addf %540, %541 : vector<8x128xf32>
    %543 = vector.extract_strided_slice %542 {offsets = [0, 0], sizes = [8, 32], strides = [1, 1]} : vector<8x128xf32> to vector<8x32xf32>
    %544 = vector.extract_strided_slice %542 {offsets = [0, 32], sizes = [8, 32], strides = [1, 1]} : vector<8x128xf32> to vector<8x32xf32>
    %545 = vector.extract_strided_slice %542 {offsets = [0, 64], sizes = [8, 32], strides = [1, 1]} : vector<8x128xf32> to vector<8x32xf32>
    %546 = vector.extract_strided_slice %542 {offsets = [0, 96], sizes = [8, 32], strides = [1, 1]} : vector<8x128xf32> to vector<8x32xf32>
    %547 = arith.mulf %544, %478 : vector<8x32xf32>
    %548 = arith.mulf %543, %546 : vector<8x32xf32>
    %549 = arith.addf %547, %548 : vector<8x32xf32>
    %cst_119 = arith.constant dense<0.000000e+00> : vector<8xf32>
    %550 = vector.multi_reduction <add>, %549, %cst_119 [1] : vector<8x32xf32> to vector<8xf32>
    %551 = vector.shape_cast %550 : vector<8xf32> to vector<8x1xf32>
    %cst_120 = arith.constant 3.200000e+01 : f32
    %552 = vector.broadcast %cst_120 : f32 to vector<8x1xf32>
    %553 = arith.divf %551, %552 : vector<8x1xf32>
    %554 = arith.mulf %549, %549 : vector<8x32xf32>
    %cst_121 = arith.constant dense<0.000000e+00> : vector<8xf32>
    %555 = vector.multi_reduction <add>, %554, %cst_121 [1] : vector<8x32xf32> to vector<8xf32>
    %556 = vector.shape_cast %555 : vector<8xf32> to vector<8x1xf32>
    %cst_122 = arith.constant 3.200000e+01 : f32
    %557 = vector.broadcast %cst_122 : f32 to vector<8x1xf32>
    %558 = arith.divf %556, %557 : vector<8x1xf32>
    %559 = arith.mulf %553, %553 : vector<8x1xf32>
    %560 = arith.subf %558, %559 : vector<8x1xf32>
    %561 = vector.broadcast %553 : vector<8x1xf32> to vector<8x32xf32>
    %562 = arith.subf %549, %561 : vector<8x32xf32>
    %cst_123 = arith.constant 9.99999974E-6 : f32
    %563 = vector.broadcast %cst_123 : f32 to vector<8x1xf32>
    %564 = arith.addf %560, %563 : vector<8x1xf32>
    %565 = math.rsqrt %564 : vector<8x1xf32>
    %566 = vector.broadcast %565 : vector<8x1xf32> to vector<8x32xf32>
    %567 = arith.mulf %562, %566 : vector<8x32xf32>
    %568 = vector.broadcast %5 : vector<1x32xf32> to vector<8x32xf32>
    %569 = arith.mulf %567, %568 : vector<8x32xf32>
    %570 = vector.broadcast %6 : vector<1x32xf32> to vector<8x32xf32>
    %571 = arith.addf %569, %570 : vector<8x32xf32>
    %572 = math.tanh %571 : vector<8x32xf32>
    %573 = arith.mulf %545, %572 : vector<8x32xf32>
    %574 = arith.truncf %573 : vector<8x32xf32> to vector<8x32xbf16>
    %575 = arith.index_cast %507 : i32 to index
    %c0_124 = arith.constant 0 : index
    %576 = vector.load %arg21[%575, %c0_124] : memref<64x32xbf16, #tpu.memory_space<vmem>>, vector<8x32xbf16>
    tpu.vector_store %arg21[%575, %c0_124], %574 {strides = array<i32>} : memref<64x32xbf16, #tpu.memory_space<vmem>>, vector<8x32xbf16>,
    %c8_i32_125 = arith.constant 8 : i32
    %c0_126 = arith.constant 0 : index
    %c0_127 = arith.constant 0 : index
    %577 = vector.load %arg18[%c0_126, %c0_127] : memref<16x32xf32, #tpu.memory_space<vmem>>, vector<8x32xf32>
    tpu.vector_store %arg18[%c0_126, %c0_127], %573 {strides = array<i32>} : memref<16x32xf32, #tpu.memory_space<vmem>>, vector<8x32xf32>,
    %c0_128 = arith.constant 0 : index
    %c0_129 = arith.constant 0 : index
    %578 = vector.load %arg19[%c0_128, %c0_129] : memref<16x32xf32, #tpu.memory_space<vmem>>, vector<8x32xf32>
    tpu.vector_store %arg19[%c0_128, %c0_129], %549 {strides = array<i32>} : memref<16x32xf32, #tpu.memory_space<vmem>>, vector<8x32xf32>,
    %c0_130 = arith.constant 0 : index
    %c0_131 = arith.constant 0 : index
    %579 = vector.load %arg9[%c0_130, %c0_131] : memref<32x128xbf16, #tpu.memory_space<vmem>>, vector<32x128xbf16>
    %c0_132 = arith.constant 0 : index
    %c0_133 = arith.constant 0 : index
    %580 = vector.load %arg10[%c0_132, %c0_133] : memref<1x128xf32, #tpu.memory_space<vmem>>, vector<1x128xf32>
    %c0_134 = arith.constant 0 : index
    %c0_135 = arith.constant 0 : index
    %581 = vector.load %arg11[%c0_134, %c0_135] : memref<1x128xf32, #tpu.memory_space<vmem>>, vector<1x128xf32>
    %c0_136 = arith.constant 0 : index
    %c0_137 = arith.constant 0 : index
    %582 = vector.load %arg12[%c0_136, %c0_137] : memref<1x128xf32, #tpu.memory_space<vmem>>, vector<1x128xf32>
    %c0_138 = arith.constant 0 : index
    %c0_139 = arith.constant 0 : index
    %583 = vector.load %arg21[%c0_138, %c0_139] : memref<64x32xbf16, #tpu.memory_space<vmem>>, vector<64x32xbf16>
    %cst_140 = arith.constant dense<0.000000e+00> : vector<64x128xf32>
    %584 = tpu.matmul %583, %579, %cst_140 {dimension_numbers = #tpu.dot_dimension_numbers<[1], [0], [0], [1], [0, 0, 1, 1], [], []>} : vector<64x32xbf16>, vector<32x128xbf16>, vector<64x128xf32> -> vector<64x128xf32>
    %585 = vector.broadcast %580 : vector<1x128xf32> to vector<64x128xf32>
    %586 = arith.addf %584, %585 : vector<64x128xf32>
    %cst_141 = arith.constant dense<0.000000e+00> : vector<64xf32>
    %587 = vector.multi_reduction <add>, %586, %cst_141 [1] : vector<64x128xf32> to vector<64xf32>
    %588 = vector.shape_cast %587 : vector<64xf32> to vector<64x1xf32>
    %cst_142 = arith.constant 1.280000e+02 : f32
    %589 = vector.broadcast %cst_142 : f32 to vector<64x1xf32>
    %590 = arith.divf %588, %589 : vector<64x1xf32>
    %591 = arith.mulf %586, %586 : vector<64x128xf32>
    %cst_143 = arith.constant dense<0.000000e+00> : vector<64xf32>
    %592 = vector.multi_reduction <add>, %591, %cst_143 [1] : vector<64x128xf32> to vector<64xf32>
    %593 = vector.shape_cast %592 : vector<64xf32> to vector<64x1xf32>
    %cst_144 = arith.constant 1.280000e+02 : f32
    %594 = vector.broadcast %cst_144 : f32 to vector<64x1xf32>
    %595 = arith.divf %593, %594 : vector<64x1xf32>
    %596 = arith.mulf %590, %590 : vector<64x1xf32>
    %597 = arith.subf %595, %596 : vector<64x1xf32>
    %598 = vector.broadcast %590 : vector<64x1xf32> to vector<64x128xf32>
    %599 = arith.subf %586, %598 : vector<64x128xf32>
    %cst_145 = arith.constant 9.99999974E-6 : f32
    %600 = vector.broadcast %cst_145 : f32 to vector<64x1xf32>
    %601 = arith.addf %597, %600 : vector<64x1xf32>
    %602 = math.rsqrt %601 : vector<64x1xf32>
    %603 = vector.broadcast %602 : vector<64x1xf32> to vector<64x128xf32>
    %604 = arith.mulf %599, %603 : vector<64x128xf32>
    %605 = vector.broadcast %581 : vector<1x128xf32> to vector<64x128xf32>
    %606 = arith.mulf %604, %605 : vector<64x128xf32>
    %607 = vector.broadcast %582 : vector<1x128xf32> to vector<64x128xf32>
    %608 = arith.addf %606, %607 : vector<64x128xf32>
    %c0_146 = arith.constant 0 : index
    %c0_147 = arith.constant 0 : index
    %609 = vector.load %arg20[%c0_146, %c0_147] : memref<64x128xf32, #tpu.memory_space<vmem>>, vector<64x128xf32>
    tpu.vector_store %arg20[%c0_146, %c0_147], %608 {strides = array<i32>} : memref<64x128xf32, #tpu.memory_space<vmem>>, vector<64x128xf32>,
    %c0_148 = arith.constant 0 : index
    %c0_149 = arith.constant 0 : index
    %610 = vector.load %arg13[%c0_148, %c0_149] : memref<32x128xbf16, #tpu.memory_space<vmem>>, vector<32x128xbf16>
    %c0_150 = arith.constant 0 : index
    %c0_151 = arith.constant 0 : index
    %611 = vector.load %arg14[%c0_150, %c0_151] : memref<1x128xf32, #tpu.memory_space<vmem>>, vector<1x128xf32>
    %c0_152 = arith.constant 0 : index
    %c0_153 = arith.constant 0 : index
    %612 = vector.load %arg15[%c0_152, %c0_153] : memref<1x128xf32, #tpu.memory_space<vmem>>, vector<1x128xf32>
    %c0_154 = arith.constant 0 : index
    %c0_155 = arith.constant 0 : index
    %613 = vector.load %arg16[%c0_154, %c0_155] : memref<1x32xf32, #tpu.memory_space<vmem>>, vector<1x32xf32>
    %c0_156 = arith.constant 0 : index
    %c0_157 = arith.constant 0 : index
    %614 = vector.load %arg17[%c0_156, %c0_157] : memref<1x32xf32, #tpu.memory_space<vmem>>, vector<1x32xf32>
    %cst_158 = arith.constant 0.000000e+00 : f32
    %615 = vector.broadcast %cst_158 : f32 to vector<8x32xf32>
    %cst_159 = arith.constant 0.000000e+00 : f32
    %616 = vector.broadcast %cst_159 : f32 to vector<8x32xf32>
    %c0_i32_160 = arith.constant 0 : i32
    %c8_i32_161 = arith.constant 8 : i32
    %617 = arith.muli %c0_i32_160, %c8_i32_161 : i32
    %618 = tpu.assume_multiple %617, 8 : i32
    %619 = arith.truncf %615 : vector<8x32xf32> to vector<8x32xbf16>
    %cst_162 = arith.constant dense<0.000000e+00> : vector<8x128xf32>
    %620 = tpu.matmul %619, %610, %cst_162 {dimension_numbers = #tpu.dot_dimension_numbers<[1], [0], [0], [1], [0, 0, 1, 1], [], []>} : vector<8x32xbf16>, vector<32x128xbf16>, vector<8x128xf32> -> vector<8x128xf32>
    %621 = vector.broadcast %611 : vector<1x128xf32> to vector<8x128xf32>
    %622 = arith.addf %620, %621 : vector<8x128xf32>
    %cst_163 = arith.constant dense<0.000000e+00> : vector<8xf32>
    %623 = vector.multi_reduction <add>, %622, %cst_163 [1] : vector<8x128xf32> to vector<8xf32>
    %624 = vector.shape_cast %623 : vector<8xf32> to vector<8x1xf32>
    %cst_164 = arith.constant 1.280000e+02 : f32
    %625 = vector.broadcast %cst_164 : f32 to vector<8x1xf32>
    %626 = arith.divf %624, %625 : vector<8x1xf32>
    %627 = arith.mulf %622, %622 : vector<8x128xf32>
    %cst_165 = arith.constant dense<0.000000e+00> : vector<8xf32>
    %628 = vector.multi_reduction <add>, %627, %cst_165 [1] : vector<8x128xf32> to vector<8xf32>
    %629 = vector.shape_cast %628 : vector<8xf32> to vector<8x1xf32>
    %cst_166 = arith.constant 1.280000e+02 : f32
    %630 = vector.broadcast %cst_166 : f32 to vector<8x1xf32>
    %631 = arith.divf %629, %630 : vector<8x1xf32>
    %632 = arith.mulf %626, %626 : vector<8x1xf32>
    %633 = arith.subf %631, %632 : vector<8x1xf32>
    %634 = vector.broadcast %626 : vector<8x1xf32> to vector<8x128xf32>
    %635 = arith.subf %622, %634 : vector<8x128xf32>
    %cst_167 = arith.constant 9.99999974E-6 : f32
    %636 = vector.broadcast %cst_167 : f32 to vector<8x1xf32>
    %637 = arith.addf %633, %636 : vector<8x1xf32>
    %638 = math.rsqrt %637 : vector<8x1xf32>
    %639 = vector.broadcast %638 : vector<8x1xf32> to vector<8x128xf32>
    %640 = arith.mulf %635, %639 : vector<8x128xf32>
    %641 = vector.broadcast %612 : vector<1x128xf32> to vector<8x128xf32>
    %642 = arith.mulf %640, %641 : vector<8x128xf32>
    %643 = arith.index_cast %618 : i32 to index
    %c0_168 = arith.constant 0 : index
    %644 = vector.load %arg20[%643, %c0_168] : memref<64x128xf32, #tpu.memory_space<vmem>>, vector<8x128xf32>
    %645 = arith.addf %644, %642 : vector<8x128xf32>
    %646 = vector.broadcast %0 : vector<1x128xf32> to vector<8x128xf32>
    %647 = arith.mulf %645, %646 : vector<8x128xf32>
    %648 = math.tanh %647 : vector<8x128xf32>
    %649 = vector.broadcast %0 : vector<1x128xf32> to vector<8x128xf32>
    %650 = arith.mulf %648, %649 : vector<8x128xf32>
    %651 = vector.broadcast %1 : vector<1x128xf32> to vector<8x128xf32>
    %652 = arith.addf %650, %651 : vector<8x128xf32>
    %653 = vector.extract_strided_slice %652 {offsets = [0, 0], sizes = [8, 32], strides = [1, 1]} : vector<8x128xf32> to vector<8x32xf32>
    %654 = vector.extract_strided_slice %652 {offsets = [0, 32], sizes = [8, 32], strides = [1, 1]} : vector<8x128xf32> to vector<8x32xf32>
    %655 = vector.extract_strided_slice %652 {offsets = [0, 64], sizes = [8, 32], strides = [1, 1]} : vector<8x128xf32> to vector<8x32xf32>
    %656 = vector.extract_strided_slice %652 {offsets = [0, 96], sizes = [8, 32], strides = [1, 1]} : vector<8x128xf32> to vector<8x32xf32>
    %657 = arith.mulf %654, %616 : vector<8x32xf32>
    %658 = arith.mulf %653, %656 : vector<8x32xf32>
    %659 = arith.addf %657, %658 : vector<8x32xf32>
    %cst_169 = arith.constant dense<0.000000e+00> : vector<8xf32>
    %660 = vector.multi_reduction <add>, %659, %cst_169 [1] : vector<8x32xf32> to vector<8xf32>
    %661 = vector.shape_cast %660 : vector<8xf32> to vector<8x1xf32>
    %cst_170 = arith.constant 3.200000e+01 : f32
    %662 = vector.broadcast %cst_170 : f32 to vector<8x1xf32>
    %663 = arith.divf %661, %662 : vector<8x1xf32>
    %664 = arith.mulf %659, %659 : vector<8x32xf32>
    %cst_171 = arith.constant dense<0.000000e+00> : vector<8xf32>
    %665 = vector.multi_reduction <add>, %664, %cst_171 [1] : vector<8x32xf32> to vector<8xf32>
    %666 = vector.shape_cast %665 : vector<8xf32> to vector<8x1xf32>
    %cst_172 = arith.constant 3.200000e+01 : f32
    %667 = vector.broadcast %cst_172 : f32 to vector<8x1xf32>
    %668 = arith.divf %666, %667 : vector<8x1xf32>
    %669 = arith.mulf %663, %663 : vector<8x1xf32>
    %670 = arith.subf %668, %669 : vector<8x1xf32>
    %671 = vector.broadcast %663 : vector<8x1xf32> to vector<8x32xf32>
    %672 = arith.subf %659, %671 : vector<8x32xf32>
    %cst_173 = arith.constant 9.99999974E-6 : f32
    %673 = vector.broadcast %cst_173 : f32 to vector<8x1xf32>
    %674 = arith.addf %670, %673 : vector<8x1xf32>
    %675 = math.rsqrt %674 : vector<8x1xf32>
    %676 = vector.broadcast %675 : vector<8x1xf32> to vector<8x32xf32>
    %677 = arith.mulf %672, %676 : vector<8x32xf32>
    %678 = vector.broadcast %613 : vector<1x32xf32> to vector<8x32xf32>
    %679 = arith.mulf %677, %678 : vector<8x32xf32>
    %680 = vector.broadcast %614 : vector<1x32xf32> to vector<8x32xf32>
    %681 = arith.addf %679, %680 : vector<8x32xf32>
    %682 = math.tanh %681 : vector<8x32xf32>
    %683 = arith.mulf %655, %682 : vector<8x32xf32>
    %c1_i32_174 = arith.constant 1 : i32
    %c8_i32_175 = arith.constant 8 : i32
    %684 = arith.muli %c1_i32_174, %c8_i32_175 : i32
    %685 = tpu.assume_multiple %684, 8 : i32
    %686 = arith.truncf %683 : vector<8x32xf32> to vector<8x32xbf16>
    %cst_176 = arith.constant dense<0.000000e+00> : vector<8x128xf32>
    %687 = tpu.matmul %686, %610, %cst_176 {dimension_numbers = #tpu.dot_dimension_numbers<[1], [0], [0], [1], [0, 0, 1, 1], [], []>} : vector<8x32xbf16>, vector<32x128xbf16>, vector<8x128xf32> -> vector<8x128xf32>
    %688 = vector.broadcast %611 : vector<1x128xf32> to vector<8x128xf32>
    %689 = arith.addf %687, %688 : vector<8x128xf32>
    %cst_177 = arith.constant dense<0.000000e+00> : vector<8xf32>
    %690 = vector.multi_reduction <add>, %689, %cst_177 [1] : vector<8x128xf32> to vector<8xf32>
    %691 = vector.shape_cast %690 : vector<8xf32> to vector<8x1xf32>
    %cst_178 = arith.constant 1.280000e+02 : f32
    %692 = vector.broadcast %cst_178 : f32 to vector<8x1xf32>
    %693 = arith.divf %691, %692 : vector<8x1xf32>
    %694 = arith.mulf %689, %689 : vector<8x128xf32>
    %cst_179 = arith.constant dense<0.000000e+00> : vector<8xf32>
    %695 = vector.multi_reduction <add>, %694, %cst_179 [1] : vector<8x128xf32> to vector<8xf32>
    %696 = vector.shape_cast %695 : vector<8xf32> to vector<8x1xf32>
    %cst_180 = arith.constant 1.280000e+02 : f32
    %697 = vector.broadcast %cst_180 : f32 to vector<8x1xf32>
    %698 = arith.divf %696, %697 : vector<8x1xf32>
    %699 = arith.mulf %693, %693 : vector<8x1xf32>
    %700 = arith.subf %698, %699 : vector<8x1xf32>
    %701 = vector.broadcast %693 : vector<8x1xf32> to vector<8x128xf32>
    %702 = arith.subf %689, %701 : vector<8x128xf32>
    %cst_181 = arith.constant 9.99999974E-6 : f32
    %703 = vector.broadcast %cst_181 : f32 to vector<8x1xf32>
    %704 = arith.addf %700, %703 : vector<8x1xf32>
    %705 = math.rsqrt %704 : vector<8x1xf32>
    %706 = vector.broadcast %705 : vector<8x1xf32> to vector<8x128xf32>
    %707 = arith.mulf %702, %706 : vector<8x128xf32>
    %708 = vector.broadcast %612 : vector<1x128xf32> to vector<8x128xf32>
    %709 = arith.mulf %707, %708 : vector<8x128xf32>
    %710 = arith.index_cast %685 : i32 to index
    %c0_182 = arith.constant 0 : index
    %711 = vector.load %arg20[%710, %c0_182] : memref<64x128xf32, #tpu.memory_space<vmem>>, vector<8x128xf32>
    %712 = arith.addf %711, %709 : vector<8x128xf32>
    %713 = vector.broadcast %0 : vector<1x128xf32> to vector<8x128xf32>
    %714 = arith.mulf %712, %713 : vector<8x128xf32>
    %715 = math.tanh %714 : vector<8x128xf32>
    %716 = vector.broadcast %0 : vector<1x128xf32> to vector<8x128xf32>
    %717 = arith.mulf %715, %716 : vector<8x128xf32>
    %718 = vector.broadcast %1 : vector<1x128xf32> to vector<8x128xf32>
    %719 = arith.addf %717, %718 : vector<8x128xf32>
    %720 = vector.extract_strided_slice %719 {offsets = [0, 0], sizes = [8, 32], strides = [1, 1]} : vector<8x128xf32> to vector<8x32xf32>
    %721 = vector.extract_strided_slice %719 {offsets = [0, 32], sizes = [8, 32], strides = [1, 1]} : vector<8x128xf32> to vector<8x32xf32>
    %722 = vector.extract_strided_slice %719 {offsets = [0, 64], sizes = [8, 32], strides = [1, 1]} : vector<8x128xf32> to vector<8x32xf32>
    %723 = vector.extract_strided_slice %719 {offsets = [0, 96], sizes = [8, 32], strides = [1, 1]} : vector<8x128xf32> to vector<8x32xf32>
    %724 = arith.mulf %721, %659 : vector<8x32xf32>
    %725 = arith.mulf %720, %723 : vector<8x32xf32>
    %726 = arith.addf %724, %725 : vector<8x32xf32>
    %cst_183 = arith.constant dense<0.000000e+00> : vector<8xf32>
    %727 = vector.multi_reduction <add>, %726, %cst_183 [1] : vector<8x32xf32> to vector<8xf32>
    %728 = vector.shape_cast %727 : vector<8xf32> to vector<8x1xf32>
    %cst_184 = arith.constant 3.200000e+01 : f32
    %729 = vector.broadcast %cst_184 : f32 to vector<8x1xf32>
    %730 = arith.divf %728, %729 : vector<8x1xf32>
    %731 = arith.mulf %726, %726 : vector<8x32xf32>
    %cst_185 = arith.constant dense<0.000000e+00> : vector<8xf32>
    %732 = vector.multi_reduction <add>, %731, %cst_185 [1] : vector<8x32xf32> to vector<8xf32>
    %733 = vector.shape_cast %732 : vector<8xf32> to vector<8x1xf32>
    %cst_186 = arith.constant 3.200000e+01 : f32
    %734 = vector.broadcast %cst_186 : f32 to vector<8x1xf32>
    %735 = arith.divf %733, %734 : vector<8x1xf32>
    %736 = arith.mulf %730, %730 : vector<8x1xf32>
    %737 = arith.subf %735, %736 : vector<8x1xf32>
    %738 = vector.broadcast %730 : vector<8x1xf32> to vector<8x32xf32>
    %739 = arith.subf %726, %738 : vector<8x32xf32>
    %cst_187 = arith.constant 9.99999974E-6 : f32
    %740 = vector.broadcast %cst_187 : f32 to vector<8x1xf32>
    %741 = arith.addf %737, %740 : vector<8x1xf32>
    %742 = math.rsqrt %741 : vector<8x1xf32>
    %743 = vector.broadcast %742 : vector<8x1xf32> to vector<8x32xf32>
    %744 = arith.mulf %739, %743 : vector<8x32xf32>
    %745 = vector.broadcast %613 : vector<1x32xf32> to vector<8x32xf32>
    %746 = arith.mulf %744, %745 : vector<8x32xf32>
    %747 = vector.broadcast %614 : vector<1x32xf32> to vector<8x32xf32>
    %748 = arith.addf %746, %747 : vector<8x32xf32>
    %749 = math.tanh %748 : vector<8x32xf32>
    %750 = arith.mulf %722, %749 : vector<8x32xf32>
    %c2_i32_188 = arith.constant 2 : i32
    %c8_i32_189 = arith.constant 8 : i32
    %751 = arith.muli %c2_i32_188, %c8_i32_189 : i32
    %752 = tpu.assume_multiple %751, 8 : i32
    %753 = arith.truncf %750 : vector<8x32xf32> to vector<8x32xbf16>
    %cst_190 = arith.constant dense<0.000000e+00> : vector<8x128xf32>
    %754 = tpu.matmul %753, %610, %cst_190 {dimension_numbers = #tpu.dot_dimension_numbers<[1], [0], [0], [1], [0, 0, 1, 1], [], []>} : vector<8x32xbf16>, vector<32x128xbf16>, vector<8x128xf32> -> vector<8x128xf32>
    %755 = vector.broadcast %611 : vector<1x128xf32> to vector<8x128xf32>
    %756 = arith.addf %754, %755 : vector<8x128xf32>
    %cst_191 = arith.constant dense<0.000000e+00> : vector<8xf32>
    %757 = vector.multi_reduction <add>, %756, %cst_191 [1] : vector<8x128xf32> to vector<8xf32>
    %758 = vector.shape_cast %757 : vector<8xf32> to vector<8x1xf32>
    %cst_192 = arith.constant 1.280000e+02 : f32
    %759 = vector.broadcast %cst_192 : f32 to vector<8x1xf32>
    %760 = arith.divf %758, %759 : vector<8x1xf32>
    %761 = arith.mulf %756, %756 : vector<8x128xf32>
    %cst_193 = arith.constant dense<0.000000e+00> : vector<8xf32>
    %762 = vector.multi_reduction <add>, %761, %cst_193 [1] : vector<8x128xf32> to vector<8xf32>
    %763 = vector.shape_cast %762 : vector<8xf32> to vector<8x1xf32>
    %cst_194 = arith.constant 1.280000e+02 : f32
    %764 = vector.broadcast %cst_194 : f32 to vector<8x1xf32>
    %765 = arith.divf %763, %764 : vector<8x1xf32>
    %766 = arith.mulf %760, %760 : vector<8x1xf32>
    %767 = arith.subf %765, %766 : vector<8x1xf32>
    %768 = vector.broadcast %760 : vector<8x1xf32> to vector<8x128xf32>
    %769 = arith.subf %756, %768 : vector<8x128xf32>
    %cst_195 = arith.constant 9.99999974E-6 : f32
    %770 = vector.broadcast %cst_195 : f32 to vector<8x1xf32>
    %771 = arith.addf %767, %770 : vector<8x1xf32>
    %772 = math.rsqrt %771 : vector<8x1xf32>
    %773 = vector.broadcast %772 : vector<8x1xf32> to vector<8x128xf32>
    %774 = arith.mulf %769, %773 : vector<8x128xf32>
    %775 = vector.broadcast %612 : vector<1x128xf32> to vector<8x128xf32>
    %776 = arith.mulf %774, %775 : vector<8x128xf32>
    %777 = arith.index_cast %752 : i32 to index
    %c0_196 = arith.constant 0 : index
    %778 = vector.load %arg20[%777, %c0_196] : memref<64x128xf32, #tpu.memory_space<vmem>>, vector<8x128xf32>
    %779 = arith.addf %778, %776 : vector<8x128xf32>
    %780 = vector.broadcast %0 : vector<1x128xf32> to vector<8x128xf32>
    %781 = arith.mulf %779, %780 : vector<8x128xf32>
    %782 = math.tanh %781 : vector<8x128xf32>
    %783 = vector.broadcast %0 : vector<1x128xf32> to vector<8x128xf32>
    %784 = arith.mulf %782, %783 : vector<8x128xf32>
    %785 = vector.broadcast %1 : vector<1x128xf32> to vector<8x128xf32>
    %786 = arith.addf %784, %785 : vector<8x128xf32>
    %787 = vector.extract_strided_slice %786 {offsets = [0, 0], sizes = [8, 32], strides = [1, 1]} : vector<8x128xf32> to vector<8x32xf32>
    %788 = vector.extract_strided_slice %786 {offsets = [0, 32], sizes = [8, 32], strides = [1, 1]} : vector<8x128xf32> to vector<8x32xf32>
    %789 = vector.extract_strided_slice %786 {offsets = [0, 64], sizes = [8, 32], strides = [1, 1]} : vector<8x128xf32> to vector<8x32xf32>
    %790 = vector.extract_strided_slice %786 {offsets = [0, 96], sizes = [8, 32], strides = [1, 1]} : vector<8x128xf32> to vector<8x32xf32>
    %791 = arith.mulf %788, %726 : vector<8x32xf32>
    %792 = arith.mulf %787, %790 : vector<8x32xf32>
    %793 = arith.addf %791, %792 : vector<8x32xf32>
    %cst_197 = arith.constant dense<0.000000e+00> : vector<8xf32>
    %794 = vector.multi_reduction <add>, %793, %cst_197 [1] : vector<8x32xf32> to vector<8xf32>
    %795 = vector.shape_cast %794 : vector<8xf32> to vector<8x1xf32>
    %cst_198 = arith.constant 3.200000e+01 : f32
    %796 = vector.broadcast %cst_198 : f32 to vector<8x1xf32>
    %797 = arith.divf %795, %796 : vector<8x1xf32>
    %798 = arith.mulf %793, %793 : vector<8x32xf32>
    %cst_199 = arith.constant dense<0.000000e+00> : vector<8xf32>
    %799 = vector.multi_reduction <add>, %798, %cst_199 [1] : vector<8x32xf32> to vector<8xf32>
    %800 = vector.shape_cast %799 : vector<8xf32> to vector<8x1xf32>
    %cst_200 = arith.constant 3.200000e+01 : f32
    %801 = vector.broadcast %cst_200 : f32 to vector<8x1xf32>
    %802 = arith.divf %800, %801 : vector<8x1xf32>
    %803 = arith.mulf %797, %797 : vector<8x1xf32>
    %804 = arith.subf %802, %803 : vector<8x1xf32>
    %805 = vector.broadcast %797 : vector<8x1xf32> to vector<8x32xf32>
    %806 = arith.subf %793, %805 : vector<8x32xf32>
    %cst_201 = arith.constant 9.99999974E-6 : f32
    %807 = vector.broadcast %cst_201 : f32 to vector<8x1xf32>
    %808 = arith.addf %804, %807 : vector<8x1xf32>
    %809 = math.rsqrt %808 : vector<8x1xf32>
    %810 = vector.broadcast %809 : vector<8x1xf32> to vector<8x32xf32>
    %811 = arith.mulf %806, %810 : vector<8x32xf32>
    %812 = vector.broadcast %613 : vector<1x32xf32> to vector<8x32xf32>
    %813 = arith.mulf %811, %812 : vector<8x32xf32>
    %814 = vector.broadcast %614 : vector<1x32xf32> to vector<8x32xf32>
    %815 = arith.addf %813, %814 : vector<8x32xf32>
    %816 = math.tanh %815 : vector<8x32xf32>
    %817 = arith.mulf %789, %816 : vector<8x32xf32>
    %c3_i32_202 = arith.constant 3 : i32
    %c8_i32_203 = arith.constant 8 : i32
    %818 = arith.muli %c3_i32_202, %c8_i32_203 : i32
    %819 = tpu.assume_multiple %818, 8 : i32
    %820 = arith.truncf %817 : vector<8x32xf32> to vector<8x32xbf16>
    %cst_204 = arith.constant dense<0.000000e+00> : vector<8x128xf32>
    %821 = tpu.matmul %820, %610, %cst_204 {dimension_numbers = #tpu.dot_dimension_numbers<[1], [0], [0], [1], [0, 0, 1, 1], [], []>} : vector<8x32xbf16>, vector<32x128xbf16>, vector<8x128xf32> -> vector<8x128xf32>
    %822 = vector.broadcast %611 : vector<1x128xf32> to vector<8x128xf32>
    %823 = arith.addf %821, %822 : vector<8x128xf32>
    %cst_205 = arith.constant dense<0.000000e+00> : vector<8xf32>
    %824 = vector.multi_reduction <add>, %823, %cst_205 [1] : vector<8x128xf32> to vector<8xf32>
    %825 = vector.shape_cast %824 : vector<8xf32> to vector<8x1xf32>
    %cst_206 = arith.constant 1.280000e+02 : f32
    %826 = vector.broadcast %cst_206 : f32 to vector<8x1xf32>
    %827 = arith.divf %825, %826 : vector<8x1xf32>
    %828 = arith.mulf %823, %823 : vector<8x128xf32>
    %cst_207 = arith.constant dense<0.000000e+00> : vector<8xf32>
    %829 = vector.multi_reduction <add>, %828, %cst_207 [1] : vector<8x128xf32> to vector<8xf32>
    %830 = vector.shape_cast %829 : vector<8xf32> to vector<8x1xf32>
    %cst_208 = arith.constant 1.280000e+02 : f32
    %831 = vector.broadcast %cst_208 : f32 to vector<8x1xf32>
    %832 = arith.divf %830, %831 : vector<8x1xf32>
    %833 = arith.mulf %827, %827 : vector<8x1xf32>
    %834 = arith.subf %832, %833 : vector<8x1xf32>
    %835 = vector.broadcast %827 : vector<8x1xf32> to vector<8x128xf32>
    %836 = arith.subf %823, %835 : vector<8x128xf32>
    %cst_209 = arith.constant 9.99999974E-6 : f32
    %837 = vector.broadcast %cst_209 : f32 to vector<8x1xf32>
    %838 = arith.addf %834, %837 : vector<8x1xf32>
    %839 = math.rsqrt %838 : vector<8x1xf32>
    %840 = vector.broadcast %839 : vector<8x1xf32> to vector<8x128xf32>
    %841 = arith.mulf %836, %840 : vector<8x128xf32>
    %842 = vector.broadcast %612 : vector<1x128xf32> to vector<8x128xf32>
    %843 = arith.mulf %841, %842 : vector<8x128xf32>
    %844 = arith.index_cast %819 : i32 to index
    %c0_210 = arith.constant 0 : index
    %845 = vector.load %arg20[%844, %c0_210] : memref<64x128xf32, #tpu.memory_space<vmem>>, vector<8x128xf32>
    %846 = arith.addf %845, %843 : vector<8x128xf32>
    %847 = vector.broadcast %0 : vector<1x128xf32> to vector<8x128xf32>
    %848 = arith.mulf %846, %847 : vector<8x128xf32>
    %849 = math.tanh %848 : vector<8x128xf32>
    %850 = vector.broadcast %0 : vector<1x128xf32> to vector<8x128xf32>
    %851 = arith.mulf %849, %850 : vector<8x128xf32>
    %852 = vector.broadcast %1 : vector<1x128xf32> to vector<8x128xf32>
    %853 = arith.addf %851, %852 : vector<8x128xf32>
    %854 = vector.extract_strided_slice %853 {offsets = [0, 0], sizes = [8, 32], strides = [1, 1]} : vector<8x128xf32> to vector<8x32xf32>
    %855 = vector.extract_strided_slice %853 {offsets = [0, 32], sizes = [8, 32], strides = [1, 1]} : vector<8x128xf32> to vector<8x32xf32>
    %856 = vector.extract_strided_slice %853 {offsets = [0, 64], sizes = [8, 32], strides = [1, 1]} : vector<8x128xf32> to vector<8x32xf32>
    %857 = vector.extract_strided_slice %853 {offsets = [0, 96], sizes = [8, 32], strides = [1, 1]} : vector<8x128xf32> to vector<8x32xf32>
    %858 = arith.mulf %855, %793 : vector<8x32xf32>
    %859 = arith.mulf %854, %857 : vector<8x32xf32>
    %860 = arith.addf %858, %859 : vector<8x32xf32>
    %cst_211 = arith.constant dense<0.000000e+00> : vector<8xf32>
    %861 = vector.multi_reduction <add>, %860, %cst_211 [1] : vector<8x32xf32> to vector<8xf32>
    %862 = vector.shape_cast %861 : vector<8xf32> to vector<8x1xf32>
    %cst_212 = arith.constant 3.200000e+01 : f32
    %863 = vector.broadcast %cst_212 : f32 to vector<8x1xf32>
    %864 = arith.divf %862, %863 : vector<8x1xf32>
    %865 = arith.mulf %860, %860 : vector<8x32xf32>
    %cst_213 = arith.constant dense<0.000000e+00> : vector<8xf32>
    %866 = vector.multi_reduction <add>, %865, %cst_213 [1] : vector<8x32xf32> to vector<8xf32>
    %867 = vector.shape_cast %866 : vector<8xf32> to vector<8x1xf32>
    %cst_214 = arith.constant 3.200000e+01 : f32
    %868 = vector.broadcast %cst_214 : f32 to vector<8x1xf32>
    %869 = arith.divf %867, %868 : vector<8x1xf32>
    %870 = arith.mulf %864, %864 : vector<8x1xf32>
    %871 = arith.subf %869, %870 : vector<8x1xf32>
    %872 = vector.broadcast %864 : vector<8x1xf32> to vector<8x32xf32>
    %873 = arith.subf %860, %872 : vector<8x32xf32>
    %cst_215 = arith.constant 9.99999974E-6 : f32
    %874 = vector.broadcast %cst_215 : f32 to vector<8x1xf32>
    %875 = arith.addf %871, %874 : vector<8x1xf32>
    %876 = math.rsqrt %875 : vector<8x1xf32>
    %877 = vector.broadcast %876 : vector<8x1xf32> to vector<8x32xf32>
    %878 = arith.mulf %873, %877 : vector<8x32xf32>
    %879 = vector.broadcast %613 : vector<1x32xf32> to vector<8x32xf32>
    %880 = arith.mulf %878, %879 : vector<8x32xf32>
    %881 = vector.broadcast %614 : vector<1x32xf32> to vector<8x32xf32>
    %882 = arith.addf %880, %881 : vector<8x32xf32>
    %883 = math.tanh %882 : vector<8x32xf32>
    %884 = arith.mulf %856, %883 : vector<8x32xf32>
    %c4_i32_216 = arith.constant 4 : i32
    %c8_i32_217 = arith.constant 8 : i32
    %885 = arith.muli %c4_i32_216, %c8_i32_217 : i32
    %886 = tpu.assume_multiple %885, 8 : i32
    %887 = arith.truncf %884 : vector<8x32xf32> to vector<8x32xbf16>
    %cst_218 = arith.constant dense<0.000000e+00> : vector<8x128xf32>
    %888 = tpu.matmul %887, %610, %cst_218 {dimension_numbers = #tpu.dot_dimension_numbers<[1], [0], [0], [1], [0, 0, 1, 1], [], []>} : vector<8x32xbf16>, vector<32x128xbf16>, vector<8x128xf32> -> vector<8x128xf32>
    %889 = vector.broadcast %611 : vector<1x128xf32> to vector<8x128xf32>
    %890 = arith.addf %888, %889 : vector<8x128xf32>
    %cst_219 = arith.constant dense<0.000000e+00> : vector<8xf32>
    %891 = vector.multi_reduction <add>, %890, %cst_219 [1] : vector<8x128xf32> to vector<8xf32>
    %892 = vector.shape_cast %891 : vector<8xf32> to vector<8x1xf32>
    %cst_220 = arith.constant 1.280000e+02 : f32
    %893 = vector.broadcast %cst_220 : f32 to vector<8x1xf32>
    %894 = arith.divf %892, %893 : vector<8x1xf32>
    %895 = arith.mulf %890, %890 : vector<8x128xf32>
    %cst_221 = arith.constant dense<0.000000e+00> : vector<8xf32>
    %896 = vector.multi_reduction <add>, %895, %cst_221 [1] : vector<8x128xf32> to vector<8xf32>
    %897 = vector.shape_cast %896 : vector<8xf32> to vector<8x1xf32>
    %cst_222 = arith.constant 1.280000e+02 : f32
    %898 = vector.broadcast %cst_222 : f32 to vector<8x1xf32>
    %899 = arith.divf %897, %898 : vector<8x1xf32>
    %900 = arith.mulf %894, %894 : vector<8x1xf32>
    %901 = arith.subf %899, %900 : vector<8x1xf32>
    %902 = vector.broadcast %894 : vector<8x1xf32> to vector<8x128xf32>
    %903 = arith.subf %890, %902 : vector<8x128xf32>
    %cst_223 = arith.constant 9.99999974E-6 : f32
    %904 = vector.broadcast %cst_223 : f32 to vector<8x1xf32>
    %905 = arith.addf %901, %904 : vector<8x1xf32>
    %906 = math.rsqrt %905 : vector<8x1xf32>
    %907 = vector.broadcast %906 : vector<8x1xf32> to vector<8x128xf32>
    %908 = arith.mulf %903, %907 : vector<8x128xf32>
    %909 = vector.broadcast %612 : vector<1x128xf32> to vector<8x128xf32>
    %910 = arith.mulf %908, %909 : vector<8x128xf32>
    %911 = arith.index_cast %886 : i32 to index
    %c0_224 = arith.constant 0 : index
    %912 = vector.load %arg20[%911, %c0_224] : memref<64x128xf32, #tpu.memory_space<vmem>>, vector<8x128xf32>
    %913 = arith.addf %912, %910 : vector<8x128xf32>
    %914 = vector.broadcast %0 : vector<1x128xf32> to vector<8x128xf32>
    %915 = arith.mulf %913, %914 : vector<8x128xf32>
    %916 = math.tanh %915 : vector<8x128xf32>
    %917 = vector.broadcast %0 : vector<1x128xf32> to vector<8x128xf32>
    %918 = arith.mulf %916, %917 : vector<8x128xf32>
    %919 = vector.broadcast %1 : vector<1x128xf32> to vector<8x128xf32>
    %920 = arith.addf %918, %919 : vector<8x128xf32>
    %921 = vector.extract_strided_slice %920 {offsets = [0, 0], sizes = [8, 32], strides = [1, 1]} : vector<8x128xf32> to vector<8x32xf32>
    %922 = vector.extract_strided_slice %920 {offsets = [0, 32], sizes = [8, 32], strides = [1, 1]} : vector<8x128xf32> to vector<8x32xf32>
    %923 = vector.extract_strided_slice %920 {offsets = [0, 64], sizes = [8, 32], strides = [1, 1]} : vector<8x128xf32> to vector<8x32xf32>
    %924 = vector.extract_strided_slice %920 {offsets = [0, 96], sizes = [8, 32], strides = [1, 1]} : vector<8x128xf32> to vector<8x32xf32>
    %925 = arith.mulf %922, %860 : vector<8x32xf32>
    %926 = arith.mulf %921, %924 : vector<8x32xf32>
    %927 = arith.addf %925, %926 : vector<8x32xf32>
    %cst_225 = arith.constant dense<0.000000e+00> : vector<8xf32>
    %928 = vector.multi_reduction <add>, %927, %cst_225 [1] : vector<8x32xf32> to vector<8xf32>
    %929 = vector.shape_cast %928 : vector<8xf32> to vector<8x1xf32>
    %cst_226 = arith.constant 3.200000e+01 : f32
    %930 = vector.broadcast %cst_226 : f32 to vector<8x1xf32>
    %931 = arith.divf %929, %930 : vector<8x1xf32>
    %932 = arith.mulf %927, %927 : vector<8x32xf32>
    %cst_227 = arith.constant dense<0.000000e+00> : vector<8xf32>
    %933 = vector.multi_reduction <add>, %932, %cst_227 [1] : vector<8x32xf32> to vector<8xf32>
    %934 = vector.shape_cast %933 : vector<8xf32> to vector<8x1xf32>
    %cst_228 = arith.constant 3.200000e+01 : f32
    %935 = vector.broadcast %cst_228 : f32 to vector<8x1xf32>
    %936 = arith.divf %934, %935 : vector<8x1xf32>
    %937 = arith.mulf %931, %931 : vector<8x1xf32>
    %938 = arith.subf %936, %937 : vector<8x1xf32>
    %939 = vector.broadcast %931 : vector<8x1xf32> to vector<8x32xf32>
    %940 = arith.subf %927, %939 : vector<8x32xf32>
    %cst_229 = arith.constant 9.99999974E-6 : f32
    %941 = vector.broadcast %cst_229 : f32 to vector<8x1xf32>
    %942 = arith.addf %938, %941 : vector<8x1xf32>
    %943 = math.rsqrt %942 : vector<8x1xf32>
    %944 = vector.broadcast %943 : vector<8x1xf32> to vector<8x32xf32>
    %945 = arith.mulf %940, %944 : vector<8x32xf32>
    %946 = vector.broadcast %613 : vector<1x32xf32> to vector<8x32xf32>
    %947 = arith.mulf %945, %946 : vector<8x32xf32>
    %948 = vector.broadcast %614 : vector<1x32xf32> to vector<8x32xf32>
    %949 = arith.addf %947, %948 : vector<8x32xf32>
    %950 = math.tanh %949 : vector<8x32xf32>
    %951 = arith.mulf %923, %950 : vector<8x32xf32>
    %c5_i32_230 = arith.constant 5 : i32
    %c8_i32_231 = arith.constant 8 : i32
    %952 = arith.muli %c5_i32_230, %c8_i32_231 : i32
    %953 = tpu.assume_multiple %952, 8 : i32
    %954 = arith.truncf %951 : vector<8x32xf32> to vector<8x32xbf16>
    %cst_232 = arith.constant dense<0.000000e+00> : vector<8x128xf32>
    %955 = tpu.matmul %954, %610, %cst_232 {dimension_numbers = #tpu.dot_dimension_numbers<[1], [0], [0], [1], [0, 0, 1, 1], [], []>} : vector<8x32xbf16>, vector<32x128xbf16>, vector<8x128xf32> -> vector<8x128xf32>
    %956 = vector.broadcast %611 : vector<1x128xf32> to vector<8x128xf32>
    %957 = arith.addf %955, %956 : vector<8x128xf32>
    %cst_233 = arith.constant dense<0.000000e+00> : vector<8xf32>
    %958 = vector.multi_reduction <add>, %957, %cst_233 [1] : vector<8x128xf32> to vector<8xf32>
    %959 = vector.shape_cast %958 : vector<8xf32> to vector<8x1xf32>
    %cst_234 = arith.constant 1.280000e+02 : f32
    %960 = vector.broadcast %cst_234 : f32 to vector<8x1xf32>
    %961 = arith.divf %959, %960 : vector<8x1xf32>
    %962 = arith.mulf %957, %957 : vector<8x128xf32>
    %cst_235 = arith.constant dense<0.000000e+00> : vector<8xf32>
    %963 = vector.multi_reduction <add>, %962, %cst_235 [1] : vector<8x128xf32> to vector<8xf32>
    %964 = vector.shape_cast %963 : vector<8xf32> to vector<8x1xf32>
    %cst_236 = arith.constant 1.280000e+02 : f32
    %965 = vector.broadcast %cst_236 : f32 to vector<8x1xf32>
    %966 = arith.divf %964, %965 : vector<8x1xf32>
    %967 = arith.mulf %961, %961 : vector<8x1xf32>
    %968 = arith.subf %966, %967 : vector<8x1xf32>
    %969 = vector.broadcast %961 : vector<8x1xf32> to vector<8x128xf32>
    %970 = arith.subf %957, %969 : vector<8x128xf32>
    %cst_237 = arith.constant 9.99999974E-6 : f32
    %971 = vector.broadcast %cst_237 : f32 to vector<8x1xf32>
    %972 = arith.addf %968, %971 : vector<8x1xf32>
    %973 = math.rsqrt %972 : vector<8x1xf32>
    %974 = vector.broadcast %973 : vector<8x1xf32> to vector<8x128xf32>
    %975 = arith.mulf %970, %974 : vector<8x128xf32>
    %976 = vector.broadcast %612 : vector<1x128xf32> to vector<8x128xf32>
    %977 = arith.mulf %975, %976 : vector<8x128xf32>
    %978 = arith.index_cast %953 : i32 to index
    %c0_238 = arith.constant 0 : index
    %979 = vector.load %arg20[%978, %c0_238] : memref<64x128xf32, #tpu.memory_space<vmem>>, vector<8x128xf32>
    %980 = arith.addf %979, %977 : vector<8x128xf32>
    %981 = vector.broadcast %0 : vector<1x128xf32> to vector<8x128xf32>
    %982 = arith.mulf %980, %981 : vector<8x128xf32>
    %983 = math.tanh %982 : vector<8x128xf32>
    %984 = vector.broadcast %0 : vector<1x128xf32> to vector<8x128xf32>
    %985 = arith.mulf %983, %984 : vector<8x128xf32>
    %986 = vector.broadcast %1 : vector<1x128xf32> to vector<8x128xf32>
    %987 = arith.addf %985, %986 : vector<8x128xf32>
    %988 = vector.extract_strided_slice %987 {offsets = [0, 0], sizes = [8, 32], strides = [1, 1]} : vector<8x128xf32> to vector<8x32xf32>
    %989 = vector.extract_strided_slice %987 {offsets = [0, 32], sizes = [8, 32], strides = [1, 1]} : vector<8x128xf32> to vector<8x32xf32>
    %990 = vector.extract_strided_slice %987 {offsets = [0, 64], sizes = [8, 32], strides = [1, 1]} : vector<8x128xf32> to vector<8x32xf32>
    %991 = vector.extract_strided_slice %987 {offsets = [0, 96], sizes = [8, 32], strides = [1, 1]} : vector<8x128xf32> to vector<8x32xf32>
    %992 = arith.mulf %989, %927 : vector<8x32xf32>
    %993 = arith.mulf %988, %991 : vector<8x32xf32>
    %994 = arith.addf %992, %993 : vector<8x32xf32>
    %cst_239 = arith.constant dense<0.000000e+00> : vector<8xf32>
    %995 = vector.multi_reduction <add>, %994, %cst_239 [1] : vector<8x32xf32> to vector<8xf32>
    %996 = vector.shape_cast %995 : vector<8xf32> to vector<8x1xf32>
    %cst_240 = arith.constant 3.200000e+01 : f32
    %997 = vector.broadcast %cst_240 : f32 to vector<8x1xf32>
    %998 = arith.divf %996, %997 : vector<8x1xf32>
    %999 = arith.mulf %994, %994 : vector<8x32xf32>
    %cst_241 = arith.constant dense<0.000000e+00> : vector<8xf32>
    %1000 = vector.multi_reduction <add>, %999, %cst_241 [1] : vector<8x32xf32> to vector<8xf32>
    %1001 = vector.shape_cast %1000 : vector<8xf32> to vector<8x1xf32>
    %cst_242 = arith.constant 3.200000e+01 : f32
    %1002 = vector.broadcast %cst_242 : f32 to vector<8x1xf32>
    %1003 = arith.divf %1001, %1002 : vector<8x1xf32>
    %1004 = arith.mulf %998, %998 : vector<8x1xf32>
    %1005 = arith.subf %1003, %1004 : vector<8x1xf32>
    %1006 = vector.broadcast %998 : vector<8x1xf32> to vector<8x32xf32>
    %1007 = arith.subf %994, %1006 : vector<8x32xf32>
    %cst_243 = arith.constant 9.99999974E-6 : f32
    %1008 = vector.broadcast %cst_243 : f32 to vector<8x1xf32>
    %1009 = arith.addf %1005, %1008 : vector<8x1xf32>
    %1010 = math.rsqrt %1009 : vector<8x1xf32>
    %1011 = vector.broadcast %1010 : vector<8x1xf32> to vector<8x32xf32>
    %1012 = arith.mulf %1007, %1011 : vector<8x32xf32>
    %1013 = vector.broadcast %613 : vector<1x32xf32> to vector<8x32xf32>
    %1014 = arith.mulf %1012, %1013 : vector<8x32xf32>
    %1015 = vector.broadcast %614 : vector<1x32xf32> to vector<8x32xf32>
    %1016 = arith.addf %1014, %1015 : vector<8x32xf32>
    %1017 = math.tanh %1016 : vector<8x32xf32>
    %1018 = arith.mulf %990, %1017 : vector<8x32xf32>
    %c6_i32_244 = arith.constant 6 : i32
    %c8_i32_245 = arith.constant 8 : i32
    %1019 = arith.muli %c6_i32_244, %c8_i32_245 : i32
    %1020 = tpu.assume_multiple %1019, 8 : i32
    %1021 = arith.truncf %1018 : vector<8x32xf32> to vector<8x32xbf16>
    %cst_246 = arith.constant dense<0.000000e+00> : vector<8x128xf32>
    %1022 = tpu.matmul %1021, %610, %cst_246 {dimension_numbers = #tpu.dot_dimension_numbers<[1], [0], [0], [1], [0, 0, 1, 1], [], []>} : vector<8x32xbf16>, vector<32x128xbf16>, vector<8x128xf32> -> vector<8x128xf32>
    %1023 = vector.broadcast %611 : vector<1x128xf32> to vector<8x128xf32>
    %1024 = arith.addf %1022, %1023 : vector<8x128xf32>
    %cst_247 = arith.constant dense<0.000000e+00> : vector<8xf32>
    %1025 = vector.multi_reduction <add>, %1024, %cst_247 [1] : vector<8x128xf32> to vector<8xf32>
    %1026 = vector.shape_cast %1025 : vector<8xf32> to vector<8x1xf32>
    %cst_248 = arith.constant 1.280000e+02 : f32
    %1027 = vector.broadcast %cst_248 : f32 to vector<8x1xf32>
    %1028 = arith.divf %1026, %1027 : vector<8x1xf32>
    %1029 = arith.mulf %1024, %1024 : vector<8x128xf32>
    %cst_249 = arith.constant dense<0.000000e+00> : vector<8xf32>
    %1030 = vector.multi_reduction <add>, %1029, %cst_249 [1] : vector<8x128xf32> to vector<8xf32>
    %1031 = vector.shape_cast %1030 : vector<8xf32> to vector<8x1xf32>
    %cst_250 = arith.constant 1.280000e+02 : f32
    %1032 = vector.broadcast %cst_250 : f32 to vector<8x1xf32>
    %1033 = arith.divf %1031, %1032 : vector<8x1xf32>
    %1034 = arith.mulf %1028, %1028 : vector<8x1xf32>
    %1035 = arith.subf %1033, %1034 : vector<8x1xf32>
    %1036 = vector.broadcast %1028 : vector<8x1xf32> to vector<8x128xf32>
    %1037 = arith.subf %1024, %1036 : vector<8x128xf32>
    %cst_251 = arith.constant 9.99999974E-6 : f32
    %1038 = vector.broadcast %cst_251 : f32 to vector<8x1xf32>
    %1039 = arith.addf %1035, %1038 : vector<8x1xf32>
    %1040 = math.rsqrt %1039 : vector<8x1xf32>
    %1041 = vector.broadcast %1040 : vector<8x1xf32> to vector<8x128xf32>
    %1042 = arith.mulf %1037, %1041 : vector<8x128xf32>
    %1043 = vector.broadcast %612 : vector<1x128xf32> to vector<8x128xf32>
    %1044 = arith.mulf %1042, %1043 : vector<8x128xf32>
    %1045 = arith.index_cast %1020 : i32 to index
    %c0_252 = arith.constant 0 : index
    %1046 = vector.load %arg20[%1045, %c0_252] : memref<64x128xf32, #tpu.memory_space<vmem>>, vector<8x128xf32>
    %1047 = arith.addf %1046, %1044 : vector<8x128xf32>
    %1048 = vector.broadcast %0 : vector<1x128xf32> to vector<8x128xf32>
    %1049 = arith.mulf %1047, %1048 : vector<8x128xf32>
    %1050 = math.tanh %1049 : vector<8x128xf32>
    %1051 = vector.broadcast %0 : vector<1x128xf32> to vector<8x128xf32>
    %1052 = arith.mulf %1050, %1051 : vector<8x128xf32>
    %1053 = vector.broadcast %1 : vector<1x128xf32> to vector<8x128xf32>
    %1054 = arith.addf %1052, %1053 : vector<8x128xf32>
    %1055 = vector.extract_strided_slice %1054 {offsets = [0, 0], sizes = [8, 32], strides = [1, 1]} : vector<8x128xf32> to vector<8x32xf32>
    %1056 = vector.extract_strided_slice %1054 {offsets = [0, 32], sizes = [8, 32], strides = [1, 1]} : vector<8x128xf32> to vector<8x32xf32>
    %1057 = vector.extract_strided_slice %1054 {offsets = [0, 64], sizes = [8, 32], strides = [1, 1]} : vector<8x128xf32> to vector<8x32xf32>
    %1058 = vector.extract_strided_slice %1054 {offsets = [0, 96], sizes = [8, 32], strides = [1, 1]} : vector<8x128xf32> to vector<8x32xf32>
    %1059 = arith.mulf %1056, %994 : vector<8x32xf32>
    %1060 = arith.mulf %1055, %1058 : vector<8x32xf32>
    %1061 = arith.addf %1059, %1060 : vector<8x32xf32>
    %cst_253 = arith.constant dense<0.000000e+00> : vector<8xf32>
    %1062 = vector.multi_reduction <add>, %1061, %cst_253 [1] : vector<8x32xf32> to vector<8xf32>
    %1063 = vector.shape_cast %1062 : vector<8xf32> to vector<8x1xf32>
    %cst_254 = arith.constant 3.200000e+01 : f32
    %1064 = vector.broadcast %cst_254 : f32 to vector<8x1xf32>
    %1065 = arith.divf %1063, %1064 : vector<8x1xf32>
    %1066 = arith.mulf %1061, %1061 : vector<8x32xf32>
    %cst_255 = arith.constant dense<0.000000e+00> : vector<8xf32>
    %1067 = vector.multi_reduction <add>, %1066, %cst_255 [1] : vector<8x32xf32> to vector<8xf32>
    %1068 = vector.shape_cast %1067 : vector<8xf32> to vector<8x1xf32>
    %cst_256 = arith.constant 3.200000e+01 : f32
    %1069 = vector.broadcast %cst_256 : f32 to vector<8x1xf32>
    %1070 = arith.divf %1068, %1069 : vector<8x1xf32>
    %1071 = arith.mulf %1065, %1065 : vector<8x1xf32>
    %1072 = arith.subf %1070, %1071 : vector<8x1xf32>
    %1073 = vector.broadcast %1065 : vector<8x1xf32> to vector<8x32xf32>
    %1074 = arith.subf %1061, %1073 : vector<8x32xf32>
    %cst_257 = arith.constant 9.99999974E-6 : f32
    %1075 = vector.broadcast %cst_257 : f32 to vector<8x1xf32>
    %1076 = arith.addf %1072, %1075 : vector<8x1xf32>
    %1077 = math.rsqrt %1076 : vector<8x1xf32>
    %1078 = vector.broadcast %1077 : vector<8x1xf32> to vector<8x32xf32>
    %1079 = arith.mulf %1074, %1078 : vector<8x32xf32>
    %1080 = vector.broadcast %613 : vector<1x32xf32> to vector<8x32xf32>
    %1081 = arith.mulf %1079, %1080 : vector<8x32xf32>
    %1082 = vector.broadcast %614 : vector<1x32xf32> to vector<8x32xf32>
    %1083 = arith.addf %1081, %1082 : vector<8x32xf32>
    %1084 = math.tanh %1083 : vector<8x32xf32>
    %1085 = arith.mulf %1057, %1084 : vector<8x32xf32>
    %c7_i32_258 = arith.constant 7 : i32
    %c8_i32_259 = arith.constant 8 : i32
    %1086 = arith.muli %c7_i32_258, %c8_i32_259 : i32
    %1087 = tpu.assume_multiple %1086, 8 : i32
    %1088 = arith.truncf %1085 : vector<8x32xf32> to vector<8x32xbf16>
    %cst_260 = arith.constant dense<0.000000e+00> : vector<8x128xf32>
    %1089 = tpu.matmul %1088, %610, %cst_260 {dimension_numbers = #tpu.dot_dimension_numbers<[1], [0], [0], [1], [0, 0, 1, 1], [], []>} : vector<8x32xbf16>, vector<32x128xbf16>, vector<8x128xf32> -> vector<8x128xf32>
    %1090 = vector.broadcast %611 : vector<1x128xf32> to vector<8x128xf32>
    %1091 = arith.addf %1089, %1090 : vector<8x128xf32>
    %cst_261 = arith.constant dense<0.000000e+00> : vector<8xf32>
    %1092 = vector.multi_reduction <add>, %1091, %cst_261 [1] : vector<8x128xf32> to vector<8xf32>
    %1093 = vector.shape_cast %1092 : vector<8xf32> to vector<8x1xf32>
    %cst_262 = arith.constant 1.280000e+02 : f32
    %1094 = vector.broadcast %cst_262 : f32 to vector<8x1xf32>
    %1095 = arith.divf %1093, %1094 : vector<8x1xf32>
    %1096 = arith.mulf %1091, %1091 : vector<8x128xf32>
    %cst_263 = arith.constant dense<0.000000e+00> : vector<8xf32>
    %1097 = vector.multi_reduction <add>, %1096, %cst_263 [1] : vector<8x128xf32> to vector<8xf32>
    %1098 = vector.shape_cast %1097 : vector<8xf32> to vector<8x1xf32>
    %cst_264 = arith.constant 1.280000e+02 : f32
    %1099 = vector.broadcast %cst_264 : f32 to vector<8x1xf32>
    %1100 = arith.divf %1098, %1099 : vector<8x1xf32>
    %1101 = arith.mulf %1095, %1095 : vector<8x1xf32>
    %1102 = arith.subf %1100, %1101 : vector<8x1xf32>
    %1103 = vector.broadcast %1095 : vector<8x1xf32> to vector<8x128xf32>
    %1104 = arith.subf %1091, %1103 : vector<8x128xf32>
    %cst_265 = arith.constant 9.99999974E-6 : f32
    %1105 = vector.broadcast %cst_265 : f32 to vector<8x1xf32>
    %1106 = arith.addf %1102, %1105 : vector<8x1xf32>
    %1107 = math.rsqrt %1106 : vector<8x1xf32>
    %1108 = vector.broadcast %1107 : vector<8x1xf32> to vector<8x128xf32>
    %1109 = arith.mulf %1104, %1108 : vector<8x128xf32>
    %1110 = vector.broadcast %612 : vector<1x128xf32> to vector<8x128xf32>
    %1111 = arith.mulf %1109, %1110 : vector<8x128xf32>
    %1112 = arith.index_cast %1087 : i32 to index
    %c0_266 = arith.constant 0 : index
    %1113 = vector.load %arg20[%1112, %c0_266] : memref<64x128xf32, #tpu.memory_space<vmem>>, vector<8x128xf32>
    %1114 = arith.addf %1113, %1111 : vector<8x128xf32>
    %1115 = vector.broadcast %0 : vector<1x128xf32> to vector<8x128xf32>
    %1116 = arith.mulf %1114, %1115 : vector<8x128xf32>
    %1117 = math.tanh %1116 : vector<8x128xf32>
    %1118 = vector.broadcast %0 : vector<1x128xf32> to vector<8x128xf32>
    %1119 = arith.mulf %1117, %1118 : vector<8x128xf32>
    %1120 = vector.broadcast %1 : vector<1x128xf32> to vector<8x128xf32>
    %1121 = arith.addf %1119, %1120 : vector<8x128xf32>
    %1122 = vector.extract_strided_slice %1121 {offsets = [0, 0], sizes = [8, 32], strides = [1, 1]} : vector<8x128xf32> to vector<8x32xf32>
    %1123 = vector.extract_strided_slice %1121 {offsets = [0, 32], sizes = [8, 32], strides = [1, 1]} : vector<8x128xf32> to vector<8x32xf32>
    %1124 = vector.extract_strided_slice %1121 {offsets = [0, 64], sizes = [8, 32], strides = [1, 1]} : vector<8x128xf32> to vector<8x32xf32>
    %1125 = vector.extract_strided_slice %1121 {offsets = [0, 96], sizes = [8, 32], strides = [1, 1]} : vector<8x128xf32> to vector<8x32xf32>
    %1126 = arith.mulf %1123, %1061 : vector<8x32xf32>
    %1127 = arith.mulf %1122, %1125 : vector<8x32xf32>
    %1128 = arith.addf %1126, %1127 : vector<8x32xf32>
    %cst_267 = arith.constant dense<0.000000e+00> : vector<8xf32>
    %1129 = vector.multi_reduction <add>, %1128, %cst_267 [1] : vector<8x32xf32> to vector<8xf32>
    %1130 = vector.shape_cast %1129 : vector<8xf32> to vector<8x1xf32>
    %cst_268 = arith.constant 3.200000e+01 : f32
    %1131 = vector.broadcast %cst_268 : f32 to vector<8x1xf32>
    %1132 = arith.divf %1130, %1131 : vector<8x1xf32>
    %1133 = arith.mulf %1128, %1128 : vector<8x32xf32>
    %cst_269 = arith.constant dense<0.000000e+00> : vector<8xf32>
    %1134 = vector.multi_reduction <add>, %1133, %cst_269 [1] : vector<8x32xf32> to vector<8xf32>
    %1135 = vector.shape_cast %1134 : vector<8xf32> to vector<8x1xf32>
    %cst_270 = arith.constant 3.200000e+01 : f32
    %1136 = vector.broadcast %cst_270 : f32 to vector<8x1xf32>
    %1137 = arith.divf %1135, %1136 : vector<8x1xf32>
    %1138 = arith.mulf %1132, %1132 : vector<8x1xf32>
    %1139 = arith.subf %1137, %1138 : vector<8x1xf32>
    %1140 = vector.broadcast %1132 : vector<8x1xf32> to vector<8x32xf32>
    %1141 = arith.subf %1128, %1140 : vector<8x32xf32>
    %cst_271 = arith.constant 9.99999974E-6 : f32
    %1142 = vector.broadcast %cst_271 : f32 to vector<8x1xf32>
    %1143 = arith.addf %1139, %1142 : vector<8x1xf32>
    %1144 = math.rsqrt %1143 : vector<8x1xf32>
    %1145 = vector.broadcast %1144 : vector<8x1xf32> to vector<8x32xf32>
    %1146 = arith.mulf %1141, %1145 : vector<8x32xf32>
    %1147 = vector.broadcast %613 : vector<1x32xf32> to vector<8x32xf32>
    %1148 = arith.mulf %1146, %1147 : vector<8x32xf32>
    %1149 = vector.broadcast %614 : vector<1x32xf32> to vector<8x32xf32>
    %1150 = arith.addf %1148, %1149 : vector<8x32xf32>
    %1151 = math.tanh %1150 : vector<8x32xf32>
    %1152 = arith.mulf %1124, %1151 : vector<8x32xf32>
    %c8_i32_272 = arith.constant 8 : i32
    %c8 = arith.constant 8 : index
    %c0_273 = arith.constant 0 : index
    %1153 = vector.load %arg18[%c8, %c0_273] : memref<16x32xf32, #tpu.memory_space<vmem>>, vector<8x32xf32>
    tpu.vector_store %arg18[%c8, %c0_273], %1152 {strides = array<i32>} : memref<16x32xf32, #tpu.memory_space<vmem>>, vector<8x32xf32>,
    %c8_274 = arith.constant 8 : index
    %c0_275 = arith.constant 0 : index
    %1154 = vector.load %arg19[%c8_274, %c0_275] : memref<16x32xf32, #tpu.memory_space<vmem>>, vector<8x32xf32>
    tpu.vector_store %arg19[%c8_274, %c0_275], %1128 {strides = array<i32>} : memref<16x32xf32, #tpu.memory_space<vmem>>, vector<8x32xf32>,
    return
  }
  func.func @transform_0(%arg0: i32) -> (i32, i32) {
    %c0_i32 = arith.constant 0 : i32
    %c0_i32_0 = arith.constant 0 : i32
    %c0_i32_1 = arith.constant 0 : i32
    return %c0_i32, %c0_i32_0 : i32, i32
  }
  func.func @transform_1(%arg0: i32) -> (i32, i32) {
    %c0_i32 = arith.constant 0 : i32
    %c0_i32_0 = arith.constant 0 : i32
    %c0_i32_1 = arith.constant 0 : i32
    return %c0_i32, %c0_i32_0 : i32, i32
  }
  func.func @transform_2(%arg0: i32) -> (i32, i32) {
    %c0_i32 = arith.constant 0 : i32
    %c0_i32_0 = arith.constant 0 : i32
    %c0_i32_1 = arith.constant 0 : i32
    return %c0_i32, %c0_i32_0 : i32, i32
  }
  func.func @transform_3(%arg0: i32) -> (i32, i32) {
    %c0_i32 = arith.constant 0 : i32
    %c0_i32_0 = arith.constant 0 : i32
    %c0_i32_1 = arith.constant 0 : i32
    return %c0_i32, %c0_i32_0 : i32, i32
  }
  func.func @transform_4(%arg0: i32) -> (i32, i32) {
    %c0_i32 = arith.constant 0 : i32
    %c0_i32_0 = arith.constant 0 : i32
    %c0_i32_1 = arith.constant 0 : i32
    return %c0_i32, %c0_i32_0 : i32, i32
  }
  func.func @transform_5(%arg0: i32) -> (i32, i32) {
    %c0_i32 = arith.constant 0 : i32
    %c0_i32_0 = arith.constant 0 : i32
    %c0_i32_1 = arith.constant 0 : i32
    return %c0_i32, %c0_i32_0 : i32, i32
  }
  func.func @transform_6(%arg0: i32) -> (i32, i32) {
    %c0_i32 = arith.constant 0 : i32
    %c0_i32_0 = arith.constant 0 : i32
    %c0_i32_1 = arith.constant 0 : i32
    return %c0_i32, %c0_i32_0 : i32, i32
  }
  func.func @transform_7(%arg0: i32) -> (i32, i32) {
    %c0_i32 = arith.constant 0 : i32
    %c0_i32_0 = arith.constant 0 : i32
    %c0_i32_1 = arith.constant 0 : i32
    return %c0_i32, %c0_i32_0 : i32, i32
  }
  func.func @transform_8(%arg0: i32) -> (i32, i32) {
    %c0_i32 = arith.constant 0 : i32
    %c0_i32_0 = arith.constant 0 : i32
    %c0_i32_1 = arith.constant 0 : i32
    return %c0_i32, %c0_i32_0 : i32, i32
  }
  func.func @transform_9(%arg0: i32) -> (i32, i32) {
    %c0_i32 = arith.constant 0 : i32
    %c0_i32_0 = arith.constant 0 : i32
    %c0_i32_1 = arith.constant 0 : i32
    return %c0_i32, %c0_i32_0 : i32, i32
  }
  func.func @transform_10(%arg0: i32) -> (i32, i32) {
    %c0_i32 = arith.constant 0 : i32
    %c0_i32_0 = arith.constant 0 : i32
    %c0_i32_1 = arith.constant 0 : i32
    return %c0_i32, %c0_i32_0 : i32, i32
  }
  func.func @transform_11(%arg0: i32) -> (i32, i32) {
    %c0_i32 = arith.constant 0 : i32
    %c0_i32_0 = arith.constant 0 : i32
    %c0_i32_1 = arith.constant 0 : i32
    return %c0_i32, %c0_i32_0 : i32, i32
  }
  func.func @transform_12(%arg0: i32) -> (i32, i32) {
    %c0_i32 = arith.constant 0 : i32
    %c0_i32_0 = arith.constant 0 : i32
    %c0_i32_1 = arith.constant 0 : i32
    return %c0_i32, %c0_i32_0 : i32, i32
  }
  func.func @transform_13(%arg0: i32) -> (i32, i32) {
    %c0_i32 = arith.constant 0 : i32
    %c0_i32_0 = arith.constant 0 : i32
    %c0_i32_1 = arith.constant 0 : i32
    return %c0_i32, %c0_i32_0 : i32, i32
  }
  func.func @transform_14(%arg0: i32) -> (i32, i32) {
    %c0_i32 = arith.constant 0 : i32
    %c0_i32_0 = arith.constant 0 : i32
    %c0_i32_1 = arith.constant 0 : i32
    return %c0_i32, %c0_i32_0 : i32, i32
  }
  func.func @transform_15(%arg0: i32) -> (i32, i32) {
    %c0_i32 = arith.constant 0 : i32
    %c0_i32_0 = arith.constant 0 : i32
    %c0_i32_1 = arith.constant 0 : i32
    return %c0_i32, %c0_i32_0 : i32, i32
  }
  func.func @transform_16(%arg0: i32) -> (i32, i32) {
    %c0_i32 = arith.constant 0 : i32
    %c0_i32_0 = arith.constant 0 : i32
    %c0_i32_1 = arith.constant 0 : i32
    return %c0_i32, %c0_i32_0 : i32, i32
  }
  func.func @transform_17(%arg0: i32) -> (i32, i32) {
    %c0_i32 = arith.constant 0 : i32
    %c0_i32_0 = arith.constant 0 : i32
    %c0_i32_1 = arith.constant 0 : i32
    return %c0_i32, %c0_i32_0 : i32, i32
  }
  func.func @transform_18(%arg0: i32) -> (i32, i32) {
    %c0_i32 = arith.constant 0 : i32
    %c0_i32_0 = arith.constant 0 : i32
    %c0_i32_1 = arith.constant 0 : i32
    return %c0_i32, %c0_i32_0 : i32, i32
  }
}

</mosaic_0001>

<bundles_post_ra>
// kernel: silstm_forward.1
= control target key start
LH: loop header
LB: loop body
LE: loop exit
PB: predicated region body
PF: predicated region fallthrough
CT: control target
= control target key end

     0   :  { %v2706_v0 = vmov 0.0   ;;  %vm2707_vm0 = vmmov 0   ;;  %v2708_v3 = vmov 0   ;;  %s2710_s30 = smov 96   ;;  %vm87_vm1 = vcmask 261120   ;;  %s3564_s3 = inlined_call_operand.vmem [shape: bf16[32,128], index: 3, kind: input, shape index: {}]   ;;  %s3565_s4 = inlined_call_operand.vmem [shape: f32[1,128], index: 4, kind: input, shape index: {}]   ;;  %s3566_s0 = inlined_call_operand.vmem [shape: bf16[64,128], index: 0, kind: input, shape index: {}]   ;;  %s3567_s5 = inlined_call_operand.vmem [shape: f32[1,128], index: 5, kind: input, shape index: {}]   ;;  %s3568_s1 = inlined_call_operand.vmem [shape: f32[1,128], index: 1, kind: input, shape index: {}]   ;;  %s3569_s2 = inlined_call_operand.vmem [shape: f32[1,128], index: 2, kind: input, shape index: {}]   ;;  %s3570_s6 = inlined_call_operand.vmem [shape: f32[1,32], index: 6, kind: input, shape index: {}]   ;;  %s3571_s7 = inlined_call_operand.vmem [shape: f32[1,32], index: 7, kind: input, shape index: {}]   ;;  %s3572_s8 = inlined_call_operand.vmem [shape: bf16[32,128], index: 8, kind: input, shape index: {}]   ;;  %s3573_s12 = inlined_call_operand.vmem [shape: bf16[32,128], index: 12, kind: input, shape index: {}]   ;;  %s3574_s9 = inlined_call_operand.vmem [shape: f32[1,128], index: 9, kind: input, shape index: {}]   ;;  %s3575_s13 = inlined_call_operand.vmem [shape: f32[1,128], index: 13, kind: input, shape index: {}]   ;;  %s3576_s10 = inlined_call_operand.vmem [shape: f32[1,128], index: 10, kind: input, shape index: {}]   ;;  %s3577_s11 = inlined_call_operand.vmem [shape: f32[1,128], index: 11, kind: input, shape index: {}]   ;;  %s3578_s14 = inlined_call_operand.vmem [shape: f32[1,128], index: 14, kind: input, shape index: {}]   ;;  %s3579_s16 = inlined_call_operand.vmem [shape: f32[1,32], index: 16, kind: input, shape index: {}]   ;;  %s3580_s15 = inlined_call_operand.vmem [shape: f32[1,32], index: 15, kind: input, shape index: {}]   ;;  %s3581_s18 = inlined_call_operand.vmem [shape: f32[16,32], index: 18, kind: output, shape index: {1}]   ;;  %s3582_s17 = inlined_call_operand.vmem [shape: f32[16,32], index: 17, kind: output, shape index: {0}]  }
   0x1   :  { %3586 = sst [smem:[#allocation4_spill]] %s3564_s3  ;;  %2393 = vmatprep.subr.bf16.mxu0 %v2706_v0  ;;  %2397 = vmatprep.mubr.msk.bf16.mxu0 %vm2707_vm0, %v2706_v0  ;;  %v2850_v21 = vld [vmem:[%s3567_s5] ss:$0 sm:$0xff]  ;;  %vm237_vm2 = vcmask 257024  }
   0x2   :  { %3587 = sst [smem:[#allocation5_spill]] %s3565_s4  ;;  %2401 = vmatprep.subr.bf16.mxu1 %v2706_v0  ;;  %2405 = vmatprep.mubr.msk.bf16.mxu1 %vm2707_vm0, %v2706_v0  ;;  %v2856_v25 = vld [vmem:[%s3568_s1] ss:$0 sm:$0xff] }
   0x3   :  { %3588 = sst [smem:[#allocation6_spill]] %s3566_s0  ;;  %v2862_v29 = vld [vmem:[%s3569_s2] ss:$0 sm:$0xff] }
   0x4   :  { %s3589_s29 = sld [smem:[#allocation4_spill]]  ;;  %v2281_v42 = vld [vmem:[%s3570_s6] ss:$0 sm:$0xff]  ;;  %s2711_s6 = smov 64  }
   0x5   :  { %s3590_s20 = sld [smem:[#allocation5_spill]]  ;;  %v2282_v43 = vld [vmem:[%s3571_s7] ss:$0 sm:$0xff] }
   0x6   :  { %s3591_s0 = sld [smem:[#allocation6_spill]] }
   0xa   :  { %v2811_v1 = vld [vmem:[%s3589_s29 + $0x8] sm:$0xff]   ;;  %v2822_v2 = vld [vmem:[%s3589_s29] sm:$0xff]   ;;  %s2709_s29 = smov 32  }
   0xb   :  { %2394 = vmatpush3.bf16.msra.mxu0 %v2811_v1  ;;  %2402 = vmatpush3.bf16.msra.mxu1 %v2811_v1  ;;  %v2841_v4 = vld [vmem:[%s3590_s20] ss:$0 sm:$0xff] }
   0xc   :  { %2395 = vmatprep.subr.bf16.mxu0 %v2706_v0  ;;  %2403 = vmatprep.subr.bf16.mxu1 %v2706_v0  ;;  %v152_v18 = vld [vmem:[%s3591_s0] sm:$0xf] }
   0xd   :  { %v153_v23 = vunpack.c.l.bf16 %v152_v18 }
   0xf   :  { %2396 = vmatpush3.bf16.msra.mxu0 %v2822_v2  ;;  %2404 = vmatpush3.bf16.msra.mxu1 %v2822_v2 }
  0x10   :  { %2409 = vmatprep.subr.bf16.mxu0 %v2706_v0  ;;  %2417 = vmatprep.subr.bf16.mxu1 %v2706_v0 }
  0x12   :  { %2398 = vmatmul.mubr.bf16.vlgmr.msra.gmra.mxu0 %v2708_v3 }
  0x13   :  { %2410 = vmatpush3.bf16.msra.mxu0 %v2811_v1  ;;  %2413 = vmatprep.mubr.msk.bf16.mxu0 %vm2707_vm0, %v2706_v0 }
  0x14   :  { %2411 = vmatprep.subr.bf16.mxu0 %v2706_v0 }
  0x17   :  { %2412 = vmatpush3.bf16.msra.mxu0 %v2822_v2 }
  0x18   :  { %2425 = vmatprep.subr.bf16.mxu0 %v2706_v0 }
  0xd2   :  { %v125_v5 = vpop.f32.mrf.mxu0 }
  0xd3   :  { %v126_v6 = vadd.f32 %v2841_v4, %v125_v5 }
  0xd4   :  { %v2399_v7 = vpop.f32.mrf.mxu0 }
  0xd5   :  { %131 = vadd.xlane.f32.xlu0 %v126_v6  ;;  %v135_v9 = vmul.f32 %v126_v6, %v126_v6 }
  0xd6   :  { %v128_v8 = vpop.f32.mrf.mxu0 }
  0xd8   :  { %v2400_v10 = vpop.f32.mrf.mxu0 }
  0xd9   :  { %136 = vadd.xlane.f32.xlu0 %v135_v9 }
 0x15e   :  { %v132_v11 = vpop.xlane.xlu0 %131 }
 0x15f   :  { %v134_v12 = vmul.f32 0.0078125, %v132_v11 }
 0x161   :  { %v139_v14 = vmul.f32 %v134_v12, %v134_v12  ;;  %v141_v19 = vsub.f32 %v126_v6, %v134_v12 }
 0x162   :  { %v137_v13 = vpop.xlane.xlu0 %136 }
 0x163   :  { %v138_v15 = vmul.f32 0.0078125, %v137_v13 }
 0x165   :  { %v140_v16 = vsub.f32 %v138_v15, %v139_v14 }
 0x167   :  { %v142_v17 = vadd.f32 1e-05, %v140_v16 }
 0x169   :  { %2549 = vrsqrt.f32 %v142_v17  ;;  %v2908_v17 = vld [vmem:[%s3591_s0 + $0x4] sm:$0xff]  }
 0x176   :  { %v2550_v20 = vpop.eup %2549 }
 0x177   :  { %v144_v22 = vmul.f32 %v2550_v20, %v141_v19  ;;  %v300_v20 = vunpack.c.l.bf16 %v2908_v17 }
 0x179   :  { %v151_v24 = vmul.f32 %v2850_v21, %v144_v22 }
 0x17b   :  { %v154_v26 = vadd.f32 %v153_v23, %v151_v24 }
 0x17d   :  { %v161_v27 = vmul.f32 %v2856_v25, %v154_v26 }
 0x17f   :  { %2551 = vtanh.f32 %v161_v27 }
 0x18c   :  { %v2552_v28 = vpop.eup %2551 }
 0x18d   :  { %v163_v30 = vmul.f32 %v2552_v28, %v2856_v25 }
 0x18f   :  { %v170_v31 = vadd.f32 %v2862_v29, %v163_v30 }
 0x191   :  { %173 = vrot.lane.b32.xlu1 %v170_v31, %s2709_s29  ;;  %v171_v34 = vmul.f32 0.0, %v170_v31 }
 0x203   :  { %v174_v32 = vpop.permute.xlu1 %173 }
 0x204   :  { %v176_v33 = vmul.f32 %v174_v32, %v170_v31 }
 0x206   :  { %178 = vrot.lane.b32.xlu1 %v176_v33, %s2709_s29 }
 0x278   :  { %v179_v35 = vpop.permute.xlu1 %178 }
 0x279   :  { %v2868_v36 = vadd.f32 %v179_v35, %v171_v34 }
 0x27b   :  { %183 = vrot.lane.b32.xlu0 %v2868_v36, %s2710_s30  ;;  %v191_v37 = vmul.f32 %v2868_v36, %v2868_v36 }
 0x27d   :  { %193 = vrot.lane.b32.xlu1 %v191_v37, %s2710_s30 }
 0x2ed   :  { %v184_v38 = vpop.permute.xlu0 %183 }
 0x2ee   :  { %v186_v39 = vsel %vm87_vm1, %v184_v38, 0.0 }
 0x2ef   :  { %187 = vadd.xlane.f32.xlu1 %v186_v39  ;;  %v194_v40 = vpop.permute.xlu1 %193 }
 0x2f0   :  { %v196_v41 = vsel %vm87_vm1, %v194_v40, 0.0 }
 0x2f1   :  { %197 = vadd.xlane.f32.xlu0 %v196_v41 }
 0x300   :  { %211 = vrot.lane.b32.xlu1 %v2281_v42, %s2709_s29 }
 0x307   :  { %220 = vrot.lane.b32.xlu0 %v2282_v43, %s2709_s29 }
 0x378   :  { %v188_v44 = vpop.xlane.xlu1 %187 }
 0x379   :  { %v190_v45 = vmul.f32 0.03125, %v188_v44 }
 0x37a   :  { %v198_v46 = vpop.xlane.xlu0 %197 }
 0x37b   :  { %v200_v47 = vmul.f32 %v190_v45, %v190_v45  ;;  %v199_v48 = vmul.f32 0.03125, %v198_v46  ;;  %v202_v51 = vsub.f32 %v2868_v36, %v190_v45 }
 0x37c   :  { %v2886_v53 = vpop.permute.xlu1 %211 }
 0x37d   :  { %v201_v49 = vsub.f32 %v199_v48, %v200_v47 }
 0x37e   :  { %v2888_v55 = vpop.permute.xlu0 %220 }
 0x37f   :  { %v203_v50 = vadd.f32 1e-05, %v201_v49 }
 0x381   :  { %2553 = vrsqrt.f32 %v203_v50 }
 0x38e   :  { %v2554_v52 = vpop.eup %2553 }
 0x38f   :  { %v205_v54 = vmul.f32 %v2554_v52, %v202_v51 }
 0x391   :  { %v214_v56 = vmul.f32 %v2886_v53, %v205_v54 }
 0x393   :  { %v223_v57 = vadd.f32 %v2888_v55, %v214_v56 }
 0x395   :  { %2555 = vtanh.f32 %v223_v57 }
 0x3a2   :  { %v2556_v58 = vpop.eup %2555 }
 0x3a3   :  { %226 = vrot.lane.b32.xlu1 %v2556_v58, %s2709_s29 }
 0x415   :  { %v227_v59 = vpop.permute.xlu1 %226 }
 0x416   :  { %v229_v60 = vmul.f32 %v227_v59, %v170_v31 }
 0x418   :  { %v2893_v61 = vpack.c.bf16 %v229_v60, %v229_v60 }
 0x41a   :  { %239 = vrot.lane.b32.xlu1 %v2893_v61, %s2711_s6 }
 0x48c   :  { %v240_v62 = vpop.permute.xlu1 %239 }
 0x48d   :  { %2406 = vmatmul.mubr.msk.bf16.vlgmr.msra.gmra.mxu1 %vm87_vm1, %v240_v62 }
 0x48e   :  { %2418 = vmatpush3.bf16.msra.mxu1 %v2811_v1  ;;  %2421 = vmatprep.mubr.msk.bf16.mxu1 %vm2707_vm0, %v2706_v0 }
 0x48f   :  { %2419 = vmatprep.subr.bf16.mxu1 %v2706_v0 }
 0x492   :  { %2420 = vmatpush3.bf16.msra.mxu1 %v2822_v2 }
 0x493   :  { %2433 = vmatprep.subr.bf16.mxu1 %v2706_v0 }
 0x54d   :  { %v278_v63 = vpop.f32.mrf.mxu1 }
 0x54e   :  { %v279_v5 = vadd.f32 %v2841_v4, %v278_v63 }
 0x54f   :  { %v2407_v6 = vpop.f32.mrf.mxu1 }
 0x550   :  { %284 = vadd.xlane.f32.xlu1 %v279_v5  ;;  %v287_v7 = vmul.f32 %v279_v5, %v279_v5 }
 0x551   :  { %v281_v8 = vpop.f32.mrf.mxu1 }
 0x552   :  { %288 = vadd.xlane.f32.xlu0 %v287_v7 }
 0x553   :  { %v2408_v9 = vpop.f32.mrf.mxu1 }
 0x5d9   :  { %v285_v10 = vpop.xlane.xlu1 %284 }
 0x5da   :  { %v286_v11 = vmul.f32 0.0078125, %v285_v10 }
 0x5db   :  { %v289_v12 = vpop.xlane.xlu0 %288 }
 0x5dc   :  { %v291_v13 = vmul.f32 %v286_v11, %v286_v11  ;;  %v290_v14 = vmul.f32 0.0078125, %v289_v12  ;;  %v293_v18 = vsub.f32 %v279_v5, %v286_v11 }
 0x5de   :  { %v292_v15 = vsub.f32 %v290_v14, %v291_v13 }
 0x5e0   :  { %v294_v16 = vadd.f32 1e-05, %v292_v15 }
 0x5e2   :  { %2557 = vrsqrt.f32 %v294_v16 }
 0x5ef   :  { %v2558_v19 = vpop.eup %2557 }
 0x5f0   :  { %v296_v22 = vmul.f32 %v2558_v19, %v293_v18  ;;  %v418_v18 = vunpack.c.h.bf16 %v2908_v17 }
 0x5f2   :  { %v297_v23 = vmul.f32 %v2850_v21, %v296_v22 }
 0x5f4   :  { %v301_v24 = vadd.f32 %v300_v20, %v297_v23 }
 0x5f6   :  { %v302_v26 = vmul.f32 %v2856_v25, %v301_v24 }
 0x5f8   :  { %2559 = vtanh.f32 %v302_v26 }
 0x605   :  { %v2560_v27 = vpop.eup %2559 }
 0x606   :  { %v304_v28 = vmul.f32 %v2560_v27, %v2856_v25 }
 0x608   :  { %v305_v30 = vadd.f32 %v2862_v29, %v304_v28 }
 0x60a   :  { %308 = vrot.lane.b32.xlu1 %v305_v30, %s2709_s29  ;;  %v306_v33 = vmul.f32 %v305_v30, %v2868_v36 }
 0x67c   :  { %v309_v31 = vpop.permute.xlu1 %308 }
 0x67d   :  { %v311_v32 = vmul.f32 %v309_v31, %v305_v30 }
 0x67f   :  { %313 = vrot.lane.b32.xlu0 %v311_v32, %s2709_s29 }
 0x6f1   :  { %v314_v34 = vpop.permute.xlu0 %313 }
 0x6f2   :  { %v2918_v35 = vadd.f32 %v314_v34, %v306_v33 }
 0x6f4   :  { %318 = vrot.lane.b32.xlu1 %v2918_v35, %s2710_s30  ;;  %v325_v37 = vmul.f32 %v2918_v35, %v2918_v35 }
 0x6f8   :  { %327 = vrot.lane.b32.xlu1 %v325_v37, %s2710_s30 }
 0x766   :  { %v319_v38 = vpop.permute.xlu1 %318 }
 0x767   :  { %v321_v39 = vsel %vm87_vm1, %v319_v38, 0.0 }
 0x768   :  { %322 = vadd.xlane.f32.xlu1 %v321_v39 }
 0x76a   :  { %v328_v40 = vpop.permute.xlu1 %327 }
 0x76b   :  { %v330_v41 = vsel %vm87_vm1, %v328_v40, 0.0 }
 0x76c   :  { %331 = vadd.xlane.f32.xlu0 %v330_v41 }
 0x7f1   :  { %v323_v36 = vpop.xlane.xlu1 %322 }
 0x7f2   :  { %v324_v42 = vmul.f32 0.03125, %v323_v36 }
 0x7f4   :  { %v334_v44 = vmul.f32 %v324_v42, %v324_v42  ;;  %v336_v48 = vsub.f32 %v2918_v35, %v324_v42 }
 0x7f5   :  { %v332_v43 = vpop.xlane.xlu0 %331 }
 0x7f6   :  { %v333_v45 = vmul.f32 0.03125, %v332_v43 }
 0x7f8   :  { %v335_v46 = vsub.f32 %v333_v45, %v334_v44 }
 0x7fa   :  { %v337_v47 = vadd.f32 1e-05, %v335_v46 }
 0x7fc   :  { %2561 = vrsqrt.f32 %v337_v47 }
 0x809   :  { %v2562_v49 = vpop.eup %2561 }
 0x80a   :  { %v339_v50 = vmul.f32 %v2562_v49, %v336_v48 }
 0x80c   :  { %v340_v51 = vmul.f32 %v339_v50, %v2886_v53 }
 0x80e   :  { %v341_v52 = vadd.f32 %v340_v51, %v2888_v55 }
 0x810   :  { %2563 = vtanh.f32 %v341_v52 }
 0x81d   :  { %v2564_v54 = vpop.eup %2563 }
 0x81e   :  { %344 = vrot.lane.b32.xlu0 %v2564_v54, %s2709_s29 }
 0x890   :  { %v345_v56 = vpop.permute.xlu0 %344 }
 0x891   :  { %v347_v57 = vmul.f32 %v345_v56, %v305_v30 }
 0x893   :  { %v2931_v58 = vpack.c.bf16 %v347_v57, %v347_v57 }
 0x895   :  { %357 = vrot.lane.b32.xlu1 %v2931_v58, %s2711_s6 }
 0x907   :  { %v358_v59 = vpop.permute.xlu1 %357 }
 0x908   :  { %2414 = vmatmul.mubr.msk.bf16.vlgmr.msra.gmra.mxu0 %vm87_vm1, %v358_v59 }
 0x909   :  { %2426 = vmatpush3.bf16.msra.mxu0 %v2811_v1  ;;  %2429 = vmatprep.mubr.msk.bf16.mxu0 %vm2707_vm0, %v2706_v0 }
 0x90a   :  { %2427 = vmatprep.subr.bf16.mxu0 %v2706_v0 }
 0x90d   :  { %2428 = vmatpush3.bf16.msra.mxu0 %v2822_v2 }
 0x90e   :  { %2441 = vmatprep.subr.bf16.mxu0 %v2706_v0 }
 0x9c8   :  { %v396_v60 = vpop.f32.mrf.mxu0 }
 0x9c9   :  { %v397_v62 = vadd.f32 %v2841_v4, %v396_v60 }
 0x9ca   :  { %v2415_v63 = vpop.f32.mrf.mxu0 }
 0x9cb   :  { %402 = vadd.xlane.f32.xlu1 %v397_v62  ;;  %v405_v5 = vmul.f32 %v397_v62, %v397_v62 }
 0x9cc   :  { %v399_v6 = vpop.f32.mrf.mxu0 }
 0x9cd   :  { %406 = vadd.xlane.f32.xlu0 %v405_v5 }
 0x9ce   :  { %v2416_v7 = vpop.f32.mrf.mxu0 }
 0xa54   :  { %v403_v8 = vpop.xlane.xlu1 %402 }
 0xa55   :  { %v404_v9 = vmul.f32 0.0078125, %v403_v8 }
 0xa56   :  { %v407_v10 = vpop.xlane.xlu0 %406 }
 0xa57   :  { %v409_v11 = vmul.f32 %v404_v9, %v404_v9  ;;  %v408_v12 = vmul.f32 0.0078125, %v407_v10  ;;  %v411_v15 = vsub.f32 %v397_v62, %v404_v9 }
 0xa59   :  { %v410_v13 = vsub.f32 %v408_v12, %v409_v11 }
 0xa5b   :  { %v412_v14 = vadd.f32 1e-05, %v410_v13  ;;  %v2979_v13 = vld [vmem:[%s3591_s0 + $0xc] sm:$0xff]  }
 0xa5d   :  { %2565 = vrsqrt.f32 %v412_v14 }
 0xa6a   :  { %v2566_v16 = vpop.eup %2565 }
 0xa6b   :  { %v414_v19 = vmul.f32 %v2566_v16, %v411_v15  ;;  %v536_v16 = vunpack.c.l.bf16 %v2979_v13 }
 0xa6d   :  { %v415_v20 = vmul.f32 %v2850_v21, %v414_v19 }
 0xa6f   :  { %v419_v22 = vadd.f32 %v418_v18, %v415_v20 }
 0xa71   :  { %v420_v23 = vmul.f32 %v2856_v25, %v419_v22 }
 0xa73   :  { %2567 = vtanh.f32 %v420_v23 }
 0xa80   :  { %v2568_v24 = vpop.eup %2567 }
 0xa81   :  { %v422_v26 = vmul.f32 %v2568_v24, %v2856_v25 }
 0xa83   :  { %v423_v27 = vadd.f32 %v2862_v29, %v422_v26 }
 0xa85   :  { %426 = vrot.lane.b32.xlu0 %v423_v27, %s2709_s29  ;;  %v424_v17 = vmul.f32 %v423_v27, %v2918_v35 }
 0xaf7   :  { %v427_v28 = vpop.permute.xlu0 %426 }
 0xaf8   :  { %v429_v30 = vmul.f32 %v427_v28, %v423_v27 }
 0xafa   :  { %431 = vrot.lane.b32.xlu1 %v429_v30, %s2709_s29 }
 0xb6c   :  { %v432_v31 = vpop.permute.xlu1 %431 }
 0xb6d   :  { %v2951_v32 = vadd.f32 %v432_v31, %v424_v17 }
 0xb6f   :  { %436 = vrot.lane.b32.xlu1 %v2951_v32, %s2710_s30  ;;  %v443_v33 = vmul.f32 %v2951_v32, %v2951_v32 }
 0xb71   :  { %445 = vrot.lane.b32.xlu0 %v443_v33, %s2710_s30 }
 0xbe1   :  { %v437_v34 = vpop.permute.xlu1 %436 }
 0xbe2   :  { %v439_v37 = vsel %vm87_vm1, %v437_v34, 0.0 }
 0xbe3   :  { %440 = vadd.xlane.f32.xlu1 %v439_v37  ;;  %v446_v38 = vpop.permute.xlu0 %445 }
 0xbe4   :  { %v448_v39 = vsel %vm87_vm1, %v446_v38, 0.0 }
 0xbe5   :  { %449 = vadd.xlane.f32.xlu0 %v448_v39 }
 0xc6c   :  { %v441_v35 = vpop.xlane.xlu1 %440 }
 0xc6d   :  { %v442_v40 = vmul.f32 0.03125, %v441_v35 }
 0xc6e   :  { %v450_v41 = vpop.xlane.xlu0 %449 }
 0xc6f   :  { %v452_v36 = vmul.f32 %v442_v40, %v442_v40  ;;  %v451_v42 = vmul.f32 0.03125, %v450_v41  ;;  %v454_v45 = vsub.f32 %v2951_v32, %v442_v40 }
 0xc71   :  { %v453_v43 = vsub.f32 %v451_v42, %v452_v36 }
 0xc73   :  { %v455_v44 = vadd.f32 1e-05, %v453_v43 }
 0xc75   :  { %2569 = vrsqrt.f32 %v455_v44 }
 0xc82   :  { %v2570_v46 = vpop.eup %2569 }
 0xc83   :  { %v457_v47 = vmul.f32 %v2570_v46, %v454_v45 }
 0xc85   :  { %v458_v48 = vmul.f32 %v457_v47, %v2886_v53 }
 0xc87   :  { %v459_v49 = vadd.f32 %v458_v48, %v2888_v55 }
 0xc89   :  { %2571 = vtanh.f32 %v459_v49 }
 0xc96   :  { %v2572_v50 = vpop.eup %2571 }
 0xc97   :  { %462 = vrot.lane.b32.xlu0 %v2572_v50, %s2709_s29 }
 0xd09   :  { %v463_v51 = vpop.permute.xlu0 %462 }
 0xd0a   :  { %v465_v52 = vmul.f32 %v463_v51, %v423_v27 }
 0xd0c   :  { %v2964_v54 = vpack.c.bf16 %v465_v52, %v465_v52 }
 0xd0e   :  { %475 = vrot.lane.b32.xlu1 %v2964_v54, %s2711_s6 }
 0xd80   :  { %v476_v56 = vpop.permute.xlu1 %475 }
 0xd81   :  { %2422 = vmatmul.mubr.msk.bf16.vlgmr.msra.gmra.mxu1 %vm87_vm1, %v476_v56 }
 0xd82   :  { %2434 = vmatpush3.bf16.msra.mxu1 %v2811_v1  ;;  %2437 = vmatprep.mubr.msk.bf16.mxu1 %vm2707_vm0, %v2706_v0 }
 0xd83   :  { %2435 = vmatprep.subr.bf16.mxu1 %v2706_v0 }
 0xd86   :  { %2436 = vmatpush3.bf16.msra.mxu1 %v2822_v2 }
 0xd87   :  { %2449 = vmatprep.subr.bf16.mxu1 %v2706_v0 }
 0xe41   :  { %v514_v57 = vpop.f32.mrf.mxu1 }
 0xe42   :  { %v515_v59 = vadd.f32 %v2841_v4, %v514_v57 }
 0xe43   :  { %v2423_v60 = vpop.f32.mrf.mxu1 }
 0xe44   :  { %520 = vadd.xlane.f32.xlu1 %v515_v59  ;;  %v523_v62 = vmul.f32 %v515_v59, %v515_v59 }
 0xe45   :  { %v517_v63 = vpop.f32.mrf.mxu1 }
 0xe46   :  { %524 = vadd.xlane.f32.xlu0 %v523_v62 }
 0xe47   :  { %v2424_v5 = vpop.f32.mrf.mxu1 }
 0xecd   :  { %v521_v6 = vpop.xlane.xlu1 %520 }
 0xece   :  { %v522_v7 = vmul.f32 0.0078125, %v521_v6 }
 0xecf   :  { %v525_v8 = vpop.xlane.xlu0 %524 }
 0xed0   :  { %v527_v9 = vmul.f32 %v522_v7, %v522_v7  ;;  %v526_v10 = vmul.f32 0.0078125, %v525_v8  ;;  %v529_v14 = vsub.f32 %v515_v59, %v522_v7 }
 0xed2   :  { %v528_v11 = vsub.f32 %v526_v10, %v527_v9 }
 0xed4   :  { %v530_v12 = vadd.f32 1e-05, %v528_v11 }
 0xed6   :  { %2573 = vrsqrt.f32 %v530_v12 }
 0xee3   :  { %v2574_v15 = vpop.eup %2573 }
 0xee4   :  { %v532_v18 = vmul.f32 %v2574_v15, %v529_v14 }
 0xee6   :  { %v533_v19 = vmul.f32 %v2850_v21, %v532_v18 }
 0xee8   :  { %v537_v20 = vadd.f32 %v536_v16, %v533_v19  ;;  %v654_v16 = vunpack.c.h.bf16 %v2979_v13 }
 0xeea   :  { %v538_v22 = vmul.f32 %v2856_v25, %v537_v20 }
 0xeec   :  { %2575 = vtanh.f32 %v538_v22 }
 0xef9   :  { %v2576_v23 = vpop.eup %2575 }
 0xefa   :  { %v540_v24 = vmul.f32 %v2576_v23, %v2856_v25 }
 0xefc   :  { %v541_v26 = vadd.f32 %v2862_v29, %v540_v24 }
 0xefe   :  { %544 = vrot.lane.b32.xlu0 %v541_v26, %s2709_s29  ;;  %v542_v30 = vmul.f32 %v541_v26, %v2951_v32 }
 0xf70   :  { %v545_v27 = vpop.permute.xlu0 %544 }
 0xf71   :  { %v547_v28 = vmul.f32 %v545_v27, %v541_v26 }
 0xf73   :  { %549 = vrot.lane.b32.xlu1 %v547_v28, %s2709_s29 }
 0xfe5   :  { %v550_v17 = vpop.permute.xlu1 %549 }
 0xfe6   :  { %v2989_v31 = vadd.f32 %v550_v17, %v542_v30 }
 0xfe8   :  { %554 = vrot.lane.b32.xlu1 %v2989_v31, %s2710_s30  ;;  %v561_v33 = vmul.f32 %v2989_v31, %v2989_v31 }
 0xfea   :  { %563 = vrot.lane.b32.xlu0 %v561_v33, %s2710_s30 }
0x105a   :  { %v555_v34 = vpop.permute.xlu1 %554 }
0x105b   :  { %v557_v37 = vsel %vm87_vm1, %v555_v34, 0.0 }
0x105c   :  { %558 = vadd.xlane.f32.xlu1 %v557_v37  ;;  %v564_v38 = vpop.permute.xlu0 %563 }
0x105d   :  { %v566_v39 = vsel %vm87_vm1, %v564_v38, 0.0 }
0x105e   :  { %567 = vadd.xlane.f32.xlu0 %v566_v39 }
0x10e5   :  { %v559_v32 = vpop.xlane.xlu1 %558 }
0x10e6   :  { %v560_v35 = vmul.f32 0.03125, %v559_v32 }
0x10e7   :  { %v568_v40 = vpop.xlane.xlu0 %567 }
0x10e8   :  { %v570_v41 = vmul.f32 %v560_v35, %v560_v35  ;;  %v569_v36 = vmul.f32 0.03125, %v568_v40  ;;  %v572_v44 = vsub.f32 %v2989_v31, %v560_v35 }
0x10ea   :  { %v571_v42 = vsub.f32 %v569_v36, %v570_v41 }
0x10ec   :  { %v573_v43 = vadd.f32 1e-05, %v571_v42 }
0x10ee   :  { %2577 = vrsqrt.f32 %v573_v43 }
0x10fb   :  { %v2578_v45 = vpop.eup %2577 }
0x10fc   :  { %v575_v46 = vmul.f32 %v2578_v45, %v572_v44 }
0x10fe   :  { %v576_v47 = vmul.f32 %v575_v46, %v2886_v53 }
0x1100   :  { %v577_v48 = vadd.f32 %v576_v47, %v2888_v55 }
0x1102   :  { %2579 = vtanh.f32 %v577_v48 }
0x110f   :  { %v2580_v49 = vpop.eup %2579 }
0x1110   :  { %580 = vrot.lane.b32.xlu0 %v2580_v49, %s2709_s29 }
0x1182   :  { %v581_v50 = vpop.permute.xlu0 %580 }
0x1183   :  { %v583_v51 = vmul.f32 %v581_v50, %v541_v26 }
0x1185   :  { %v3002_v52 = vpack.c.bf16 %v583_v51, %v583_v51 }
0x1187   :  { %593 = vrot.lane.b32.xlu1 %v3002_v52, %s2711_s6 }
0x11f9   :  { %v594_v56 = vpop.permute.xlu1 %593 }
0x11fa   :  { %2430 = vmatmul.mubr.msk.bf16.vlgmr.msra.gmra.mxu0 %vm87_vm1, %v594_v56 }
0x11fb   :  { %2442 = vmatpush3.bf16.msra.mxu0 %v2811_v1  ;;  %2445 = vmatprep.mubr.msk.bf16.mxu0 %vm2707_vm0, %v2706_v0 }
0x11fc   :  { %2443 = vmatprep.subr.bf16.mxu0 %v2706_v0 }
0x11ff   :  { %2444 = vmatpush3.bf16.msra.mxu0 %v2822_v2 }
0x12ba   :  { %v632_v57 = vpop.f32.mrf.mxu0 }
0x12bb   :  { %v633_v59 = vadd.f32 %v2841_v4, %v632_v57 }
0x12bc   :  { %v2431_v60 = vpop.f32.mrf.mxu0 }
0x12bd   :  { %638 = vadd.xlane.f32.xlu1 %v633_v59  ;;  %v641_v62 = vmul.f32 %v633_v59, %v633_v59 }
0x12be   :  { %v635_v63 = vpop.f32.mrf.mxu0 }
0x12bf   :  { %642 = vadd.xlane.f32.xlu0 %v641_v62 }
0x12c0   :  { %v2432_v5 = vpop.f32.mrf.mxu0 }
0x1346   :  { %v639_v6 = vpop.xlane.xlu1 %638 }
0x1347   :  { %v640_v7 = vmul.f32 0.0078125, %v639_v6 }
0x1348   :  { %v643_v8 = vpop.xlane.xlu0 %642 }
0x1349   :  { %v645_v9 = vmul.f32 %v640_v7, %v640_v7  ;;  %v644_v10 = vmul.f32 0.0078125, %v643_v8  ;;  %v647_v14 = vsub.f32 %v633_v59, %v640_v7 }
0x134b   :  { %v646_v11 = vsub.f32 %v644_v10, %v645_v9 }
0x134d   :  { %v648_v12 = vadd.f32 1e-05, %v646_v11 }
0x134f   :  { %2581 = vrsqrt.f32 %v648_v12 }
0x135c   :  { %v2582_v15 = vpop.eup %2581 }
0x135d   :  { %v650_v18 = vmul.f32 %v2582_v15, %v647_v14 }
0x135f   :  { %v651_v19 = vmul.f32 %v2850_v21, %v650_v18 }
0x1361   :  { %v655_v20 = vadd.f32 %v654_v16, %v651_v19 }
0x1363   :  { %v656_v22 = vmul.f32 %v2856_v25, %v655_v20 }
0x1365   :  { %2583 = vtanh.f32 %v656_v22 }
0x1372   :  { %v2584_v23 = vpop.eup %2583 }
0x1373   :  { %v658_v24 = vmul.f32 %v2584_v23, %v2856_v25 }
0x1375   :  { %v659_v26 = vadd.f32 %v2862_v29, %v658_v24 }
0x1377   :  { %662 = vrot.lane.b32.xlu0 %v659_v26, %s2709_s29  ;;  %v660_v13 = vmul.f32 %v659_v26, %v2989_v31 }
0x13e9   :  { %v663_v27 = vpop.permute.xlu0 %662 }
0x13ea   :  { %v665_v28 = vmul.f32 %v663_v27, %v659_v26 }
0x13ec   :  { %667 = vrot.lane.b32.xlu1 %v665_v28, %s2709_s29 }
0x145e   :  { %v668_v30 = vpop.permute.xlu1 %667 }
0x145f   :  { %v3021_v17 = vadd.f32 %v668_v30, %v660_v13 }
0x1461   :  { %672 = vrot.lane.b32.xlu1 %v3021_v17, %s2710_s30  ;;  %v679_v33 = vmul.f32 %v3021_v17, %v3021_v17 }
0x1463   :  { %681 = vrot.lane.b32.xlu0 %v679_v33, %s2710_s30 }
0x14d3   :  { %v673_v34 = vpop.permute.xlu1 %672 }
0x14d4   :  { %v675_v37 = vsel %vm87_vm1, %v673_v34, 0.0 }
0x14d5   :  { %676 = vadd.xlane.f32.xlu1 %v675_v37  ;;  %v682_v38 = vpop.permute.xlu0 %681 }
0x14d6   :  { %v684_v39 = vsel %vm87_vm1, %v682_v38, 0.0 }
0x14d7   :  { %685 = vadd.xlane.f32.xlu0 %v684_v39 }
0x155e   :  { %v677_v31 = vpop.xlane.xlu1 %676 }
0x155f   :  { %v678_v32 = vmul.f32 0.03125, %v677_v31 }
0x1560   :  { %v686_v35 = vpop.xlane.xlu0 %685 }
0x1561   :  { %v688_v40 = vmul.f32 %v678_v32, %v678_v32  ;;  %v687_v41 = vmul.f32 0.03125, %v686_v35  ;;  %v690_v43 = vsub.f32 %v3021_v17, %v678_v32 }
0x1563   :  { %v689_v36 = vsub.f32 %v687_v41, %v688_v40 }
0x1565   :  { %v691_v42 = vadd.f32 1e-05, %v689_v36 }
0x1567   :  { %2585 = vrsqrt.f32 %v691_v42 }
0x1574   :  { %v2586_v44 = vpop.eup %2585 }
0x1575   :  { %v693_v45 = vmul.f32 %v2586_v44, %v690_v43 }
0x1577   :  { %v694_v46 = vmul.f32 %v693_v45, %v2886_v53 }
0x1579   :  { %v695_v47 = vadd.f32 %v694_v46, %v2888_v55 }
0x157b   :  { %2587 = vtanh.f32 %v695_v47 }
0x1588   :  { %v2588_v48 = vpop.eup %2587 }
0x1589   :  { %698 = vrot.lane.b32.xlu0 %v2588_v48, %s2709_s29 }
0x15fb   :  { %v699_v49 = vpop.permute.xlu0 %698 }
0x15fc   :  { %v701_v50 = vmul.f32 %v699_v49, %v659_v26 }
0x15fe   :  { %v3034_v51 = vpack.c.bf16 %v701_v50, %v701_v50 }
0x1600   :  { %711 = vrot.lane.b32.xlu1 %v3034_v51, %s2711_s6 }
0x1672   :  { %v712_v56 = vpop.permute.xlu1 %711 }
0x1673   :  { %2438 = vmatmul.mubr.msk.bf16.vlgmr.msra.gmra.mxu1 %vm87_vm1, %v712_v56 }
0x1674   :  { %2450 = vmatpush3.bf16.msra.mxu1 %v2811_v1  ;;  %2453 = vmatprep.mubr.msk.bf16.mxu1 %vm2707_vm0, %v2706_v0 }
0x1675   :  { %2451 = vmatprep.subr.bf16.mxu1 %v2706_v0 }
0x1678   :  { %2452 = vmatpush3.bf16.msra.mxu1 %v2822_v2  ;;  %v3049_v2 = vld [vmem:[%s3591_s0 + $0x14] sm:$0xff]  }
0x1679   :  { %2469 = vmatprep.subr.bf16.mxu1 %v2706_v0  ;;  %v772_v15 = vunpack.c.l.bf16 %v3049_v2 }
0x1733   :  { %v750_v57 = vpop.f32.mrf.mxu1 }
0x1734   :  { %v751_v59 = vadd.f32 %v2841_v4, %v750_v57 }
0x1735   :  { %v2439_v60 = vpop.f32.mrf.mxu1 }
0x1736   :  { %756 = vadd.xlane.f32.xlu1 %v751_v59  ;;  %v759_v62 = vmul.f32 %v751_v59, %v751_v59 }
0x1737   :  { %v753_v63 = vpop.f32.mrf.mxu1 }
0x1738   :  { %760 = vadd.xlane.f32.xlu0 %v759_v62 }
0x1739   :  { %v2440_v5 = vpop.f32.mrf.mxu1 }
0x17bf   :  { %v757_v6 = vpop.xlane.xlu1 %756 }
0x17c0   :  { %v758_v1 = vmul.f32 0.0078125, %v757_v6 }
0x17c1   :  { %v761_v7 = vpop.xlane.xlu0 %760 }
0x17c2   :  { %v763_v8 = vmul.f32 %v758_v1, %v758_v1  ;;  %v762_v9 = vmul.f32 0.0078125, %v761_v7  ;;  %v765_v12 = vsub.f32 %v751_v59, %v758_v1 }
0x17c4   :  { %v764_v10 = vsub.f32 %v762_v9, %v763_v8 }
0x17c6   :  { %v766_v11 = vadd.f32 1e-05, %v764_v10 }
0x17c8   :  { %2589 = vrsqrt.f32 %v766_v11 }
0x17d5   :  { %v2590_v14 = vpop.eup %2589 }
0x17d6   :  { %v768_v16 = vmul.f32 %v2590_v14, %v765_v12 }
0x17d8   :  { %v769_v18 = vmul.f32 %v2850_v21, %v768_v16 }
0x17da   :  { %v773_v19 = vadd.f32 %v772_v15, %v769_v18  ;;  %v890_v15 = vunpack.c.h.bf16 %v3049_v2 }
0x17dc   :  { %v774_v20 = vmul.f32 %v2856_v25, %v773_v19 }
0x17de   :  { %2591 = vtanh.f32 %v774_v20 }
0x17eb   :  { %v2592_v22 = vpop.eup %2591 }
0x17ec   :  { %v776_v23 = vmul.f32 %v2592_v22, %v2856_v25 }
0x17ee   :  { %v777_v24 = vadd.f32 %v2862_v29, %v776_v23 }
0x17f0   :  { %780 = vrot.lane.b32.xlu0 %v777_v24, %s2709_s29  ;;  %v778_v28 = vmul.f32 %v777_v24, %v3021_v17 }
0x1862   :  { %v781_v26 = vpop.permute.xlu0 %780 }
0x1863   :  { %v783_v27 = vmul.f32 %v781_v26, %v777_v24 }
0x1865   :  { %785 = vrot.lane.b32.xlu1 %v783_v27, %s2709_s29 }
0x18d7   :  { %v786_v13 = vpop.permute.xlu1 %785 }
0x18d8   :  { %v3059_v30 = vadd.f32 %v786_v13, %v778_v28 }
0x18da   :  { %790 = vrot.lane.b32.xlu1 %v3059_v30, %s2710_s30  ;;  %v797_v33 = vmul.f32 %v3059_v30, %v3059_v30 }
0x18dc   :  { %799 = vrot.lane.b32.xlu0 %v797_v33, %s2710_s30 }
0x194c   :  { %v791_v34 = vpop.permute.xlu1 %790 }
0x194d   :  { %v793_v37 = vsel %vm87_vm1, %v791_v34, 0.0 }
0x194e   :  { %794 = vadd.xlane.f32.xlu1 %v793_v37  ;;  %v800_v38 = vpop.permute.xlu0 %799 }
0x194f   :  { %v802_v39 = vsel %vm87_vm1, %v800_v38, 0.0 }
0x1950   :  { %803 = vadd.xlane.f32.xlu0 %v802_v39 }
0x19d7   :  { %v795_v17 = vpop.xlane.xlu1 %794 }
0x19d8   :  { %v796_v31 = vmul.f32 0.03125, %v795_v17 }
0x19d9   :  { %v804_v32 = vpop.xlane.xlu0 %803 }
0x19da   :  { %v806_v35 = vmul.f32 %v796_v31, %v796_v31  ;;  %v805_v40 = vmul.f32 0.03125, %v804_v32  ;;  %v808_v42 = vsub.f32 %v3059_v30, %v796_v31 }
0x19dc   :  { %v807_v41 = vsub.f32 %v805_v40, %v806_v35 }
0x19de   :  { %v809_v36 = vadd.f32 1e-05, %v807_v41 }
0x19e0   :  { %2593 = vrsqrt.f32 %v809_v36 }
0x19ed   :  { %v2594_v43 = vpop.eup %2593 }
0x19ee   :  { %v811_v44 = vmul.f32 %v2594_v43, %v808_v42  ;;  %v2542_v43 = vld [vmem:[%s3572_s8 + $0x8] sm:$0xff]  }
0x19ef   :  { %2457 = vmatprep.subr.bf16.mxu0 %v2542_v43 }
0x19f0   :  { %v812_v45 = vmul.f32 %v811_v44, %v2886_v53  ;;  %v2543_v44 = vld [vmem:[%s3572_s8] sm:$0xff]  }
0x19f2   :  { %v813_v46 = vadd.f32 %v812_v45, %v2888_v55 }
0x19f4   :  { %2595 = vtanh.f32 %v813_v46 }
0x1a01   :  { %v2596_v47 = vpop.eup %2595 }
0x1a02   :  { %816 = vrot.lane.b32.xlu0 %v2596_v47, %s2709_s29 }
0x1a74   :  { %v817_v48 = vpop.permute.xlu0 %816 }
0x1a75   :  { %v819_v49 = vmul.f32 %v817_v48, %v777_v24 }
0x1a77   :  { %v3072_v50 = vpack.c.bf16 %v819_v49, %v819_v49 }
0x1a79   :  { %829 = vrot.lane.b32.xlu1 %v3072_v50, %s2711_s6 }
0x1aeb   :  { %v830_v56 = vpop.permute.xlu1 %829 }
0x1aec   :  { %2446 = vmatmul.mubr.msk.bf16.vlgmr.msra.gmra.mxu0 %vm87_vm1, %v830_v56 }
0x1aed   :  { %2458 = vmatpush3.bf16.msra.mxu0 %v2542_v43  ;;  %v3196_v43 = vld [vmem:[%s3569_s2] ss:$0 sm:$0xff] }
0x1aee   :  { %2459 = vmatprep.subr.bf16.mxu0 %v2543_v44 }
0x1af1   :  { %2460 = vmatpush3.bf16.msra.mxu0 %v2543_v44 }
0x1af2   :  { %2485 = vmatprep.subr.bf16.mxu0 %v2706_v0 }
0x1bac   :  { %v868_v57 = vpop.f32.mrf.mxu0 }
0x1bad   :  { %v869_v59 = vadd.f32 %v2841_v4, %v868_v57  ;;  %v3126_v57 = vld [vmem:[%s3573_s12 + $0x8] sm:$0xff]  }
0x1bae   :  { %v2447_v60 = vpop.f32.mrf.mxu0 }
0x1baf   :  { %874 = vadd.xlane.f32.xlu1 %v869_v59  ;;  %v877_v62 = vmul.f32 %v869_v59, %v869_v59 }
0x1bb0   :  { %v871_v63 = vpop.f32.mrf.mxu0 }
0x1bb1   :  { %878 = vadd.xlane.f32.xlu0 %v877_v62  ;;  %v3157_v62 = vld [vmem:[%s3574_s9] ss:$0 sm:$0xff] }
0x1bb2   :  { %v2448_v5 = vpop.f32.mrf.mxu0 }
0x1c38   :  { %v875_v6 = vpop.xlane.xlu1 %874 }
0x1c39   :  { %v876_v1 = vmul.f32 0.0078125, %v875_v6 }
0x1c3a   :  { %v879_v7 = vpop.xlane.xlu0 %878 }
0x1c3b   :  { %v881_v8 = vmul.f32 %v876_v1, %v876_v1  ;;  %v880_v9 = vmul.f32 0.0078125, %v879_v7  ;;  %v883_v12 = vsub.f32 %v869_v59, %v876_v1 }
0x1c3d   :  { %v882_v10 = vsub.f32 %v880_v9, %v881_v8  ;;  %v3165_v9 = vld [vmem:[%s3575_s13] ss:$0 sm:$0xff] }
0x1c3f   :  { %v884_v11 = vadd.f32 1e-05, %v882_v10 }
0x1c41   :  { %2597 = vrsqrt.f32 %v884_v11 }
0x1c4e   :  { %v2598_v14 = vpop.eup %2597 }
0x1c4f   :  { %v886_v16 = vmul.f32 %v2598_v14, %v883_v12 }
0x1c51   :  { %v887_v4 = vmul.f32 %v2850_v21, %v886_v16 }
0x1c53   :  { %v891_v18 = vadd.f32 %v890_v15, %v887_v4 }
0x1c55   :  { %v892_v19 = vmul.f32 %v2856_v25, %v891_v18 }
0x1c57   :  { %2599 = vtanh.f32 %v892_v19 }
0x1c64   :  { %v2600_v20 = vpop.eup %2599 }
0x1c65   :  { %v894_v22 = vmul.f32 %v2600_v20, %v2856_v25 }
0x1c67   :  { %v895_v23 = vadd.f32 %v2862_v29, %v894_v22 }
0x1c69   :  { %898 = vrot.lane.b32.xlu0 %v895_v23, %s2709_s29  ;;  %v896_v2 = vmul.f32 %v895_v23, %v3059_v30 }
0x1cdb   :  { %v899_v24 = vpop.permute.xlu0 %898 }
0x1cdc   :  { %v901_v26 = vmul.f32 %v899_v24, %v895_v23 }
0x1cde   :  { %903 = vrot.lane.b32.xlu1 %v901_v26, %s2709_s29 }
0x1d50   :  { %v904_v27 = vpop.permute.xlu1 %903 }
0x1d51   :  { %v3086_v28 = vadd.f32 %v904_v27, %v896_v2 }
0x1d53   :  { %908 = vrot.lane.b32.xlu1 %v3086_v28, %s2710_s30  ;;  %v915_v21 = vmul.f32 %v3086_v28, %v3086_v28 }
0x1d55   :  { %917 = vrot.lane.b32.xlu0 %v915_v21, %s2710_s30 }
0x1dc5   :  { %v909_v25 = vpop.permute.xlu1 %908 }
0x1dc6   :  { %v911_v29 = vsel %vm87_vm1, %v909_v25, 0.0 }
0x1dc7   :  { %912 = vadd.xlane.f32.xlu1 %v911_v29  ;;  %v918_v13 = vpop.permute.xlu0 %917 }
0x1dc8   :  { %v920_v33 = vsel %vm87_vm1, %v918_v13, 0.0 }
0x1dc9   :  { %921 = vadd.xlane.f32.xlu0 %v920_v33 }
0x1dd8   :  { %234 = vrot.lane.b32.xlu1 %v2893_v61, %s2711_s6 }
0x1ddc   :  { %352 = vrot.lane.b32.xlu1 %v2931_v58, %s2711_s6 }
0x1de0   :  { %588 = vrot.lane.b32.xlu1 %v3002_v52, %s2711_s6 }
0x1e50   :  { %v913_v30 = vpop.xlane.xlu1 %912 }
0x1e51   :  { %v914_v34 = vmul.f32 0.03125, %v913_v30 }
0x1e52   :  { %v922_v37 = vpop.xlane.xlu0 %921 }
0x1e53   :  { %v924_v38 = vmul.f32 %v914_v34, %v914_v34  ;;  %v923_v39 = vmul.f32 0.03125, %v922_v37  ;;  %v926_v52 = vsub.f32 %v3086_v28, %v914_v34  ;;  %v3171_v37 = vld [vmem:[%s3576_s10] ss:$0 sm:$0xff] }
0x1e54   :  { %v235_v17 = vpop.permute.xlu1 %234 }
0x1e55   :  { %v925_v31 = vsub.f32 %v923_v39, %v924_v38  ;;  %238 = vst.msk [vmem:[#allocation3] sm:$0xf] %vm237_vm2, %v235_v17 }
0x1e57   :  { %v927_v32 = vadd.f32 1e-05, %v925_v31  ;;  %v3177_v31 = vld [vmem:[%s3577_s11] ss:$0 sm:$0xff] }
0x1e58   :  { %v353_v35 = vpop.permute.xlu1 %352 }
0x1e59   :  { %2601 = vrsqrt.f32 %v927_v32  ;;  %356 = vst.msk [vmem:[#allocation3 + $0x4] sm:$0xf] %vm237_vm2, %v353_v35  ;;  %v3182_v32 = vld [vmem:[%s3578_s14] ss:$0 sm:$0xff] }
0x1e5c   :  { %v589_v61 = vpop.permute.xlu1 %588 }
0x1e5d   :  { %592 = vst.msk [vmem:[#allocation3 + $0xc] sm:$0xf] %vm237_vm2, %v589_v61 }
0x1e60   :  { %v2541_v58 = vld [vmem:[#allocation3] sm:$0xff]  }
0x1e61   :  { %2461 = vmatprep.mubr.msk.bf16.mxu0 %vm87_vm1, %v2541_v58 }
0x1e66   :  { %v2602_v40 = vpop.eup %2601 }
0x1e67   :  { %v929_v41 = vmul.f32 %v2602_v40, %v926_v52  ;;  %v3189_v40 = vld [vmem:[%s3568_s1] ss:$0 sm:$0xff] }
0x1e69   :  { %v930_v36 = vmul.f32 %v929_v41, %v2886_v53 }
0x1e6b   :  { %v931_v42 = vadd.f32 %v930_v36, %v2888_v55 }
0x1e6d   :  { %2603 = vtanh.f32 %v931_v42 }
0x1e7a   :  { %v2604_v45 = vpop.eup %2603 }
0x1e7b   :  { %934 = vrot.lane.b32.xlu0 %v2604_v45, %s2709_s29 }
0x1e7f   :  { %470 = vrot.lane.b32.xlu0 %v2964_v54, %s2711_s6  ;;  %v3134_v54 = vld [vmem:[%s3573_s12] sm:$0xff]  }
0x1eed   :  { %v935_v46 = vpop.permute.xlu0 %934 }
0x1eee   :  { %v937_v47 = vmul.f32 %v935_v46, %v895_v23 }
0x1ef0   :  { %v3118_v48 = vpack.c.bf16 %v937_v47, %v937_v47 }
0x1ef1   :  { %v471_v49 = vpop.permute.xlu0 %470 }
0x1ef2   :  { %474 = vst.msk [vmem:[#allocation3 + $0x8] sm:$0xf] %vm237_vm2, %v471_v49  ;;  %947 = vrot.lane.b32.xlu0 %v3118_v48, %s2711_s6 }
0x1ef9   :  { %v2544_v56 = vld [vmem:[#allocation3 + $0x8] sm:$0xff]  }
0x1efa   :  { %2462 = vmatmul.mubr.msk.bf16.vlgmr.msra.gmra.mxu0 %vm87_vm1, %v2544_v56 }
0x1efb   :  { %2486 = vmatpush3.bf16.msra.mxu0 %v3126_v57 }
0x1efc   :  { %2487 = vmatprep.subr.bf16.mxu0 %v2706_v0 }
0x1eff   :  { %2488 = vmatpush3.bf16.msra.mxu0 %v3134_v54 }
0x1f00   :  { %2501 = vmatprep.subr.bf16.mxu0 %v2706_v0 }
0x1f64   :  { %v948_v59 = vpop.permute.xlu0 %947 }
0x1f65   :  { %2454 = vmatmul.mubr.msk.bf16.vlgmr.msra.gmra.mxu1 %vm87_vm1, %v948_v59 }
0x1f66   :  { %2470 = vmatpush3.bf16.msra.mxu1 %v3126_v57  ;;  %2473 = vmatprep.mubr.msk.bf16.mxu1 %vm2707_vm0, %v2706_v0 }
0x1f67   :  { %2471 = vmatprep.subr.bf16.mxu1 %v2706_v0 }
0x1f6a   :  { %2472 = vmatpush3.bf16.msra.mxu1 %v3134_v54 }
0x1f6b   :  { %2477 = vmatprep.subr.bf16.mxu1 %v2706_v0 }
0x1f6d   :  { %2474 = vmatmul.mubr.bf16.vlgmr.msra.gmra.mxu1 %v2708_v3 }
0x1f6e   :  { %2478 = vmatpush3.bf16.msra.mxu1 %v3126_v57  ;;  %2481 = vmatprep.mubr.msk.bf16.mxu1 %vm2707_vm0, %v2706_v0 }
0x1f6f   :  { %2479 = vmatprep.subr.bf16.mxu1 %v2706_v0 }
0x1f72   :  { %2480 = vmatpush3.bf16.msra.mxu1 %v3134_v54 }
0x1f73   :  { %2493 = vmatprep.subr.bf16.mxu1 %v2706_v0 }
0x1fba   :  { %v3152_v60 = vpop.f32.mrf.mxu0 }
0x1fbc   :  { %v1170_v63 = vpop.f32.mrf.mxu0 }
0x1fbd   :  { %v1171_v3 = vadd.f32 %v3157_v62, %v1170_v63 }
0x1fbf   :  { %1201 = vadd.xlane.f32.xlu1 %v1171_v3  ;;  %v1225_v5 = vmul.f32 %v1171_v3, %v1171_v3 }
0x1fc1   :  { %1233 = vadd.xlane.f32.xlu0 %v1225_v5 }
0x2025   :  { %v3160_v6 = vpop.f32.mrf.mxu1 }
0x2027   :  { %v2455_v1 = vpop.f32.mrf.mxu1 }
0x2029   :  { %v989_v7 = vpop.f32.mrf.mxu1 }
0x202a   :  { %v2323_v7 = vld [vmem:[%s3579_s16] ss:$0 sm:$0xff] }
0x202b   :  { %v2456_v8 = vpop.f32.mrf.mxu1 }
0x202c   :  { %v2322_v8 = vld [vmem:[%s3580_s15] ss:$0 sm:$0xff] }
0x202d   :  { %v1401_v10 = vpop.f32.mrf.mxu1 }
0x202e   :  { %v1402_v11 = vadd.f32 %v3165_v9, %v1401_v10 }
0x202f   :  { %v2475_v12 = vpop.f32.mrf.mxu1 }
0x2030   :  { %1407 = vadd.xlane.f32.xlu0 %v1402_v11  ;;  %v1410_v14 = vmul.f32 %v1402_v11, %v1402_v11 }
0x2031   :  { %v1404_v15 = vpop.f32.mrf.mxu1 }
0x2032   :  { %1411 = vadd.xlane.f32.xlu1 %v1410_v14 }
0x2033   :  { %v2476_v16 = vpop.f32.mrf.mxu1 }
0x2048   :  { %v1202_v4 = vpop.xlane.xlu1 %1201 }
0x2049   :  { %v1217_v18 = vmul.f32 0.0078125, %v1202_v4 }
0x204a   :  { %v1234_v19 = vpop.xlane.xlu0 %1233 }
0x204b   :  { %v1257_v20 = vmul.f32 %v1217_v18, %v1217_v18  ;;  %v1249_v22 = vmul.f32 0.0078125, %v1234_v19  ;;  %v1273_v30 = vsub.f32 %v1171_v3, %v1217_v18 }
0x204d   :  { %v1265_v23 = vsub.f32 %v1249_v22, %v1257_v20 }
0x204f   :  { %v1281_v24 = vadd.f32 1e-05, %v1265_v23 }
0x2051   :  { %2605 = vrsqrt.f32 %v1281_v24 }
0x205e   :  { %v2606_v33 = vpop.eup %2605 }
0x205f   :  { %v1297_v34 = vmul.f32 %v2606_v33, %v1273_v30 }
0x2061   :  { %v1311_v38 = vmul.f32 %v3171_v37, %v1297_v34 }
0x2063   :  { %v1325_v61 = vadd.f32 %v3177_v31, %v1311_v38 }
0x20b9   :  { %v1408_v26 = vpop.xlane.xlu0 %1407 }
0x20ba   :  { %v1409_v2 = vmul.f32 0.0078125, %v1408_v26 }
0x20bb   :  { %v1412_v27 = vpop.xlane.xlu1 %1411 }
0x20bc   :  { %v1414_v21 = vmul.f32 %v1409_v2, %v1409_v2  ;;  %v1413_v25 = vmul.f32 0.0078125, %v1412_v27  ;;  %v1416_v39 = vsub.f32 %v1402_v11, %v1409_v2  ;;  %v3226_v27 = vpop.f32.mrf.mxu0 }
0x20be   :  { %v1415_v29 = vsub.f32 %v1413_v25, %v1414_v21  ;;  %v1173_v21 = vpop.f32.mrf.mxu0 }
0x20bf   :  { %v3229_v25 = vadd.f32 %v3157_v62, %v1173_v21 }
0x20c0   :  { %v1417_v13 = vadd.f32 1e-05, %v1415_v29  ;;  %v2695_v29 = vld [vmem:[%s3590_s20] ss:$0 sm:$0xff] }
0x20c1   :  { %v1226_v33 = vmul.f32 %v3229_v25, %v3229_v25 }
0x20c2   :  { %2607 = vrsqrt.f32 %v1417_v13  ;;  %v987_v13 = vadd.f32 %v2695_v29, %v3160_v6 }
0x20cf   :  { %v2608_v17 = vpop.eup %2607 }
0x20d0   :  { %v1419_v35 = vmul.f32 %v2608_v17, %v1416_v39  ;;  %v995_v39 = vmul.f32 %v987_v13, %v987_v13 }
0x20d2   :  { %v1426_v58 = vmul.f32 %v3182_v32, %v1419_v35 }
0x20d4   :  { %v1428_v52 = vadd.f32 %v1426_v58, %v1325_v61 }
0x20d6   :  { %v1429_v41 = vmul.f32 %v3189_v40, %v1428_v52 }
0x20d8   :  { %2609 = vtanh.f32 %v1429_v41 }
0x20e5   :  { %v2610_v36 = vpop.eup %2609 }
0x20e6   :  { %v1431_v42 = vmul.f32 %v3189_v40, %v2610_v36 }
0x20e8   :  { %v1432_v44 = vadd.f32 %v3196_v43, %v1431_v42 }
0x20ea   :  { %1435 = vrot.lane.b32.xlu0 %v1432_v44, %s2709_s29  ;;  %v1433_v47 = vmul.f32 0.0, %v1432_v44 }
0x215c   :  { %v1436_v45 = vpop.permute.xlu0 %1435 }
0x215d   :  { %v1438_v46 = vmul.f32 %v1436_v45, %v1432_v44 }
0x215f   :  { %1440 = vrot.lane.b32.xlu1 %v1438_v46, %s2709_s29  ;;  %v2303_v46 = vld [vmem:[%s3591_s0 + $0x1c] sm:$0xf] }
0x21d1   :  { %v1441_v49 = vpop.permute.xlu1 %1440 }
0x21d2   :  { %v3201_v56 = vadd.f32 %v1441_v49, %v1433_v47  ;;  %v1008_v47 = vunpack.c.l.bf16 %v2303_v46  ;;  %v2696_v49 = vld [vmem:[%s3567_s5] ss:$0 sm:$0xff] }
0x21d4   :  { %1445 = vrot.lane.b32.xlu1 %v3201_v56, %s2710_s30  ;;  %v1452_v59 = vmul.f32 %v3201_v56, %v3201_v56 }
0x21d6   :  { %1454 = vrot.lane.b32.xlu0 %v1452_v59, %s2710_s30 }
0x2246   :  { %v1446_v63 = vpop.permute.xlu1 %1445 }
0x2247   :  { %v1448_v3 = vsel %vm87_vm1, %v1446_v63, 0.0 }
0x2248   :  { %1449 = vadd.xlane.f32.xlu1 %v1448_v3  ;;  %v1455_v5 = vpop.permute.xlu0 %1454 }
0x2249   :  { %v1457_v1 = vsel %vm87_vm1, %v1455_v5, 0.0 }
0x224a   :  { %1458 = vadd.xlane.f32.xlu0 %v1457_v1 }
0x2259   :  { %1481 = vrot.lane.b32.xlu1 %v2323_v7, %s2709_s29 }
0x2260   :  { %1472 = vrot.lane.b32.xlu0 %v2322_v8, %s2709_s29 }
0x22d1   :  { %v1450_v10 = vpop.xlane.xlu1 %1449 }
0x22d2   :  { %v1451_v11 = vmul.f32 0.03125, %v1450_v10 }
0x22d3   :  { %v1459_v12 = vpop.xlane.xlu0 %1458 }
0x22d4   :  { %v1461_v14 = vmul.f32 %v1451_v11, %v1451_v11  ;;  %v1460_v15 = vmul.f32 0.03125, %v1459_v12  ;;  %v1463_v18 = vsub.f32 %v3201_v56, %v1451_v11 }
0x22d5   :  { %v3221_v23 = vpop.permute.xlu1 %1481 }
0x22d6   :  { %v1462_v16 = vsub.f32 %v1460_v15, %v1461_v14 }
0x22d7   :  { %v3219_v20 = vpop.permute.xlu0 %1472 }
0x22d8   :  { %v1464_v4 = vadd.f32 1e-05, %v1462_v16 }
0x22da   :  { %2611 = vrsqrt.f32 %v1464_v4 }
0x22e7   :  { %v2612_v19 = vpop.eup %2611 }
0x22e8   :  { %v1466_v22 = vmul.f32 %v2612_v19, %v1463_v18 }
0x22ea   :  { %v1475_v24 = vmul.f32 %v3219_v20, %v1466_v22 }
0x22ec   :  { %v1484_v26 = vadd.f32 %v3221_v23, %v1475_v24 }
0x22ee   :  { %2613 = vtanh.f32 %v1484_v26 }
0x22fb   :  { %v2614_v2 = vpop.eup %2613 }
0x22fc   :  { %1487 = vrot.lane.b32.xlu1 %v2614_v2, %s2709_s29 }
0x2320   :  { %992 = vadd.xlane.f32.xlu1 %v987_v13 }
0x2324   :  { %1235 = vadd.xlane.f32.xlu1 %v1226_v33 }
0x236e   :  { %v1488_v30 = vpop.permute.xlu1 %1487 }
0x236f   :  { %v1490_v34 = vmul.f32 %v1488_v30, %v1432_v44 }
0x2371   :  { %v1491_v38 = vpack.c.bf16 %v1490_v34, %v1490_v34 }
0x2373   :  { %1493 = vrot.lane.b32.xlu0 %v1491_v38, %s2711_s6 }
0x2392   :  { %996 = vadd.xlane.f32.xlu0 %v995_v39 }
0x2396   :  { %1203 = vadd.xlane.f32.xlu0 %v3229_v25 }
0x23a9   :  { %v993_v6 = vpop.xlane.xlu1 %992 }
0x23aa   :  { %v994_v61 = vmul.f32 0.0078125, %v993_v6 }
0x23ac   :  { %v999_v52 = vmul.f32 %v994_v61, %v994_v61  ;;  %v1001_v44 = vsub.f32 %v987_v13, %v994_v61 }
0x23ad   :  { %v1236_v18 = vpop.xlane.xlu1 %1235 }
0x23ae   :  { %v1250_v22 = vmul.f32 0.0078125, %v1236_v18 }
0x23e5   :  { %v1494_v17 = vpop.permute.xlu0 %1493 }
0x23e6   :  { %2482 = vmatmul.mubr.msk.bf16.vlgmr.msra.gmra.mxu1 %vm87_vm1, %v1494_v17 }
0x23e7   :  { %2494 = vmatpush3.bf16.msra.mxu1 %v3126_v57  ;;  %2497 = vmatprep.mubr.msk.bf16.mxu1 %vm2707_vm0, %v2706_v0 }
0x23e8   :  { %2495 = vmatprep.subr.bf16.mxu1 %v2706_v0 }
0x23eb   :  { %2496 = vmatpush3.bf16.msra.mxu1 %v3134_v54 }
0x23ec   :  { %2509 = vmatprep.subr.bf16.mxu1 %v2706_v0 }
0x241b   :  { %v997_v35 = vpop.xlane.xlu0 %996 }
0x241c   :  { %v998_v58 = vmul.f32 0.0078125, %v997_v35 }
0x241e   :  { %v1000_v41 = vsub.f32 %v998_v58, %v999_v52 }
0x241f   :  { %v1204_v16 = vpop.xlane.xlu0 %1203 }
0x2420   :  { %v1002_v36 = vadd.f32 1e-05, %v1000_v41  ;;  %v1218_v4 = vmul.f32 0.0078125, %v1204_v16 }
0x2422   :  { %2615 = vrsqrt.f32 %v1002_v36  ;;  %v1258_v19 = vmul.f32 %v1218_v4, %v1218_v4  ;;  %v1274_v39 = vsub.f32 %v3229_v25, %v1218_v4 }
0x2424   :  { %v1266_v24 = vsub.f32 %v1250_v22, %v1258_v19 }
0x2426   :  { %v1282_v26 = vadd.f32 1e-05, %v1266_v24 }
0x242f   :  { %v2616_v42 = vpop.eup %2615 }
0x2430   :  { %v1004_v45 = vmul.f32 %v2616_v42, %v1001_v44 }
0x2432   :  { %v1005_v59 = vmul.f32 %v2696_v49, %v1004_v45 }
0x2434   :  { %v1009_v63 = vadd.f32 %v1008_v47, %v1005_v59 }
0x2436   :  { %v1010_v3 = vmul.f32 %v3189_v40, %v1009_v63 }
0x2438   :  { %2617 = vtanh.f32 %v1010_v3 }
0x2439   :  { %2619 = vrsqrt.f32 %v1282_v26 }
0x2445   :  { %v2618_v12 = vpop.eup %2617 }
0x2446   :  { %v1012_v14 = vmul.f32 %v3189_v40, %v2618_v12  ;;  %v2620_v38 = vpop.eup %2619 }
0x2447   :  { %v1298_v17 = vmul.f32 %v2620_v38, %v1274_v39 }
0x2448   :  { %v3256_v15 = vadd.f32 %v3196_v43, %v1012_v14 }
0x2449   :  { %v1312_v6 = vmul.f32 %v3171_v37, %v1298_v17 }
0x244a   :  { %v1014_v63 = vmul.f32 %v3256_v15, %v3086_v28 }
0x244b   :  { %v1326_v52 = vadd.f32 %v3177_v31, %v1312_v6 }
0x24a6   :  { %v1532_v5 = vpop.f32.mrf.mxu1 }
0x24a7   :  { %v1533_v1 = vadd.f32 %v3165_v9, %v1532_v5 }
0x24a8   :  { %v2483_v7 = vpop.f32.mrf.mxu1 }
0x24a9   :  { %1538 = vadd.xlane.f32.xlu0 %v1533_v1  ;;  %v1541_v8 = vmul.f32 %v1533_v1, %v1533_v1 }
0x24aa   :  { %v1535_v10 = vpop.f32.mrf.mxu1 }
0x24ab   :  { %1542 = vadd.xlane.f32.xlu1 %v1541_v8 }
0x24ac   :  { %v2484_v11 = vpop.f32.mrf.mxu1 }
0x24bf   :  { %1016 = vrot.lane.b32.xlu0 %v3256_v15, %s2709_s29 }
0x2532   :  { %v1539_v2 = vpop.xlane.xlu0 %1538 }
0x2533   :  { %v1540_v21 = vmul.f32 0.0078125, %v1539_v2 }
0x2534   :  { %v1543_v29 = vpop.xlane.xlu1 %1542 }
0x2535   :  { %v1545_v13 = vmul.f32 %v1540_v21, %v1540_v21  ;;  %v1544_v33 = vmul.f32 0.0078125, %v1543_v29  ;;  %v1547_v35 = vsub.f32 %v1533_v1, %v1540_v21 }
0x2536   :  { %v1017_v25 = vpop.permute.xlu0 %1016 }
0x2537   :  { %v1546_v30 = vsub.f32 %v1544_v33, %v1545_v13  ;;  %v1019_v47 = vmul.f32 %v1017_v25, %v3256_v15 }
0x2539   :  { %v1548_v34 = vadd.f32 1e-05, %v1546_v30 }
0x253b   :  { %2621 = vrsqrt.f32 %v1548_v34 }
0x2548   :  { %v2622_v61 = vpop.eup %2621 }
0x2549   :  { %v1550_v58 = vmul.f32 %v2622_v61, %v1547_v35 }
0x254b   :  { %v1551_v41 = vmul.f32 %v3182_v32, %v1550_v58 }
0x254d   :  { %v1554_v36 = vadd.f32 %v1551_v41, %v1326_v52 }
0x254f   :  { %v1555_v42 = vmul.f32 %v3189_v40, %v1554_v36 }
0x2551   :  { %2623 = vtanh.f32 %v1555_v42 }
0x255e   :  { %v2624_v44 = vpop.eup %2623 }
0x255f   :  { %v1557_v45 = vmul.f32 %v3189_v40, %v2624_v44 }
0x2561   :  { %v3267_v46 = vadd.f32 %v3196_v43, %v1557_v45 }
0x2563   :  { %1561 = vrot.lane.b32.xlu1 %v3267_v46, %s2709_s29  ;;  %v1559_v7 = vmul.f32 %v3267_v46, %v3201_v56 }
0x2567   :  { %1021 = vrot.lane.b32.xlu1 %v1019_v47, %s2709_s29 }
0x25d5   :  { %v1562_v49 = vpop.permute.xlu1 %1561 }
0x25d6   :  { %v1564_v59 = vmul.f32 %v1562_v49, %v3267_v46 }
0x25d8   :  { %1566 = vrot.lane.b32.xlu0 %v1564_v59, %s2709_s29 }
0x25d9   :  { %v1022_v3 = vpop.permute.xlu1 %1021 }
0x25da   :  { %v1024_v5 = vadd.f32 %v1022_v3, %v1014_v63  ;;  %v1179_v63 = vadd.f32 %v3152_v60, %v3157_v62 }
0x25dc   :  { %1026 = vrot.lane.b32.xlu1 %v1024_v5, %s2710_s30  ;;  %v1033_v1 = vmul.f32 %v1024_v5, %v1024_v5 }
0x25de   :  { %1035 = vrot.lane.b32.xlu0 %v1033_v1, %s2710_s30 }
0x264a   :  { %v1567_v8 = vpop.permute.xlu0 %1566 }
0x264b   :  { %v3281_v10 = vadd.f32 %v1567_v8, %v1559_v7  ;;  %v1227_v8 = vmul.f32 %v1179_v63, %v1179_v63 }
0x264d   :  { %1571 = vrot.lane.b32.xlu1 %v3281_v10, %s2710_s30  ;;  %v1578_v11 = vmul.f32 %v3281_v10, %v3281_v10 }
0x264e   :  { %v1027_v28 = vpop.permute.xlu1 %1026 }
0x264f   :  { %1070 = vst.msk [vmem:[%s3581_s18] sm:$0xff] %vm87_vm1, %v1027_v28  ;;  %1580 = vrot.lane.b32.xlu0 %v1578_v11, %s2710_s30  ;;  %v1029_v14 = vsel %vm87_vm1, %v1027_v28, 0.0 }
0x2650   :  { %v1036_v12 = vpop.permute.xlu0 %1035 }
0x2651   :  { %v1038_v56 = vsel %vm87_vm1, %v1036_v12, 0.0 }
0x266e   :  { %1039 = vadd.xlane.f32.xlu0 %v1038_v56 }
0x2671   :  { %1030 = vadd.xlane.f32.xlu1 %v1029_v14 }
0x26bf   :  { %v1572_v16 = vpop.permute.xlu1 %1571 }
0x26c0   :  { %v1574_v4 = vsel %vm87_vm1, %v1572_v16, 0.0 }
0x26c1   :  { %1575 = vadd.xlane.f32.xlu0 %v1574_v4  ;;  %v1581_v18 = vpop.permute.xlu0 %1580 }
0x26c2   :  { %v1583_v19 = vsel %vm87_vm1, %v1581_v18, 0.0 }
0x26c3   :  { %1584 = vadd.xlane.f32.xlu1 %v1583_v19 }
0x26f7   :  { %v1040_v22 = vpop.xlane.xlu0 %1039 }
0x26f8   :  { %v1041_v2 = vmul.f32 0.03125, %v1040_v22 }
0x26fa   :  { %v1031_v24 = vpop.xlane.xlu1 %1030 }
0x26fb   :  { %v1032_v26 = vmul.f32 0.03125, %v1031_v24 }
0x26fd   :  { %v1042_v21 = vmul.f32 %v1032_v26, %v1032_v26  ;;  %v1044_v33 = vsub.f32 %v1024_v5, %v1032_v26 }
0x26ff   :  { %v1043_v29 = vsub.f32 %v1041_v2, %v1042_v21 }
0x2701   :  { %v1045_v13 = vadd.f32 1e-05, %v1043_v29 }
0x2703   :  { %2625 = vrsqrt.f32 %v1045_v13 }
0x2710   :  { %v2626_v30 = vpop.eup %2625 }
0x2711   :  { %v1047_v34 = vmul.f32 %v2626_v30, %v1044_v33 }
0x2713   :  { %v1048_v38 = vmul.f32 %v1047_v34, %v2886_v53 }
0x2715   :  { %v1049_v39 = vadd.f32 %v1048_v38, %v2888_v55 }
0x2717   :  { %2627 = vtanh.f32 %v1049_v39 }
0x2724   :  { %v2628_v17 = vpop.eup %2627 }
0x2725   :  { %1052 = vrot.lane.b32.xlu0 %v2628_v17, %s2709_s29 }
0x2729   :  { %824 = vrot.lane.b32.xlu0 %v3072_v50, %s2711_s6 }
0x274a   :  { %v1576_v6 = vpop.xlane.xlu0 %1575 }
0x274b   :  { %v1577_v35 = vmul.f32 0.03125, %v1576_v6 }
0x274c   :  { %v1585_v61 = vpop.xlane.xlu1 %1584 }
0x274d   :  { %v1587_v58 = vmul.f32 %v1577_v35, %v1577_v35  ;;  %v1586_v52 = vmul.f32 0.03125, %v1585_v61  ;;  %v1589_v42 = vsub.f32 %v3281_v10, %v1577_v35 }
0x274f   :  { %v1588_v41 = vsub.f32 %v1586_v52, %v1587_v58 }
0x2751   :  { %v1590_v36 = vadd.f32 1e-05, %v1588_v41 }
0x2753   :  { %2629 = vrsqrt.f32 %v1590_v36 }
0x2760   :  { %v2630_v53 = vpop.eup %2629 }
0x2761   :  { %v1592_v44 = vmul.f32 %v2630_v53, %v1589_v42 }
0x2763   :  { %v1593_v55 = vmul.f32 %v1592_v44, %v3219_v20 }
0x2765   :  { %v1594_v45 = vadd.f32 %v1593_v55, %v3221_v23 }
0x2767   :  { %2631 = vtanh.f32 %v1594_v45 }
0x2774   :  { %v2632_v25 = vpop.eup %2631 }
0x2775   :  { %1597 = vrot.lane.b32.xlu1 %v2632_v25, %s2709_s29 }
0x2779   :  { %706 = vrot.lane.b32.xlu1 %v3034_v51, %s2711_s6 }
0x277d   :  { %942 = vrot.lane.b32.xlu1 %v3118_v48, %s2711_s6 }
0x2797   :  { %v1053_v50 = vpop.permute.xlu0 %1052 }
0x2798   :  { %v3310_v47 = vmul.f32 %v1053_v50, %v3256_v15 }
0x279a   :  { %v2338_v49 = vpack.c.bf16 %v3310_v47, %v3310_v47 }
0x279b   :  { %v825_v59 = vpop.permute.xlu0 %824 }
0x279c   :  { %828 = vst.msk [vmem:[#allocation3 + $0x14] sm:$0xf] %vm237_vm2, %v825_v59  ;;  %1060 = vrot.lane.b32.xlu0 %v2338_v49, %s2711_s6 }
0x27bb   :  { %1205 = vadd.xlane.f32.xlu0 %v1179_v63 }
0x27e7   :  { %v1598_v51 = vpop.permute.xlu1 %1597 }
0x27e8   :  { %v1600_v3 = vmul.f32 %v1598_v51, %v3267_v46 }
0x27ea   :  { %v1601_v48 = vpack.c.bf16 %v1600_v3, %v1600_v3 }
0x27eb   :  { %v707_v5 = vpop.permute.xlu1 %706 }
0x27ec   :  { %710 = vst.msk [vmem:[#allocation3 + $0x10] sm:$0xf] %vm237_vm2, %v707_v5  ;;  %1603 = vrot.lane.b32.xlu1 %v1601_v48, %s2711_s6 }
0x27ef   :  { %v943_v15 = vpop.permute.xlu1 %942 }
0x27f0   :  { %946 = vst.msk [vmem:[#allocation3 + $0x18] sm:$0xf] %vm237_vm2, %v943_v15 }
0x27f3   :  { %v2547_v1 = vld [vmem:[#allocation3 + $0x10] sm:$0xff]  }
0x27f4   :  { %2465 = vmatprep.mubr.msk.bf16.mxu0 %vm87_vm1, %v2547_v1 }
0x280e   :  { %v1061_v7 = vpop.permute.xlu0 %1060 }
0x280f   :  { %1064 = vst.msk [vmem:[#allocation3 + $0x1c] sm:$0xf] %vm237_vm2, %v1061_v7 }
0x2810   :  { %1237 = vadd.xlane.f32.xlu1 %v1227_v8 }
0x2816   :  { %v2548_v60 = vld [vmem:[#allocation3 + $0x18] sm:$0xff]  }
0x2817   :  { %2466 = vmatmul.mubr.msk.bf16.gmra.mxu0 %vm87_vm1, %v2548_v60 }
0x2818   :  { %2489 = vmatprep.mubr.msk.bf16.mxu0 %vm2707_vm0, %v2706_v0 }
0x2844   :  { %v1206_v24 = vpop.xlane.xlu0 %1205 }
0x2845   :  { %v1219_v2 = vmul.f32 0.0078125, %v1206_v24 }
0x2847   :  { %v1259_v29 = vmul.f32 %v1219_v2, %v1219_v2  ;;  %v1275_v58 = vsub.f32 %v1179_v63, %v1219_v2 }
0x285e   :  { %v1604_v46 = vpop.permute.xlu1 %1603 }
0x285f   :  { %2490 = vmatmul.mubr.msk.bf16.vlgmr.msra.gmra.mxu0 %vm87_vm1, %v1604_v46 }
0x2860   :  { %2502 = vmatpush3.bf16.msra.mxu0 %v3126_v57  ;;  %2505 = vmatprep.mubr.msk.bf16.mxu0 %vm2707_vm0, %v2706_v0 }
0x2861   :  { %2503 = vmatprep.subr.bf16.mxu0 %v2706_v0 }
0x2864   :  { %2504 = vmatpush3.bf16.msra.mxu0 %v3134_v54 }
0x2865   :  { %2517 = vmatprep.subr.bf16.mxu0 %v2706_v0 }
0x2899   :  { %v1238_v26 = vpop.xlane.xlu1 %1237 }
0x289a   :  { %v1251_v21 = vmul.f32 0.0078125, %v1238_v26 }
0x289c   :  { %v1267_v13 = vsub.f32 %v1251_v21, %v1259_v29 }
0x289e   :  { %v1283_v33 = vadd.f32 1e-05, %v1267_v13  ;;  %v1182_v13 = vadd.f32 %v3226_v27, %v3157_v62 }
0x28a0   :  { %2633 = vrsqrt.f32 %v1283_v33 }
0x28ad   :  { %v2634_v61 = vpop.eup %2633 }
0x28ae   :  { %v1299_v52 = vmul.f32 %v2634_v61, %v1275_v58 }
0x28b0   :  { %v1313_v41 = vmul.f32 %v3171_v37, %v1299_v52 }
0x28b2   :  { %v1327_v44 = vadd.f32 %v3177_v31, %v1313_v41 }
0x28d7   :  { %v3334_v11 = vpop.f32.mrf.mxu0 }
0x28d9   :  { %v3336_v28 = vpop.f32.mrf.mxu0 }
0x28db   :  { %v3338_v12 = vpop.f32.mrf.mxu0 }
0x28dd   :  { %v3340_v56 = vpop.f32.mrf.mxu0 }
0x291f   :  { %v1642_v14 = vpop.f32.mrf.mxu0 }
0x2920   :  { %v1643_v16 = vadd.f32 %v3165_v9, %v1642_v14 }
0x2921   :  { %v2491_v4 = vpop.f32.mrf.mxu0 }
0x2922   :  { %1648 = vadd.xlane.f32.xlu0 %v1643_v16  ;;  %v1651_v19 = vmul.f32 %v1643_v16, %v1643_v16 }
0x2923   :  { %v1645_v18 = vpop.f32.mrf.mxu0 }
0x2925   :  { %v2492_v22 = vpop.f32.mrf.mxu0 }
0x2926   :  { %1652 = vadd.xlane.f32.xlu0 %v1651_v19 }
0x29ab   :  { %v1649_v30 = vpop.xlane.xlu0 %1648 }
0x29ac   :  { %v1650_v34 = vmul.f32 0.0078125, %v1649_v30 }
0x29ae   :  { %v1655_v39 = vmul.f32 %v1650_v34, %v1650_v34  ;;  %v1657_v36 = vsub.f32 %v1643_v16, %v1650_v34 }
0x29af   :  { %v1653_v38 = vpop.xlane.xlu0 %1652 }
0x29b0   :  { %v1654_v17 = vmul.f32 0.0078125, %v1653_v38  ;;  %v1228_v38 = vmul.f32 %v1182_v13, %v1182_v13 }
0x29b2   :  { %v1656_v6 = vsub.f32 %v1654_v17, %v1655_v39 }
0x29b4   :  { %v1658_v35 = vadd.f32 1e-05, %v1656_v6 }
0x29b6   :  { %2635 = vrsqrt.f32 %v1658_v35 }
0x29c3   :  { %v2636_v42 = vpop.eup %2635 }
0x29c4   :  { %v1660_v53 = vmul.f32 %v2636_v42, %v1657_v36 }
0x29c6   :  { %v1661_v55 = vmul.f32 %v3182_v32, %v1660_v53 }
0x29c8   :  { %v1664_v45 = vadd.f32 %v1661_v55, %v1327_v44 }
0x29ca   :  { %v1665_v25 = vmul.f32 %v3189_v40, %v1664_v45 }
0x29cc   :  { %2637 = vtanh.f32 %v1665_v25 }
0x29d9   :  { %v2638_v50 = vpop.eup %2637 }
0x29da   :  { %v1667_v49 = vmul.f32 %v3189_v40, %v2638_v50 }
0x29dc   :  { %v1668_v59 = vadd.f32 %v3196_v43, %v1667_v49 }
0x29de   :  { %1671 = vrot.lane.b32.xlu1 %v1668_v59, %s2709_s29  ;;  %v1669_v3 = vmul.f32 %v1668_v59, %v3281_v10 }
0x2a50   :  { %v1672_v63 = vpop.permute.xlu1 %1671 }
0x2a51   :  { %v1674_v51 = vmul.f32 %v1672_v63, %v1668_v59 }
0x2a53   :  { %1676 = vrot.lane.b32.xlu0 %v1674_v51, %s2709_s29 }
0x2ac5   :  { %v1677_v48 = vpop.permute.xlu0 %1676 }
0x2ac6   :  { %v3352_v5 = vadd.f32 %v1677_v48, %v1669_v3 }
0x2ac8   :  { %1681 = vrot.lane.b32.xlu1 %v3352_v5, %s2710_s30  ;;  %v1688_v15 = vmul.f32 %v3352_v5, %v3352_v5 }
0x2acc   :  { %1690 = vrot.lane.b32.xlu1 %v1688_v15, %s2710_s30 }
0x2b3a   :  { %v1682_v1 = vpop.permute.xlu1 %1681 }
0x2b3b   :  { %v1684_v7 = vsel %vm87_vm1, %v1682_v1, 0.0 }
0x2b3c   :  { %1685 = vadd.xlane.f32.xlu0 %v1684_v7 }
0x2b3e   :  { %v1691_v8 = vpop.permute.xlu1 %1690 }
0x2b3f   :  { %v1693_v60 = vsel %vm87_vm1, %v1691_v8, 0.0 }
0x2b40   :  { %1694 = vadd.xlane.f32.xlu1 %v1693_v60 }
0x2bc5   :  { %v1686_v10 = vpop.xlane.xlu0 %1685 }
0x2bc6   :  { %v1687_v46 = vmul.f32 0.03125, %v1686_v10 }
0x2bc8   :  { %v1697_v16 = vmul.f32 %v1687_v46, %v1687_v46  ;;  %v1699_v22 = vsub.f32 %v3352_v5, %v1687_v46 }
0x2bc9   :  { %v1695_v14 = vpop.xlane.xlu1 %1694 }
0x2bca   :  { %v1696_v4 = vmul.f32 0.03125, %v1695_v14 }
0x2bcc   :  { %v1698_v18 = vsub.f32 %v1696_v4, %v1697_v16 }
0x2bce   :  { %v1700_v19 = vadd.f32 1e-05, %v1698_v18 }
0x2bd0   :  { %2639 = vrsqrt.f32 %v1700_v19 }
0x2bdd   :  { %v2640_v24 = vpop.eup %2639 }
0x2bde   :  { %v1702_v26 = vmul.f32 %v2640_v24, %v1699_v22 }
0x2be0   :  { %v1703_v2 = vmul.f32 %v1702_v26, %v3219_v20 }
0x2be2   :  { %v1704_v21 = vadd.f32 %v1703_v2, %v3221_v23 }
0x2be4   :  { %2641 = vtanh.f32 %v1704_v21 }
0x2bf1   :  { %v2642_v29 = vpop.eup %2641 }
0x2bf2   :  { %1707 = vrot.lane.b32.xlu0 %v2642_v29, %s2709_s29 }
0x2c11   :  { %1207 = vadd.xlane.f32.xlu0 %v1182_v13 }
0x2c64   :  { %v1708_v33 = vpop.permute.xlu0 %1707 }
0x2c65   :  { %v1710_v30 = vmul.f32 %v1708_v33, %v1668_v59 }
0x2c67   :  { %v1711_v34 = vpack.c.bf16 %v1710_v30, %v1710_v30 }
0x2c69   :  { %1713 = vrot.lane.b32.xlu1 %v1711_v34, %s2711_s6 }
0x2c8d   :  { %1239 = vadd.xlane.f32.xlu1 %v1228_v38 }
0x2c9a   :  { %v1208_v52 = vpop.xlane.xlu0 %1207 }
0x2c9b   :  { %v1220_v36 = vmul.f32 0.0078125, %v1208_v52 }
0x2c9d   :  { %v1260_v53 = vmul.f32 %v1220_v36, %v1220_v36  ;;  %v1276_v48 = vsub.f32 %v1182_v13, %v1220_v36 }
0x2cdb   :  { %v1714_v39 = vpop.permute.xlu1 %1713 }
0x2cdc   :  { %2498 = vmatmul.mubr.msk.bf16.vlgmr.msra.gmra.mxu1 %vm87_vm1, %v1714_v39 }
0x2cdd   :  { %2510 = vmatpush3.bf16.msra.mxu1 %v3126_v57  ;;  %2513 = vmatprep.mubr.msk.bf16.mxu1 %vm2707_vm0, %v2706_v0 }
0x2cde   :  { %2511 = vmatprep.subr.bf16.mxu1 %v2706_v0 }
0x2ce1   :  { %2512 = vmatpush3.bf16.msra.mxu1 %v3134_v54 }
0x2ce2   :  { %2525 = vmatprep.subr.bf16.mxu1 %v2706_v0 }
0x2d16   :  { %v1240_v41 = vpop.xlane.xlu1 %1239 }
0x2d17   :  { %v1252_v42 = vmul.f32 0.0078125, %v1240_v41 }
0x2d19   :  { %v1268_v44 = vsub.f32 %v1252_v42, %v1260_v53  ;;  %v1187_v53 = vadd.f32 %v3157_v62, %v3336_v28 }
0x2d1b   :  { %v1284_v55 = vadd.f32 1e-05, %v1268_v44 }
0x2d1d   :  { %2643 = vrsqrt.f32 %v1284_v55 }
0x2d2a   :  { %v2644_v3 = vpop.eup %2643 }
0x2d2b   :  { %v1300_v15 = vmul.f32 %v2644_v3, %v1276_v48 }
0x2d2d   :  { %v1314_v1 = vmul.f32 %v3171_v37, %v1300_v15 }
0x2d2f   :  { %v1328_v10 = vadd.f32 %v3177_v31, %v1314_v1 }
0x2d9c   :  { %v1752_v27 = vpop.f32.mrf.mxu1 }
0x2d9d   :  { %v1753_v17 = vadd.f32 %v3165_v9, %v1752_v27 }
0x2d9e   :  { %v2499_v6 = vpop.f32.mrf.mxu1 }
0x2d9f   :  { %1758 = vadd.xlane.f32.xlu0 %v1753_v17  ;;  %v1761_v61 = vmul.f32 %v1753_v17, %v1753_v17 }
0x2da0   :  { %v1755_v35 = vpop.f32.mrf.mxu1 }
0x2da2   :  { %v2500_v58 = vpop.f32.mrf.mxu1 }
0x2da3   :  { %1762 = vadd.xlane.f32.xlu0 %v1761_v61 }
0x2e28   :  { %v1759_v45 = vpop.xlane.xlu0 %1758 }
0x2e29   :  { %v1760_v25 = vmul.f32 0.0078125, %v1759_v45 }
0x2e2b   :  { %v1765_v49 = vmul.f32 %v1760_v25, %v1760_v25  ;;  %v1767_v7 = vsub.f32 %v1753_v17, %v1760_v25  ;;  %v1229_v25 = vmul.f32 %v1187_v53, %v1187_v53 }
0x2e2c   :  { %v1763_v50 = vpop.xlane.xlu0 %1762 }
0x2e2d   :  { %v1764_v59 = vmul.f32 0.0078125, %v1763_v50 }
0x2e2f   :  { %v1766_v63 = vsub.f32 %v1764_v59, %v1765_v49 }
0x2e31   :  { %v1768_v51 = vadd.f32 1e-05, %v1766_v63 }
0x2e33   :  { %2645 = vrsqrt.f32 %v1768_v51 }
0x2e40   :  { %v2646_v8 = vpop.eup %2645 }
0x2e41   :  { %v1770_v60 = vmul.f32 %v2646_v8, %v1767_v7 }
0x2e43   :  { %v1771_v46 = vmul.f32 %v3182_v32, %v1770_v60 }
0x2e45   :  { %v1774_v14 = vadd.f32 %v1771_v46, %v1328_v10 }
0x2e47   :  { %v1775_v16 = vmul.f32 %v3189_v40, %v1774_v14 }
0x2e49   :  { %2647 = vtanh.f32 %v1775_v16 }
0x2e56   :  { %v2648_v4 = vpop.eup %2647 }
0x2e57   :  { %v1777_v18 = vmul.f32 %v3189_v40, %v2648_v4 }
0x2e59   :  { %v1778_v19 = vadd.f32 %v3196_v43, %v1777_v18 }
0x2e5b   :  { %1781 = vrot.lane.b32.xlu1 %v1778_v19, %s2709_s29  ;;  %v1779_v26 = vmul.f32 %v1778_v19, %v3352_v5 }
0x2ecd   :  { %v1782_v22 = vpop.permute.xlu1 %1781 }
0x2ece   :  { %v1784_v24 = vmul.f32 %v1782_v22, %v1778_v19 }
0x2ed0   :  { %1786 = vrot.lane.b32.xlu0 %v1784_v24, %s2709_s29 }
0x2f42   :  { %v1787_v2 = vpop.permute.xlu0 %1786 }
0x2f43   :  { %v3385_v21 = vadd.f32 %v1787_v2, %v1779_v26 }
0x2f45   :  { %1791 = vrot.lane.b32.xlu1 %v3385_v21, %s2710_s30  ;;  %v1798_v29 = vmul.f32 %v3385_v21, %v3385_v21 }
0x2f49   :  { %1800 = vrot.lane.b32.xlu1 %v1798_v29, %s2710_s30 }
0x2fb7   :  { %v1792_v13 = vpop.permute.xlu1 %1791 }
0x2fb8   :  { %v1794_v33 = vsel %vm87_vm1, %v1792_v13, 0.0 }
0x2fb9   :  { %1795 = vadd.xlane.f32.xlu0 %v1794_v33 }
0x2fbb   :  { %v1801_v30 = vpop.permute.xlu1 %1800 }
0x2fbc   :  { %v1803_v34 = vsel %vm87_vm1, %v1801_v30, 0.0 }
0x2fbd   :  { %1804 = vadd.xlane.f32.xlu1 %v1803_v34 }
0x3042   :  { %v1796_v5 = vpop.xlane.xlu0 %1795 }
0x3043   :  { %v1797_v38 = vmul.f32 0.03125, %v1796_v5 }
0x3045   :  { %v1807_v27 = vmul.f32 %v1797_v38, %v1797_v38  ;;  %v1809_v61 = vsub.f32 %v3385_v21, %v1797_v38 }
0x3046   :  { %v1805_v39 = vpop.xlane.xlu1 %1804 }
0x3047   :  { %v1806_v17 = vmul.f32 0.03125, %v1805_v39 }
0x3049   :  { %v1808_v6 = vsub.f32 %v1806_v17, %v1807_v27 }
0x304b   :  { %v1810_v35 = vadd.f32 1e-05, %v1808_v6 }
0x304d   :  { %2649 = vrsqrt.f32 %v1810_v35 }
0x305a   :  { %v2650_v58 = vpop.eup %2649 }
0x305b   :  { %v1812_v52 = vmul.f32 %v2650_v58, %v1809_v61 }
0x305d   :  { %v1813_v41 = vmul.f32 %v1812_v52, %v3219_v20 }
0x305f   :  { %v1814_v36 = vadd.f32 %v1813_v41, %v3221_v23 }
0x3061   :  { %2651 = vtanh.f32 %v1814_v36 }
0x306e   :  { %v2652_v42 = vpop.eup %2651 }
0x306f   :  { %1817 = vrot.lane.b32.xlu0 %v2652_v42, %s2709_s29 }
0x308e   :  { %1209 = vadd.xlane.f32.xlu0 %v1187_v53 }
0x30e1   :  { %v1818_v44 = vpop.permute.xlu0 %1817 }
0x30e2   :  { %v1820_v55 = vmul.f32 %v1818_v44, %v1778_v19 }
0x30e4   :  { %v1821_v45 = vpack.c.bf16 %v1820_v55, %v1820_v55 }
0x30e6   :  { %1823 = vrot.lane.b32.xlu1 %v1821_v45, %s2711_s6 }
0x310a   :  { %1241 = vadd.xlane.f32.xlu1 %v1229_v25 }
0x3117   :  { %v1210_v3 = vpop.xlane.xlu0 %1209 }
0x3118   :  { %v1221_v15 = vmul.f32 0.0078125, %v1210_v3 }
0x311a   :  { %v1261_v1 = vmul.f32 %v1221_v15, %v1221_v15  ;;  %v1277_v18 = vsub.f32 %v1187_v53, %v1221_v15 }
0x3158   :  { %v1824_v50 = vpop.permute.xlu1 %1823 }
0x3159   :  { %2506 = vmatmul.mubr.msk.bf16.vlgmr.msra.gmra.mxu0 %vm87_vm1, %v1824_v50 }
0x315a   :  { %2518 = vmatpush3.bf16.msra.mxu0 %v3126_v57  ;;  %2521 = vmatprep.mubr.msk.bf16.mxu0 %vm2707_vm0, %v2706_v0 }
0x315b   :  { %2519 = vmatprep.subr.bf16.mxu0 %v2706_v0 }
0x315e   :  { %2520 = vmatpush3.bf16.msra.mxu0 %v3134_v54 }
0x3193   :  { %v1242_v48 = vpop.xlane.xlu1 %1241 }
0x3194   :  { %v1253_v57 = vmul.f32 0.0078125, %v1242_v48  ;;  %v2698_v48 = vld [vmem:[%s3573_s12 + $0x8] sm:$0xff]  }
0x3196   :  { %v1269_v7 = vsub.f32 %v1253_v57, %v1261_v1  ;;  %v3451_v57 = vld [vmem:[%s3575_s13] ss:$0 sm:$0xff] }
0x3198   :  { %v1285_v8 = vadd.f32 1e-05, %v1269_v7 }
0x319a   :  { %2653 = vrsqrt.f32 %v1285_v8 }
0x31a7   :  { %v2654_v4 = vpop.eup %2653 }
0x31a8   :  { %v1301_v19 = vmul.f32 %v2654_v4, %v1277_v18 }
0x31aa   :  { %v1315_v22 = vmul.f32 %v3171_v37, %v1301_v19 }
0x31ac   :  { %v1329_v29 = vadd.f32 %v3177_v31, %v1315_v22 }
0x3219   :  { %v1862_v62 = vpop.f32.mrf.mxu0 }
0x321a   :  { %v1863_v28 = vadd.f32 %v3165_v9, %v1862_v62  ;;  %v3433_v62 = vld [vmem:[%s3574_s9] ss:$0 sm:$0xff] }
0x321b   :  { %v2507_v49 = vpop.f32.mrf.mxu0 }
0x321c   :  { %1868 = vadd.xlane.f32.xlu0 %v1863_v28  ;;  %v1871_v63 = vmul.f32 %v1863_v28, %v1863_v28 }
0x321d   :  { %v1865_v59 = vpop.f32.mrf.mxu0 }
0x321f   :  { %v2508_v51 = vpop.f32.mrf.mxu0 }
0x3220   :  { %1872 = vadd.xlane.f32.xlu0 %v1871_v63 }
0x32a5   :  { %v1869_v60 = vpop.xlane.xlu0 %1868 }
0x32a6   :  { %v1870_v10 = vmul.f32 0.0078125, %v1869_v60 }
0x32a8   :  { %v1875_v46 = vmul.f32 %v1870_v10, %v1870_v10  ;;  %v1877_v24 = vsub.f32 %v1863_v28, %v1870_v10  ;;  %v1190_v28 = vadd.f32 %v3433_v62, %v3340_v56  ;;  %v2699_v56 = vld [vmem:[%s3573_s12] sm:$0xff]  }
0x32a9   :  { %v1873_v54 = vpop.xlane.xlu0 %1872 }
0x32aa   :  { %v1874_v14 = vmul.f32 0.0078125, %v1873_v54  ;;  %v1230_v51 = vmul.f32 %v1190_v28, %v1190_v28 }
0x32ac   :  { %v1876_v9 = vsub.f32 %v1874_v14, %v1875_v46 }
0x32ae   :  { %v1878_v16 = vadd.f32 1e-05, %v1876_v9 }
0x32b0   :  { %2655 = vrsqrt.f32 %v1878_v16 }
0x32bd   :  { %v2656_v26 = vpop.eup %2655 }
0x32be   :  { %v1880_v2 = vmul.f32 %v2656_v26, %v1877_v24 }
0x32c0   :  { %v1881_v13 = vmul.f32 %v3182_v32, %v1880_v2 }
0x32c2   :  { %v1884_v33 = vadd.f32 %v1881_v13, %v1329_v29 }
0x32c4   :  { %v1885_v30 = vmul.f32 %v3189_v40, %v1884_v33 }
0x32c6   :  { %2657 = vtanh.f32 %v1885_v30 }
0x32d3   :  { %v2658_v34 = vpop.eup %2657 }
0x32d4   :  { %v1887_v5 = vmul.f32 %v3189_v40, %v2658_v34  ;;  %v3457_v34 = vld [vmem:[%s3576_s10] ss:$0 sm:$0xff] }
0x32d6   :  { %v1888_v38 = vadd.f32 %v3196_v43, %v1887_v5 }
0x32d8   :  { %1891 = vrot.lane.b32.xlu1 %v1888_v38, %s2709_s29  ;;  %v1889_v27 = vmul.f32 %v1888_v38, %v3385_v21 }
0x334a   :  { %v1892_v39 = vpop.permute.xlu1 %1891 }
0x334b   :  { %v1894_v37 = vmul.f32 %v1892_v39, %v1888_v38 }
0x334d   :  { %1896 = vrot.lane.b32.xlu0 %v1894_v37, %s2709_s29 }
0x33bf   :  { %v1897_v31 = vpop.permute.xlu0 %1896 }
0x33c0   :  { %v3417_v17 = vadd.f32 %v1897_v31, %v1889_v27  ;;  %v3463_v27 = vld [vmem:[%s3577_s11] ss:$0 sm:$0xff] }
0x33c2   :  { %1901 = vrot.lane.b32.xlu1 %v3417_v17, %s2710_s30  ;;  %v1908_v32 = vmul.f32 %v3417_v17, %v3417_v17 }
0x33c6   :  { %1910 = vrot.lane.b32.xlu1 %v1908_v32, %s2710_s30  ;;  %v3469_v32 = vld [vmem:[%s3578_s14] ss:$0 sm:$0xff] }
0x3434   :  { %v1902_v40 = vpop.permute.xlu1 %1901 }
0x3435   :  { %v1904_v43 = vsel %vm87_vm1, %v1902_v40, 0.0 }
0x3436   :  { %1905 = vadd.xlane.f32.xlu0 %v1904_v43 }
0x3438   :  { %v1911_v6 = vpop.permute.xlu1 %1910 }
0x3439   :  { %v1913_v35 = vsel %vm87_vm1, %v1911_v6, 0.0  ;;  %v3475_v6 = vld [vmem:[%s3568_s1] ss:$0 sm:$0xff] }
0x343a   :  { %1914 = vadd.xlane.f32.xlu1 %v1913_v35 }
0x34bf   :  { %v1906_v21 = vpop.xlane.xlu0 %1905 }
0x34c0   :  { %v1907_v61 = vmul.f32 0.03125, %v1906_v21 }
0x34c2   :  { %v1917_v52 = vmul.f32 %v1907_v61, %v1907_v61  ;;  %v1919_v53 = vsub.f32 %v3417_v17, %v1907_v61 }
0x34c3   :  { %v1915_v58 = vpop.xlane.xlu1 %1914 }
0x34c4   :  { %v1916_v41 = vmul.f32 0.03125, %v1915_v58  ;;  %v3482_v58 = vld [vmem:[%s3569_s2] ss:$0 sm:$0xff] }
0x34c6   :  { %v1918_v36 = vsub.f32 %v1916_v41, %v1917_v52 }
0x34c8   :  { %v1920_v42 = vadd.f32 1e-05, %v1918_v36 }
0x34ca   :  { %2659 = vrsqrt.f32 %v1920_v42 }
0x34d7   :  { %v2660_v44 = vpop.eup %2659 }
0x34d8   :  { %v1922_v55 = vmul.f32 %v2660_v44, %v1919_v53 }
0x34da   :  { %v1923_v45 = vmul.f32 %v1922_v55, %v3219_v20 }
0x34dc   :  { %v1924_v25 = vadd.f32 %v1923_v45, %v3221_v23 }
0x34de   :  { %2661 = vtanh.f32 %v1924_v25 }
0x34eb   :  { %v2662_v50 = vpop.eup %2661 }
0x34ec   :  { %1927 = vrot.lane.b32.xlu0 %v2662_v50, %s2709_s29 }
0x350b   :  { %1211 = vadd.xlane.f32.xlu0 %v1190_v28 }
0x355e   :  { %v1928_v49 = vpop.permute.xlu0 %1927 }
0x355f   :  { %v1930_v59 = vmul.f32 %v1928_v49, %v1888_v38 }
0x3561   :  { %v1931_v63 = vpack.c.bf16 %v1930_v59, %v1930_v59 }
0x3563   :  { %1933 = vrot.lane.b32.xlu1 %v1931_v63, %s2711_s6 }
0x3587   :  { %1243 = vadd.xlane.f32.xlu1 %v1230_v51 }
0x35d5   :  { %v1934_v3 = vpop.permute.xlu1 %1933 }
0x35d6   :  { %2514 = vmatmul.mubr.msk.bf16.vlgmr.msra.gmra.mxu1 %vm87_vm1, %v1934_v3 }
0x35d7   :  { %2526 = vmatpush3.bf16.msra.mxu1 %v2698_v48  ;;  %2529 = vmatprep.mubr.msk.bf16.mxu1 %vm2707_vm0, %v2706_v0 }
0x35d8   :  { %2527 = vmatprep.subr.bf16.mxu1 %v2706_v0  ;;  %v1212_v0 = vpop.xlane.xlu0 %1211 }
0x35d9   :  { %v1222_v46 = vmul.f32 0.0078125, %v1212_v0 }
0x35db   :  { %2528 = vmatpush3.bf16.msra.mxu1 %v2699_v56  ;;  %v1262_v9 = vmul.f32 %v1222_v46, %v1222_v46  ;;  %v1278_v33 = vsub.f32 %v1190_v28, %v1222_v46 }
0x3610   :  { %v1244_v54 = vpop.xlane.xlu1 %1243 }
0x3611   :  { %v1254_v14 = vmul.f32 0.0078125, %v1244_v54 }
0x3613   :  { %v1270_v16 = vsub.f32 %v1254_v14, %v1262_v9 }
0x3615   :  { %v1286_v4 = vadd.f32 1e-05, %v1270_v16 }
0x3617   :  { %2663 = vrsqrt.f32 %v1286_v4 }
0x3624   :  { %v2664_v13 = vpop.eup %2663 }
0x3625   :  { %v1302_v30 = vmul.f32 %v2664_v13, %v1278_v33 }
0x3627   :  { %v1316_v5 = vmul.f32 %v3457_v34, %v1302_v30 }
0x3629   :  { %v1330_v31 = vadd.f32 %v3463_v27, %v1316_v5 }
0x3696   :  { %v1972_v15 = vpop.f32.mrf.mxu1 }
0x3697   :  { %v1973_v1 = vadd.f32 %v3451_v57, %v1972_v15 }
0x3698   :  { %v2515_v7 = vpop.f32.mrf.mxu1 }
0x3699   :  { %1978 = vadd.xlane.f32.xlu0 %v1973_v1  ;;  %v1981_v60 = vmul.f32 %v1973_v1, %v1973_v1 }
0x369a   :  { %v1975_v8 = vpop.f32.mrf.mxu1 }
0x369c   :  { %v2516_v10 = vpop.f32.mrf.mxu1 }
0x369d   :  { %1982 = vadd.xlane.f32.xlu0 %v1981_v60  ;;  %v1195_v10 = vadd.f32 %v3433_v62, %v3334_v11 }
0x369f   :  { %v1231_v14 = vmul.f32 %v1195_v10, %v1195_v10 }
0x3722   :  { %v1979_v18 = vpop.xlane.xlu0 %1978 }
0x3723   :  { %v1980_v19 = vmul.f32 0.0078125, %v1979_v18 }
0x3725   :  { %v1985_v24 = vmul.f32 %v1980_v19, %v1980_v19  ;;  %v1987_v38 = vsub.f32 %v1973_v1, %v1980_v19 }
0x3726   :  { %v1983_v22 = vpop.xlane.xlu0 %1982 }
0x3727   :  { %v1984_v26 = vmul.f32 0.0078125, %v1983_v22 }
0x3729   :  { %v1986_v2 = vsub.f32 %v1984_v26, %v1985_v24 }
0x372b   :  { %v1988_v29 = vadd.f32 1e-05, %v1986_v2 }
0x372d   :  { %2665 = vrsqrt.f32 %v1988_v29 }
0x373a   :  { %v2666_v39 = vpop.eup %2665 }
0x373b   :  { %v1990_v37 = vmul.f32 %v2666_v39, %v1987_v38 }
0x373d   :  { %v1991_v40 = vmul.f32 %v3469_v32, %v1990_v37 }
0x373f   :  { %v1994_v43 = vadd.f32 %v1991_v40, %v1330_v31 }
0x3741   :  { %v1995_v35 = vmul.f32 %v3475_v6, %v1994_v43 }
0x3743   :  { %2667 = vtanh.f32 %v1995_v35 }
0x3750   :  { %v2668_v21 = vpop.eup %2667 }
0x3751   :  { %v1997_v61 = vmul.f32 %v3475_v6, %v2668_v21 }
0x3753   :  { %v1998_v52 = vadd.f32 %v3482_v58, %v1997_v61 }
0x3755   :  { %2001 = vrot.lane.b32.xlu1 %v1998_v52, %s2709_s29  ;;  %v1999_v42 = vmul.f32 %v1998_v52, %v3417_v17 }
0x37c7   :  { %v2002_v41 = vpop.permute.xlu1 %2001 }
0x37c8   :  { %v2004_v36 = vmul.f32 %v2002_v41, %v1998_v52 }
0x37ca   :  { %2006 = vrot.lane.b32.xlu0 %v2004_v36, %s2709_s29 }
0x383c   :  { %v2007_v53 = vpop.permute.xlu0 %2006 }
0x383d   :  { %v3488_v44 = vadd.f32 %v2007_v53, %v1999_v42 }
0x383f   :  { %2011 = vrot.lane.b32.xlu1 %v3488_v44, %s2710_s30  ;;  %v2018_v55 = vmul.f32 %v3488_v44, %v3488_v44 }
0x3843   :  { %2020 = vrot.lane.b32.xlu1 %v2018_v55, %s2710_s30 }
0x38b1   :  { %v2012_v45 = vpop.permute.xlu1 %2011 }
0x38b2   :  { %v2014_v25 = vsel %vm87_vm1, %v2012_v45, 0.0 }
0x38b3   :  { %2015 = vadd.xlane.f32.xlu0 %v2014_v25 }
0x38b5   :  { %v2021_v50 = vpop.permute.xlu1 %2020 }
0x38b6   :  { %v2023_v28 = vsel %vm87_vm1, %v2021_v50, 0.0 }
0x38b7   :  { %2024 = vadd.xlane.f32.xlu1 %v2023_v28 }
0x393c   :  { %v2016_v17 = vpop.xlane.xlu0 %2015 }
0x393d   :  { %v2017_v49 = vmul.f32 0.03125, %v2016_v17 }
0x393f   :  { %v2027_v63 = vmul.f32 %v2017_v49, %v2017_v49  ;;  %v2029_v56 = vsub.f32 %v3488_v44, %v2017_v49 }
0x3940   :  { %v2025_v59 = vpop.xlane.xlu1 %2024 }
0x3941   :  { %v2026_v51 = vmul.f32 0.03125, %v2025_v59 }
0x3943   :  { %v2028_v3 = vsub.f32 %v2026_v51, %v2027_v63 }
0x3945   :  { %v2030_v48 = vadd.f32 1e-05, %v2028_v3 }
0x3947   :  { %2669 = vrsqrt.f32 %v2030_v48 }
0x3954   :  { %v2670_v15 = vpop.eup %2669 }
0x3955   :  { %v2032_v1 = vmul.f32 %v2670_v15, %v2029_v56 }
0x3957   :  { %v2033_v7 = vmul.f32 %v2032_v1, %v3219_v20 }
0x3959   :  { %v2034_v8 = vadd.f32 %v2033_v7, %v3221_v23 }
0x395b   :  { %2671 = vtanh.f32 %v2034_v8 }
0x3968   :  { %v2672_v60 = vpop.eup %2671 }
0x3969   :  { %2037 = vrot.lane.b32.xlu0 %v2672_v60, %s2709_s29 }
0x3988   :  { %1213 = vadd.xlane.f32.xlu0 %v1195_v10 }
0x39db   :  { %v2038_v0 = vpop.permute.xlu0 %2037 }
0x39dc   :  { %v2040_v54 = vmul.f32 %v2038_v0, %v1998_v52 }
0x39de   :  { %v2041_v46 = vpack.c.bf16 %v2040_v54, %v2040_v54 }
0x39e0   :  { %2043 = vrot.lane.b32.xlu1 %v2041_v46, %s2711_s6 }
0x3a04   :  { %1245 = vadd.xlane.f32.xlu1 %v1231_v14 }
0x3a11   :  { %v1214_v11 = vpop.xlane.xlu0 %1213 }
0x3a12   :  { %v1223_v2 = vmul.f32 0.0078125, %v1214_v11 }
0x3a14   :  { %v1263_v13 = vmul.f32 %v1223_v2, %v1223_v2  ;;  %v1279_v21 = vsub.f32 %v1195_v10, %v1223_v2 }
0x3a52   :  { %v2044_v9 = vpop.permute.xlu1 %2043 }
0x3a53   :  { %2522 = vmatmul.mubr.msk.bf16.vlgmr.msra.gmra.mxu0 %vm87_vm1, %v2044_v9 }
0x3a8d   :  { %v1246_v26 = vpop.xlane.xlu1 %1245 }
0x3a8e   :  { %v1255_v29 = vmul.f32 0.0078125, %v1246_v26 }
0x3a90   :  { %v1271_v33 = vsub.f32 %v1255_v29, %v1263_v13 }
0x3a92   :  { %v1287_v30 = vadd.f32 1e-05, %v1271_v33 }
0x3a94   :  { %2673 = vrsqrt.f32 %v1287_v30 }
0x3aa1   :  { %v2674_v35 = vpop.eup %2673 }
0x3aa2   :  { %v1303_v61 = vmul.f32 %v2674_v35, %v1279_v21 }
0x3aa4   :  { %v1317_v52 = vmul.f32 %v3457_v34, %v1303_v61 }
0x3aa6   :  { %v1331_v53 = vadd.f32 %v3463_v27, %v1317_v52 }
0x3b13   :  { %v2082_v16 = vpop.f32.mrf.mxu0 }
0x3b14   :  { %v2083_v4 = vadd.f32 %v3451_v57, %v2082_v16 }
0x3b15   :  { %v2523_v18 = vpop.f32.mrf.mxu0 }
0x3b16   :  { %2088 = vadd.xlane.f32.xlu0 %v2083_v4  ;;  %v2091_v22 = vmul.f32 %v2083_v4, %v2083_v4 }
0x3b17   :  { %v2085_v19 = vpop.f32.mrf.mxu0 }
0x3b19   :  { %v2524_v24 = vpop.f32.mrf.mxu0 }
0x3b1a   :  { %2092 = vadd.xlane.f32.xlu0 %v2091_v22  ;;  %v1198_v22 = vadd.f32 %v3433_v62, %v3338_v12 }
0x3b1c   :  { %v1232_v2 = vmul.f32 %v1198_v22, %v1198_v22 }
0x3b9f   :  { %v2089_v5 = vpop.xlane.xlu0 %2088 }
0x3ba0   :  { %v2090_v38 = vmul.f32 0.0078125, %v2089_v5 }
0x3ba2   :  { %v2095_v37 = vmul.f32 %v2090_v38, %v2090_v38  ;;  %v2097_v41 = vsub.f32 %v2083_v4, %v2090_v38 }
0x3ba3   :  { %v2093_v39 = vpop.xlane.xlu0 %2092 }
0x3ba4   :  { %v2094_v31 = vmul.f32 0.0078125, %v2093_v39 }
0x3ba6   :  { %v2096_v40 = vsub.f32 %v2094_v31, %v2095_v37 }
0x3ba8   :  { %v2098_v43 = vadd.f32 1e-05, %v2096_v40 }
0x3baa   :  { %2675 = vrsqrt.f32 %v2098_v43 }
0x3bb7   :  { %v2676_v36 = vpop.eup %2675 }
0x3bb8   :  { %v2100_v42 = vmul.f32 %v2676_v36, %v2097_v41 }
0x3bba   :  { %v2101_v55 = vmul.f32 %v3469_v32, %v2100_v42 }
0x3bbc   :  { %v2104_v45 = vadd.f32 %v2101_v55, %v1331_v53 }
0x3bbe   :  { %v2105_v25 = vmul.f32 %v3475_v6, %v2104_v45 }
0x3bc0   :  { %2677 = vtanh.f32 %v2105_v25 }
0x3bcd   :  { %v2678_v50 = vpop.eup %2677 }
0x3bce   :  { %v2107_v28 = vmul.f32 %v3475_v6, %v2678_v50 }
0x3bd0   :  { %v2108_v17 = vadd.f32 %v3482_v58, %v2107_v28 }
0x3bd2   :  { %2111 = vrot.lane.b32.xlu1 %v2108_v17, %s2709_s29  ;;  %v2109_v63 = vmul.f32 %v2108_v17, %v3488_v44 }
0x3c44   :  { %v2112_v49 = vpop.permute.xlu1 %2111 }
0x3c45   :  { %v2114_v59 = vmul.f32 %v2112_v49, %v2108_v17 }
0x3c47   :  { %2116 = vrot.lane.b32.xlu0 %v2114_v59, %s2709_s29 }
0x3cb9   :  { %v2117_v51 = vpop.permute.xlu0 %2116 }
0x3cba   :  { %v3515_v3 = vadd.f32 %v2117_v51, %v2109_v63 }
0x3cbc   :  { %2121 = vrot.lane.b32.xlu1 %v3515_v3, %s2710_s30  ;;  %v2128_v48 = vmul.f32 %v3515_v3, %v3515_v3 }
0x3cc0   :  { %2130 = vrot.lane.b32.xlu1 %v2128_v48, %s2710_s30 }
0x3d2e   :  { %v2122_v56 = vpop.permute.xlu1 %2121 }
0x3d2f   :  { %v2124_v15 = vsel %vm87_vm1, %v2122_v56, 0.0 }
0x3d30   :  { %2125 = vadd.xlane.f32.xlu0 %v2124_v15 }
0x3d32   :  { %v2131_v1 = vpop.permute.xlu1 %2130 }
0x3d33   :  { %v2133_v7 = vsel %vm87_vm1, %v2131_v1, 0.0 }
0x3d34   :  { %2134 = vadd.xlane.f32.xlu1 %v2133_v7 }
0x3db9   :  { %v2126_v44 = vpop.xlane.xlu0 %2125 }
0x3dba   :  { %v2127_v8 = vmul.f32 0.03125, %v2126_v44 }
0x3dbc   :  { %v2137_v10 = vmul.f32 %v2127_v8, %v2127_v8  ;;  %v2139_v14 = vsub.f32 %v3515_v3, %v2127_v8 }
0x3dbd   :  { %v2135_v60 = vpop.xlane.xlu1 %2134 }
0x3dbe   :  { %v2136_v0 = vmul.f32 0.03125, %v2135_v60 }
0x3dc0   :  { %v2138_v54 = vsub.f32 %v2136_v0, %v2137_v10 }
0x3dc2   :  { %v2140_v46 = vadd.f32 1e-05, %v2138_v54 }
0x3dc4   :  { %2679 = vrsqrt.f32 %v2140_v46 }
0x3dd1   :  { %v2680_v9 = vpop.eup %2679 }
0x3dd2   :  { %v2142_v16 = vmul.f32 %v2680_v9, %v2139_v14 }
0x3dd4   :  { %v2143_v4 = vmul.f32 %v2142_v16, %v3219_v20 }
0x3dd6   :  { %v2144_v18 = vadd.f32 %v2143_v4, %v3221_v23 }
0x3dd8   :  { %2681 = vtanh.f32 %v2144_v18 }
0x3de5   :  { %v2682_v19 = vpop.eup %2681 }
0x3de6   :  { %2147 = vrot.lane.b32.xlu0 %v2682_v19, %s2709_s29 }
0x3e05   :  { %1215 = vadd.xlane.f32.xlu0 %v1198_v22 }
0x3e58   :  { %v2148_v24 = vpop.permute.xlu0 %2147 }
0x3e59   :  { %v2150_v11 = vmul.f32 %v2148_v24, %v2108_v17 }
0x3e5b   :  { %v2151_v26 = vpack.c.bf16 %v2150_v11, %v2150_v11 }
0x3e5d   :  { %2153 = vrot.lane.b32.xlu1 %v2151_v26, %s2711_s6 }
0x3e81   :  { %1247 = vadd.xlane.f32.xlu1 %v1232_v2 }
0x3e92   :  { %1066 = vrot.lane.b32.xlu1 %v3310_v47, %s2711_s6  ;;  %v1216_v47 = vpop.xlane.xlu0 %1215 }
0x3e93   :  { %v1224_v37 = vmul.f32 0.0078125, %v1216_v47 }
0x3e95   :  { %v1264_v40 = vmul.f32 %v1224_v37, %v1224_v37  ;;  %v1280_v55 = vsub.f32 %v1198_v22, %v1224_v37 }
0x3ecf   :  { %v2154_v29 = vpop.permute.xlu1 %2153 }
0x3ed0   :  { %2530 = vmatmul.mubr.msk.bf16.vlgmr.msra.gmra.mxu1 %vm87_vm1, %v2154_v29 }
0x3f0a   :  { %v1248_v13 = vpop.xlane.xlu1 %1247 }
0x3f0b   :  { %v1256_v31 = vmul.f32 0.0078125, %v1248_v13 }
0x3f0d   :  { %v1272_v43 = vsub.f32 %v1256_v31, %v1264_v40 }
0x3f0e   :  { %v1067_v33 = vpop.permute.xlu1 %1066 }
0x3f0f   :  { %1069 = vst.msk [vmem:[%s3582_s17] sm:$0xff] %vm87_vm1, %v1067_v33  ;;  %v1288_v35 = vadd.f32 1e-05, %v1272_v43 }
0x3f11   :  { %2683 = vrsqrt.f32 %v1288_v35 }
0x3f1e   :  { %v2684_v53 = vpop.eup %2683 }
0x3f1f   :  { %v1304_v45 = vmul.f32 %v2684_v53, %v1280_v55 }
0x3f21   :  { %v1318_v25 = vmul.f32 %v3457_v34, %v1304_v45 }
0x3f23   :  { %v1332_v49 = vadd.f32 %v3463_v27, %v1318_v25 }
0x3f90   :  { %v2192_v12 = vpop.f32.mrf.mxu1 }
0x3f91   :  { %v2193_v62 = vadd.f32 %v3451_v57, %v2192_v12 }
0x3f92   :  { %v2531_v30 = vpop.f32.mrf.mxu1 }
0x3f93   :  { %2198 = vadd.xlane.f32.xlu0 %v2193_v62  ;;  %v2201_v38 = vmul.f32 %v2193_v62, %v2193_v62 }
0x3f94   :  { %v2195_v5 = vpop.f32.mrf.mxu1 }
0x3f96   :  { %v2532_v39 = vpop.f32.mrf.mxu1 }
0x3f97   :  { %2202 = vadd.xlane.f32.xlu0 %v2201_v38 }
0x401c   :  { %v2199_v21 = vpop.xlane.xlu0 %2198 }
0x401d   :  { %v2200_v61 = vmul.f32 0.0078125, %v2199_v21 }
0x401f   :  { %v2205_v41 = vmul.f32 %v2200_v61, %v2200_v61  ;;  %v2207_v50 = vsub.f32 %v2193_v62, %v2200_v61 }
0x4020   :  { %v2203_v52 = vpop.xlane.xlu0 %2202 }
0x4021   :  { %v2204_v36 = vmul.f32 0.0078125, %v2203_v52 }
0x4023   :  { %v2206_v42 = vsub.f32 %v2204_v36, %v2205_v41 }
0x4025   :  { %v2208_v57 = vadd.f32 1e-05, %v2206_v42 }
0x4027   :  { %2685 = vrsqrt.f32 %v2208_v57 }
0x4034   :  { %v2686_v28 = vpop.eup %2685 }
0x4035   :  { %v2210_v17 = vmul.f32 %v2686_v28, %v2207_v50 }
0x4037   :  { %v2211_v59 = vmul.f32 %v3469_v32, %v2210_v17 }
0x4039   :  { %v2214_v63 = vadd.f32 %v2211_v59, %v1332_v49 }
0x403b   :  { %v2215_v51 = vmul.f32 %v3475_v6, %v2214_v63 }
0x403d   :  { %2687 = vtanh.f32 %v2215_v51 }
0x404a   :  { %v2688_v48 = vpop.eup %2687 }
0x404b   :  { %v2217_v56 = vmul.f32 %v3475_v6, %v2688_v48 }
0x404d   :  { %v2218_v15 = vadd.f32 %v3482_v58, %v2217_v56 }
0x404f   :  { %2221 = vrot.lane.b32.xlu0 %v2218_v15, %s2709_s29  ;;  %v2219_v7 = vmul.f32 %v2218_v15, %v3515_v3 }
0x40c1   :  { %v2222_v1 = vpop.permute.xlu0 %2221 }
0x40c2   :  { %v2224_v34 = vmul.f32 %v2222_v1, %v2218_v15 }
0x40c4   :  { %2226 = vrot.lane.b32.xlu1 %v2224_v34, %s2709_s29 }
0x4136   :  { %v2227_v27 = vpop.permute.xlu1 %2226 }
0x4137   :  { %v2229_v44 = vadd.f32 %v2227_v27, %v2219_v7 }
0x4139   :  { %2231 = vrot.lane.b32.xlu1 %v2229_v44, %s2710_s30  ;;  %v2238_v32 = vmul.f32 %v2229_v44, %v2229_v44 }
0x413d   :  { %2240 = vrot.lane.b32.xlu1 %v2238_v32, %s2710_s30 }
0x41ab   :  { %v2232_v8 = vpop.permute.xlu1 %2231 }
0x41ac   :  { %2266 = vst.msk [vmem:[%s3581_s18 + $0x8] sm:$0xff] %vm87_vm1, %v2232_v8  ;;  %v2234_v6 = vsel %vm87_vm1, %v2232_v8, 0.0 }
0x41ad   :  { %2235 = vadd.xlane.f32.xlu0 %v2234_v6 }
0x41af   :  { %v2241_v58 = vpop.permute.xlu1 %2240 }
0x41b0   :  { %v2243_v60 = vsel %vm87_vm1, %v2241_v58, 0.0 }
0x41b1   :  { %2244 = vadd.xlane.f32.xlu1 %v2243_v60 }
0x4236   :  { %v2236_v3 = vpop.xlane.xlu0 %2235 }
0x4237   :  { %v2237_v10 = vmul.f32 0.03125, %v2236_v3 }
0x4239   :  { %v2247_v54 = vmul.f32 %v2237_v10, %v2237_v10  ;;  %v2249_v16 = vsub.f32 %v2229_v44, %v2237_v10 }
0x423a   :  { %v2245_v0 = vpop.xlane.xlu1 %2244 }
0x423b   :  { %v2246_v46 = vmul.f32 0.03125, %v2245_v0 }
0x423d   :  { %v2248_v14 = vsub.f32 %v2246_v46, %v2247_v54 }
0x423f   :  { %v2250_v9 = vadd.f32 1e-05, %v2248_v14 }
0x4241   :  { %2689 = vrsqrt.f32 %v2250_v9 }
0x424e   :  { %v2690_v4 = vpop.eup %2689 }
0x424f   :  { %v2252_v18 = vmul.f32 %v2690_v4, %v2249_v16 }
0x4251   :  { %v2253_v19 = vmul.f32 %v2252_v18, %v3219_v20 }
0x4253   :  { %v2254_v22 = vadd.f32 %v2253_v19, %v3221_v23 }
0x4255   :  { %2691 = vtanh.f32 %v2254_v22 }
0x4262   :  { %v2692_v24 = vpop.eup %2691 }
0x4263   :  { %2257 = vrot.lane.b32.xlu0 %v2692_v24, %s2709_s29 }
0x42d5   :  { %v2258_v11 = vpop.permute.xlu0 %2257 }
0x42d6   :  { %v2260_v26 = vmul.f32 %v2258_v11, %v2218_v15 }
0x42d8   :  { %2262 = vrot.lane.b32.xlu1 %v2260_v26, %s2711_s6 }
0x434a   :  { %v2263_v2 = vpop.permute.xlu1 %2262 }
0x434b   :  { %2265 = vst.msk [vmem:[%s3582_s17 + $0x8] sm:$0xff] %vm87_vm1, %v2263_v2 }

</bundles_post_ra>
